<compile_context>
chip_gen: v6e
topology: v6e:2x2x1
jax: 0.10.0
libtpu: 0.0.40
codegen_flags: <defaults>
</compile_context>

<pallas_src>
import functools

import jax
import jax.numpy as jnp
from jax.experimental import pallas as pl
from jax.experimental.pallas import tpu as pltpu


# ----------------------------------------------------------------------------
# Fused Pallas kernel: whole ADMM block forward for one batch element
# ----------------------------------------------------------------------------
def _admm_block_kernel(rho_ref, mask_ref, v_pre_ref, u_pre_ref, y_ref, *rest,
                       H, W, K, n_convs, n_resblocks):
    HW = H * W
    P = K // 2
    n_layers = 2 * n_convs + 3 + 2 * n_resblocks
    assert len(rest) == 2 * n_layers + 2
    wb_refs = rest[:2 * n_layers]
    v_out_ref, u_out_ref = rest[2 * n_layers], rest[2 * n_layers + 1]

    rho = rho_ref[0]                                    # scalar from SMEM
    # Per-tap boundary-validity masks, loaded once and reused by all convs.
    tap_masks = [mask_ref[t:t + 1, :] for t in range(K * K)]   # each (1, HW)

    layer = [0]

    def conv(x, relu):
        """'same' conv on a lane-dense (Cin, HW) activation: one im2col matmul."""
        w_ref, b_ref = wb_refs[2 * layer[0]], wb_refs[2 * layer[0] + 1]
        layer[0] += 1
        cin = x.shape[0]
        taps = []
        t = 0
        for kh in range(K):
            for kw in range(K):
                s = (kh - P) * W + (kw - P)             # flat source offset
                if s > 0:
                    sh = jnp.concatenate(
                        [x[:, s:], jnp.zeros((cin, s), jnp.float32)], axis=1)
                elif s < 0:
                    sh = jnp.concatenate(
                        [jnp.zeros((cin, -s), jnp.float32), x[:, :s]], axis=1)
                else:
                    sh = x
                taps.append(sh * tap_masks[t])          # zero out-of-image taps
                t += 1
        patches = jnp.concatenate(taps, axis=0)         # (K*K*Cin, HW)
        out = jnp.dot(w_ref[...], patches,
                      preferred_element_type=jnp.float32)   # (Cout, HW)
        out = out + b_ref[...]                           # (Cout, 1) broadcast
        return jnp.maximum(out, 0.0) if relu else out

    v_pre = v_pre_ref[...]                               # (C, HW)
    u_pre = u_pre_ref[...]                               # (C, HW)
    yv = y_ref[...]                                      # (1, HW)

    # net2(y)
    t = yv
    for i in range(n_convs):
        t = conv(t, relu=(i < n_convs - 1))
    # x = net1( net2(y) + rho * (v_pre + u_pre) )
    x = t + rho * (v_pre + u_pre)
    for i in range(n_convs):
        x = conv(x, relu=(i < n_convs - 1))
    # v = EDSR denoiser(x - u_pre)
    h = conv(x - u_pre, relu=False)                      # head conv
    r = h
    for _ in range(n_resblocks):
        tmp = conv(r, relu=True)
        tmp = conv(tmp, relu=False)
        r = r + tmp                                      # res_scale = 1 skip
    r = conv(r, relu=False)                              # body-end conv
    r = r + h                                            # global skip
    v = conv(r, relu=False)                              # tail conv
    # u = u_pre - x + v
    u = u_pre - x + v

    v_out_ref[...] = v.astype(v_out_ref.dtype)
    u_out_ref[...] = u.astype(u_out_ref.dtype)


# ----------------------------------------------------------------------------
# Wrapper: layout plumbing + one pallas_call
# ----------------------------------------------------------------------------
def _flatten_conv_params(params):
    """Weights in the exact order the kernel consumes them."""
    layers = list(params["net2"]) + list(params["net1"])
    den = params["denoiser"]
    layers.append(den["head"])
    for (w1, b1, w2, b2) in den["resblocks"]:
        layers.append((w1, b1))
        layers.append((w2, b2))
    layers.append(den["body_tail"])
    layers.append(den["tail"])
    return layers


def _tap_mask(H, W, K):
    """(K*K, H*W) f32 validity masks for each conv tap ('same' zero padding)."""
    HW = H * W
    P = K // 2
    rows = jnp.arange(HW, dtype=jnp.int32) // W
    cols = jnp.arange(HW, dtype=jnp.int32) % W
    masks = []
    for kh in range(K):
        for kw in range(K):
            dh, dw = kh - P, kw - P
            ok = ((rows + dh >= 0) & (rows + dh < H)
                  & (cols + dw >= 0) & (cols + dw < W))
            masks.append(ok.astype(jnp.float32))
    return jnp.stack(masks, axis=0)


def admm_block_forward_pallas(params, v_pre, u_pre, y):
    """v_pre, u_pre: (N, C, H, W); y: (N, 1, H, W) — PyTorch NCHW layout."""
    N, C, H, W = v_pre.shape
    HW = H * W
    layers = _flatten_conv_params(params)
    K = layers[0][0].shape[0]
    n_convs = len(params["net1"])
    n_resblocks = len(params["denoiser"]["resblocks"])

    # Lane-dense flattening: NCHW -> (N, C, H*W) is a pure reshape.
    v_flat = v_pre.reshape(N, C, HW)
    u_flat = u_pre.reshape(N, C, HW)
    y_flat = y.reshape(N, 1, HW)
    mask = _tap_mask(H, W, K)

    # Pre-flatten conv weights for the in-kernel im2col matmul.
    wb = []
    for (w, b) in layers:
        kh, kw, cin, cout = w.shape
        wb.append(w.reshape(kh * kw * cin, cout).T)      # (Cout, K*K*Cin)
        wb.append(b.reshape(cout, 1))                    # (Cout, 1)

    def full(a):
        return pl.BlockSpec(a.shape, lambda n: (0,) * a.ndim)

    def per_batch(c):
        return pl.BlockSpec((None, c, HW), lambda n: (n, 0, 0))

    in_specs = ([pl.BlockSpec(memory_space=pltpu.MemorySpace.SMEM),   # rho
                 full(mask),
                 per_batch(C), per_batch(C), per_batch(1)]
                + [full(a) for a in wb])

    kern = functools.partial(_admm_block_kernel, H=H, W=W, K=K,
                             n_convs=n_convs, n_resblocks=n_resblocks)
    v_out, u_out = pl.pallas_call(
        kern,
        out_shape=(jax.ShapeDtypeStruct((N, C, HW), jnp.float32),
                   jax.ShapeDtypeStruct((N, C, HW), jnp.float32)),
        grid=(N,),
        in_specs=in_specs,
        out_specs=(per_batch(C), per_batch(C)),
        compiler_params=pltpu.CompilerParams(
            dimension_semantics=("parallel",)),
    )(params["rho"], mask, v_flat, u_flat, y_flat, *wb)

    return v_out.reshape(N, C, H, W), u_out.reshape(N, C, H, W)


# ----------------------------------------------------------------------------
# Plain-JAX reference (NCHW) — correctness check only
# ----------------------------------------------------------------------------
def conv2d_ref(x, w, b, relu=False):
    out = jax.lax.conv_general_dilated(
        x, w, window_strides=(1, 1), padding="SAME",
        dimension_numbers=("NCHW", "HWIO", "NCHW"))
    out = out + b.reshape(1, -1, 1, 1)
    return jnp.maximum(out, 0.0) if relu else out


def admm_block_forward_ref(params, v_pre, u_pre, y):
    rho = params["rho"][0]

    def stack(layers, x):
        n = len(layers)
        for i, (w, b) in enumerate(layers):
            x = conv2d_ref(x, w, b, relu=(i < n - 1))
        return x

    x = stack(params["net1"],
              stack(params["net2"], y) + rho * (v_pre + u_pre))
    den = params["denoiser"]
    h = conv2d_ref(x - u_pre, *den["head"])
    r = h
    for (w1, b1, w2, b2) in den["resblocks"]:
        t = conv2d_ref(r, w1, b1, relu=True)
        t = conv2d_ref(t, w2, b2, relu=False)
        r = r + t
    r = conv2d_ref(r, *den["body_tail"])
    r = r + h
    v = conv2d_ref(r, *den["tail"])
    u = u_pre - x + v
    return v, u


# ----------------------------------------------------------------------------
# Deterministic parameter construction
# ----------------------------------------------------------------------------
def init_conv(key, k, cin, cout, scale=0.1):
    kw, kb = jax.random.split(key)
    w = scale * jax.random.normal(kw, (k, k, cin, cout), jnp.float32)
    b = scale * jax.random.normal(kb, (cout,), jnp.float32)
    return w, b


def init_params(key, n_resblocks, in_channels, n_feats, n_convs, k):
    keys = iter(jax.random.split(key, 64))
    params = {"rho": jnp.array([0.01], jnp.float32)}

    def conv_stack(cin, cout, n):
        return [init_conv(next(keys), k, cin if i == 0 else cout, cout)
                for i in range(n)]

    params["net1"] = conv_stack(in_channels, in_channels, n_convs)
    params["net2"] = conv_stack(1, in_channels, n_convs)
    params["denoiser"] = {
        "head": init_conv(next(keys), k, in_channels, n_feats),
        "resblocks": [tuple(init_conv(next(keys), k, n_feats, n_feats))
                      + tuple(init_conv(next(keys), k, n_feats, n_feats))
                      for _ in range(n_resblocks)],
        "body_tail": init_conv(next(keys), k, n_feats, n_feats),
        "tail": init_conv(next(keys), k, n_feats, in_channels),
    }
    return params


# ----------------------------------------------------------------------------
if __name__ == "__main__":
    n_resblocks, in_channels, n_feats, n_convs, kernel_size = 2, 4, 8, 2, 3
    N, H, W = 2, 16, 16

    key = jax.random.PRNGKey(0)
    kp, kv, ku, ky = jax.random.split(key, 4)
    params = init_params(kp, n_resblocks, in_channels, n_feats, n_convs,
                         kernel_size)

    # PyTorch NCHW inputs, consumed directly (flattened to (N, C, H*W) inside).
    v_pre = jax.random.normal(kv, (N, in_channels, H, W), jnp.float32)
    u_pre = jax.random.normal(ku, (N, in_channels, H, W), jnp.float32)
    y = jax.random.normal(ky, (N, 1, H, W), jnp.float32)

    fwd = jax.jit(admm_block_forward_pallas)
    v_out, u_out = fwd(params, v_pre, u_pre, y)
    v_out = jax.block_until_ready(v_out)
    u_out = jax.block_until_ready(u_out)

    v_ref, u_ref = admm_block_forward_ref(params, v_pre, u_pre, y)
    assert v_out.shape == (N, in_channels, H, W)
    assert u_out.shape == (N, in_channels, H, W)
    assert jnp.allclose(v_out, v_ref, rtol=1e-3, atol=1e-3), "v mismatch"
    assert jnp.allclose(u_out, u_ref, rtol=1e-3, atol=1e-3), "u mismatch"

    print("KERNEL_OK")
</pallas_src>

<mosaic_0001>
module attributes {stable_mosaic.version = 11 : i64} {
  func.func @_admm_block_kernel(%arg0: i32, %arg1: memref<1xf32, #tpu.memory_space<smem>>, %arg2: memref<9x256xf32, #tpu.memory_space<vmem>>, %arg3: memref<1x4x256xf32, #tpu.memory_space<vmem>>, %arg4: memref<1x4x256xf32, #tpu.memory_space<vmem>>, %arg5: memref<1x1x256xf32, #tpu.memory_space<vmem>>, %arg6: memref<4x9xf32, #tpu.memory_space<vmem>>, %arg7: memref<4x1xf32, #tpu.memory_space<vmem>>, %arg8: memref<4x36xf32, #tpu.memory_space<vmem>>, %arg9: memref<4x1xf32, #tpu.memory_space<vmem>>, %arg10: memref<4x36xf32, #tpu.memory_space<vmem>>, %arg11: memref<4x1xf32, #tpu.memory_space<vmem>>, %arg12: memref<4x36xf32, #tpu.memory_space<vmem>>, %arg13: memref<4x1xf32, #tpu.memory_space<vmem>>, %arg14: memref<8x36xf32, #tpu.memory_space<vmem>>, %arg15: memref<8x1xf32, #tpu.memory_space<vmem>>, %arg16: memref<8x72xf32, #tpu.memory_space<vmem>>, %arg17: memref<8x1xf32, #tpu.memory_space<vmem>>, %arg18: memref<8x72xf32, #tpu.memory_space<vmem>>, %arg19: memref<8x1xf32, #tpu.memory_space<vmem>>, %arg20: memref<8x72xf32, #tpu.memory_space<vmem>>, %arg21: memref<8x1xf32, #tpu.memory_space<vmem>>, %arg22: memref<8x72xf32, #tpu.memory_space<vmem>>, %arg23: memref<8x1xf32, #tpu.memory_space<vmem>>, %arg24: memref<8x72xf32, #tpu.memory_space<vmem>>, %arg25: memref<8x1xf32, #tpu.memory_space<vmem>>, %arg26: memref<4x72xf32, #tpu.memory_space<vmem>>, %arg27: memref<4x1xf32, #tpu.memory_space<vmem>>, %arg28: memref<1x4x256xf32, #tpu.memory_space<vmem>>, %arg29: memref<1x4x256xf32, #tpu.memory_space<vmem>>) attributes {dimension_semantics = [#tpu.dimension_semantics<parallel>], iteration_bounds = array<i64: 2>, scalar_prefetch = 0 : i64, scratch_operands = 0 : i64, tpu.core_type = #tpu.core_type<tc>, window_params = [{transform_indices = @transform_0, window_bounds = array<i64: 1>}, {pipeline_mode = #tpu.pipeline_mode<synchronous>, transform_indices = @transform_1, window_bounds = array<i64: 9, 256>}, {transform_indices = @transform_2, window_bounds = array<i64: 1, 4, 256>}, {transform_indices = @transform_3, window_bounds = array<i64: 1, 4, 256>}, {transform_indices = @transform_4, window_bounds = array<i64: 1, 1, 256>}, {pipeline_mode = #tpu.pipeline_mode<synchronous>, transform_indices = @transform_5, window_bounds = array<i64: 4, 9>}, {pipeline_mode = #tpu.pipeline_mode<synchronous>, transform_indices = @transform_6, window_bounds = array<i64: 4, 1>}, {pipeline_mode = #tpu.pipeline_mode<synchronous>, transform_indices = @transform_7, window_bounds = array<i64: 4, 36>}, {pipeline_mode = #tpu.pipeline_mode<synchronous>, transform_indices = @transform_8, window_bounds = array<i64: 4, 1>}, {pipeline_mode = #tpu.pipeline_mode<synchronous>, transform_indices = @transform_9, window_bounds = array<i64: 4, 36>}, {pipeline_mode = #tpu.pipeline_mode<synchronous>, transform_indices = @transform_10, window_bounds = array<i64: 4, 1>}, {pipeline_mode = #tpu.pipeline_mode<synchronous>, transform_indices = @transform_11, window_bounds = array<i64: 4, 36>}, {pipeline_mode = #tpu.pipeline_mode<synchronous>, transform_indices = @transform_12, window_bounds = array<i64: 4, 1>}, {pipeline_mode = #tpu.pipeline_mode<synchronous>, transform_indices = @transform_13, window_bounds = array<i64: 8, 36>}, {pipeline_mode = #tpu.pipeline_mode<synchronous>, transform_indices = @transform_14, window_bounds = array<i64: 8, 1>}, {pipeline_mode = #tpu.pipeline_mode<synchronous>, transform_indices = @transform_15, window_bounds = array<i64: 8, 72>}, {pipeline_mode = #tpu.pipeline_mode<synchronous>, transform_indices = @transform_16, window_bounds = array<i64: 8, 1>}, {pipeline_mode = #tpu.pipeline_mode<synchronous>, transform_indices = @transform_17, window_bounds = array<i64: 8, 72>}, {pipeline_mode = #tpu.pipeline_mode<synchronous>, transform_indices = @transform_18, window_bounds = array<i64: 8, 1>}, {pipeline_mode = #tpu.pipeline_mode<synchronous>, transform_indices = @transform_19, window_bounds = array<i64: 8, 72>}, {pipeline_mode = #tpu.pipeline_mode<synchronous>, transform_indices = @transform_20, window_bounds = array<i64: 8, 1>}, {pipeline_mode = #tpu.pipeline_mode<synchronous>, transform_indices = @transform_21, window_bounds = array<i64: 8, 72>}, {pipeline_mode = #tpu.pipeline_mode<synchronous>, transform_indices = @transform_22, window_bounds = array<i64: 8, 1>}, {pipeline_mode = #tpu.pipeline_mode<synchronous>, transform_indices = @transform_23, window_bounds = array<i64: 8, 72>}, {pipeline_mode = #tpu.pipeline_mode<synchronous>, transform_indices = @transform_24, window_bounds = array<i64: 8, 1>}, {pipeline_mode = #tpu.pipeline_mode<synchronous>, transform_indices = @transform_25, window_bounds = array<i64: 4, 72>}, {pipeline_mode = #tpu.pipeline_mode<synchronous>, transform_indices = @transform_26, window_bounds = array<i64: 4, 1>}, {transform_indices = @transform_27, window_bounds = array<i64: 1, 4, 256>}, {transform_indices = @transform_28, window_bounds = array<i64: 1, 4, 256>}]} {
    %c0 = arith.constant 0 : index
    %0 = memref.load %arg1[%c0] : memref<1xf32, #tpu.memory_space<smem>>
    %c0_0 = arith.constant 0 : index
    %c0_1 = arith.constant 0 : index
    %1 = vector.load %arg2[%c0_0, %c0_1] : memref<9x256xf32, #tpu.memory_space<vmem>>, vector<1x256xf32>
    %c1 = arith.constant 1 : index
    %c0_2 = arith.constant 0 : index
    %2 = vector.load %arg2[%c1, %c0_2] : memref<9x256xf32, #tpu.memory_space<vmem>>, vector<1x256xf32>
    %c2 = arith.constant 2 : index
    %c0_3 = arith.constant 0 : index
    %3 = vector.load %arg2[%c2, %c0_3] : memref<9x256xf32, #tpu.memory_space<vmem>>, vector<1x256xf32>
    %c3 = arith.constant 3 : index
    %c0_4 = arith.constant 0 : index
    %4 = vector.load %arg2[%c3, %c0_4] : memref<9x256xf32, #tpu.memory_space<vmem>>, vector<1x256xf32>
    %c4 = arith.constant 4 : index
    %c0_5 = arith.constant 0 : index
    %5 = vector.load %arg2[%c4, %c0_5] : memref<9x256xf32, #tpu.memory_space<vmem>>, vector<1x256xf32>
    %c5 = arith.constant 5 : index
    %c0_6 = arith.constant 0 : index
    %6 = vector.load %arg2[%c5, %c0_6] : memref<9x256xf32, #tpu.memory_space<vmem>>, vector<1x256xf32>
    %c6 = arith.constant 6 : index
    %c0_7 = arith.constant 0 : index
    %7 = vector.load %arg2[%c6, %c0_7] : memref<9x256xf32, #tpu.memory_space<vmem>>, vector<1x256xf32>
    %c7 = arith.constant 7 : index
    %c0_8 = arith.constant 0 : index
    %8 = vector.load %arg2[%c7, %c0_8] : memref<9x256xf32, #tpu.memory_space<vmem>>, vector<1x256xf32>
    %c8 = arith.constant 8 : index
    %c0_9 = arith.constant 0 : index
    %9 = vector.load %arg2[%c8, %c0_9] : memref<9x256xf32, #tpu.memory_space<vmem>>, vector<1x256xf32>
    %c0_10 = arith.constant 0 : index
    %c0_11 = arith.constant 0 : index
    %c0_12 = arith.constant 0 : index
    %10 = vector.load %arg3[%c0_10, %c0_11, %c0_12] : memref<1x4x256xf32, #tpu.memory_space<vmem>>, vector<1x4x256xf32>
    %11 = vector.shape_cast %10 : vector<1x4x256xf32> to vector<4x256xf32>
    %c0_13 = arith.constant 0 : index
    %c0_14 = arith.constant 0 : index
    %c0_15 = arith.constant 0 : index
    %12 = vector.load %arg4[%c0_13, %c0_14, %c0_15] : memref<1x4x256xf32, #tpu.memory_space<vmem>>, vector<1x4x256xf32>
    %13 = vector.shape_cast %12 : vector<1x4x256xf32> to vector<4x256xf32>
    %c0_16 = arith.constant 0 : index
    %c0_17 = arith.constant 0 : index
    %c0_18 = arith.constant 0 : index
    %14 = vector.load %arg5[%c0_16, %c0_17, %c0_18] : memref<1x1x256xf32, #tpu.memory_space<vmem>>, vector<1x1x256xf32>
    %15 = vector.shape_cast %14 : vector<1x1x256xf32> to vector<1x256xf32>
    %cst = arith.constant 0.000000e+00 : f32
    %16 = vector.broadcast %cst : f32 to vector<1x17xf32>
    %17 = vector.extract_strided_slice %15 {offsets = [0, 0], sizes = [1, 239], strides = [1, 1]} : vector<1x256xf32> to vector<1x239xf32>
    %18 = tpu.concatenate %16, %17 in 1 : vector<1x17xf32>, vector<1x239xf32> -> vector<1x256xf32>
    %19 = arith.mulf %18, %1 : vector<1x256xf32>
    %cst_19 = arith.constant 0.000000e+00 : f32
    %20 = vector.broadcast %cst_19 : f32 to vector<1x16xf32>
    %21 = vector.extract_strided_slice %15 {offsets = [0, 0], sizes = [1, 240], strides = [1, 1]} : vector<1x256xf32> to vector<1x240xf32>
    %22 = tpu.concatenate %20, %21 in 1 : vector<1x16xf32>, vector<1x240xf32> -> vector<1x256xf32>
    %23 = arith.mulf %22, %2 : vector<1x256xf32>
    %cst_20 = arith.constant 0.000000e+00 : f32
    %24 = vector.broadcast %cst_20 : f32 to vector<1x15xf32>
    %25 = vector.extract_strided_slice %15 {offsets = [0, 0], sizes = [1, 241], strides = [1, 1]} : vector<1x256xf32> to vector<1x241xf32>
    %26 = tpu.concatenate %24, %25 in 1 : vector<1x15xf32>, vector<1x241xf32> -> vector<1x256xf32>
    %27 = arith.mulf %26, %3 : vector<1x256xf32>
    %cst_21 = arith.constant 0.000000e+00 : f32
    %28 = vector.broadcast %cst_21 : f32 to vector<1x1xf32>
    %29 = vector.extract_strided_slice %15 {offsets = [0, 0], sizes = [1, 255], strides = [1, 1]} : vector<1x256xf32> to vector<1x255xf32>
    %30 = tpu.concatenate %28, %29 in 1 : vector<1x1xf32>, vector<1x255xf32> -> vector<1x256xf32>
    %31 = arith.mulf %30, %4 : vector<1x256xf32>
    %32 = arith.mulf %15, %5 : vector<1x256xf32>
    %33 = vector.extract_strided_slice %15 {offsets = [0, 1], sizes = [1, 255], strides = [1, 1]} : vector<1x256xf32> to vector<1x255xf32>
    %cst_22 = arith.constant 0.000000e+00 : f32
    %34 = vector.broadcast %cst_22 : f32 to vector<1x1xf32>
    %35 = tpu.concatenate %33, %34 in 1 : vector<1x255xf32>, vector<1x1xf32> -> vector<1x256xf32>
    %36 = arith.mulf %35, %6 : vector<1x256xf32>
    %37 = vector.extract_strided_slice %15 {offsets = [0, 15], sizes = [1, 241], strides = [1, 1]} : vector<1x256xf32> to vector<1x241xf32>
    %cst_23 = arith.constant 0.000000e+00 : f32
    %38 = vector.broadcast %cst_23 : f32 to vector<1x15xf32>
    %39 = tpu.concatenate %37, %38 in 1 : vector<1x241xf32>, vector<1x15xf32> -> vector<1x256xf32>
    %40 = arith.mulf %39, %7 : vector<1x256xf32>
    %41 = vector.extract_strided_slice %15 {offsets = [0, 16], sizes = [1, 240], strides = [1, 1]} : vector<1x256xf32> to vector<1x240xf32>
    %cst_24 = arith.constant 0.000000e+00 : f32
    %42 = vector.broadcast %cst_24 : f32 to vector<1x16xf32>
    %43 = tpu.concatenate %41, %42 in 1 : vector<1x240xf32>, vector<1x16xf32> -> vector<1x256xf32>
    %44 = arith.mulf %43, %8 : vector<1x256xf32>
    %45 = vector.extract_strided_slice %15 {offsets = [0, 17], sizes = [1, 239], strides = [1, 1]} : vector<1x256xf32> to vector<1x239xf32>
    %cst_25 = arith.constant 0.000000e+00 : f32
    %46 = vector.broadcast %cst_25 : f32 to vector<1x17xf32>
    %47 = tpu.concatenate %45, %46 in 1 : vector<1x239xf32>, vector<1x17xf32> -> vector<1x256xf32>
    %48 = arith.mulf %47, %9 : vector<1x256xf32>
    %49 = tpu.concatenate %19, %23, %27, %31, %32, %36, %40, %44, %48 in 0 : vector<1x256xf32>, vector<1x256xf32>, vector<1x256xf32>, vector<1x256xf32>, vector<1x256xf32>, vector<1x256xf32>, vector<1x256xf32>, vector<1x256xf32>, vector<1x256xf32> -> vector<9x256xf32>
    %c0_26 = arith.constant 0 : index
    %c0_27 = arith.constant 0 : index
    %50 = vector.load %arg6[%c0_26, %c0_27] : memref<4x9xf32, #tpu.memory_space<vmem>>, vector<4x9xf32>
    %cst_28 = arith.constant dense<0.000000e+00> : vector<4x256xf32>
    %51 = tpu.matmul %50, %49, %cst_28 {dimension_numbers = #tpu.dot_dimension_numbers<[1], [0], [0], [1], [0, 0, 1, 1], [], []>} : vector<4x9xf32>, vector<9x256xf32>, vector<4x256xf32> -> vector<4x256xf32>
    %c0_29 = arith.constant 0 : index
    %c0_30 = arith.constant 0 : index
    %52 = vector.load %arg7[%c0_29, %c0_30] : memref<4x1xf32, #tpu.memory_space<vmem>>, vector<4x1xf32>
    %53 = vector.broadcast %52 : vector<4x1xf32> to vector<4x256xf32>
    %54 = arith.addf %51, %53 : vector<4x256xf32>
    %cst_31 = arith.constant 0.000000e+00 : f32
    %55 = vector.broadcast %cst_31 : f32 to vector<4x256xf32>
    %56 = arith.maximumf %54, %55 : vector<4x256xf32>
    %cst_32 = arith.constant 0.000000e+00 : f32
    %57 = vector.broadcast %cst_32 : f32 to vector<4x17xf32>
    %58 = vector.extract_strided_slice %56 {offsets = [0, 0], sizes = [4, 239], strides = [1, 1]} : vector<4x256xf32> to vector<4x239xf32>
    %59 = tpu.concatenate %57, %58 in 1 : vector<4x17xf32>, vector<4x239xf32> -> vector<4x256xf32>
    %60 = vector.broadcast %1 : vector<1x256xf32> to vector<4x256xf32>
    %61 = arith.mulf %59, %60 : vector<4x256xf32>
    %cst_33 = arith.constant 0.000000e+00 : f32
    %62 = vector.broadcast %cst_33 : f32 to vector<4x16xf32>
    %63 = vector.extract_strided_slice %56 {offsets = [0, 0], sizes = [4, 240], strides = [1, 1]} : vector<4x256xf32> to vector<4x240xf32>
    %64 = tpu.concatenate %62, %63 in 1 : vector<4x16xf32>, vector<4x240xf32> -> vector<4x256xf32>
    %65 = vector.broadcast %2 : vector<1x256xf32> to vector<4x256xf32>
    %66 = arith.mulf %64, %65 : vector<4x256xf32>
    %cst_34 = arith.constant 0.000000e+00 : f32
    %67 = vector.broadcast %cst_34 : f32 to vector<4x15xf32>
    %68 = vector.extract_strided_slice %56 {offsets = [0, 0], sizes = [4, 241], strides = [1, 1]} : vector<4x256xf32> to vector<4x241xf32>
    %69 = tpu.concatenate %67, %68 in 1 : vector<4x15xf32>, vector<4x241xf32> -> vector<4x256xf32>
    %70 = vector.broadcast %3 : vector<1x256xf32> to vector<4x256xf32>
    %71 = arith.mulf %69, %70 : vector<4x256xf32>
    %cst_35 = arith.constant 0.000000e+00 : f32
    %72 = vector.broadcast %cst_35 : f32 to vector<4x1xf32>
    %73 = vector.extract_strided_slice %56 {offsets = [0, 0], sizes = [4, 255], strides = [1, 1]} : vector<4x256xf32> to vector<4x255xf32>
    %74 = tpu.concatenate %72, %73 in 1 : vector<4x1xf32>, vector<4x255xf32> -> vector<4x256xf32>
    %75 = vector.broadcast %4 : vector<1x256xf32> to vector<4x256xf32>
    %76 = arith.mulf %74, %75 : vector<4x256xf32>
    %77 = vector.broadcast %5 : vector<1x256xf32> to vector<4x256xf32>
    %78 = arith.mulf %56, %77 : vector<4x256xf32>
    %79 = vector.extract_strided_slice %56 {offsets = [0, 1], sizes = [4, 255], strides = [1, 1]} : vector<4x256xf32> to vector<4x255xf32>
    %cst_36 = arith.constant 0.000000e+00 : f32
    %80 = vector.broadcast %cst_36 : f32 to vector<4x1xf32>
    %81 = tpu.concatenate %79, %80 in 1 : vector<4x255xf32>, vector<4x1xf32> -> vector<4x256xf32>
    %82 = vector.broadcast %6 : vector<1x256xf32> to vector<4x256xf32>
    %83 = arith.mulf %81, %82 : vector<4x256xf32>
    %84 = vector.extract_strided_slice %56 {offsets = [0, 15], sizes = [4, 241], strides = [1, 1]} : vector<4x256xf32> to vector<4x241xf32>
    %cst_37 = arith.constant 0.000000e+00 : f32
    %85 = vector.broadcast %cst_37 : f32 to vector<4x15xf32>
    %86 = tpu.concatenate %84, %85 in 1 : vector<4x241xf32>, vector<4x15xf32> -> vector<4x256xf32>
    %87 = vector.broadcast %7 : vector<1x256xf32> to vector<4x256xf32>
    %88 = arith.mulf %86, %87 : vector<4x256xf32>
    %89 = vector.extract_strided_slice %56 {offsets = [0, 16], sizes = [4, 240], strides = [1, 1]} : vector<4x256xf32> to vector<4x240xf32>
    %cst_38 = arith.constant 0.000000e+00 : f32
    %90 = vector.broadcast %cst_38 : f32 to vector<4x16xf32>
    %91 = tpu.concatenate %89, %90 in 1 : vector<4x240xf32>, vector<4x16xf32> -> vector<4x256xf32>
    %92 = vector.broadcast %8 : vector<1x256xf32> to vector<4x256xf32>
    %93 = arith.mulf %91, %92 : vector<4x256xf32>
    %94 = vector.extract_strided_slice %56 {offsets = [0, 17], sizes = [4, 239], strides = [1, 1]} : vector<4x256xf32> to vector<4x239xf32>
    %cst_39 = arith.constant 0.000000e+00 : f32
    %95 = vector.broadcast %cst_39 : f32 to vector<4x17xf32>
    %96 = tpu.concatenate %94, %95 in 1 : vector<4x239xf32>, vector<4x17xf32> -> vector<4x256xf32>
    %97 = vector.broadcast %9 : vector<1x256xf32> to vector<4x256xf32>
    %98 = arith.mulf %96, %97 : vector<4x256xf32>
    %99 = tpu.concatenate %61, %66, %71, %76, %78, %83, %88, %93, %98 in 0 : vector<4x256xf32>, vector<4x256xf32>, vector<4x256xf32>, vector<4x256xf32>, vector<4x256xf32>, vector<4x256xf32>, vector<4x256xf32>, vector<4x256xf32>, vector<4x256xf32> -> vector<36x256xf32>
    %c0_40 = arith.constant 0 : index
    %c0_41 = arith.constant 0 : index
    %100 = vector.load %arg8[%c0_40, %c0_41] : memref<4x36xf32, #tpu.memory_space<vmem>>, vector<4x36xf32>
    %cst_42 = arith.constant dense<0.000000e+00> : vector<4x256xf32>
    %101 = tpu.matmul %100, %99, %cst_42 {dimension_numbers = #tpu.dot_dimension_numbers<[1], [0], [0], [1], [0, 0, 1, 1], [], []>} : vector<4x36xf32>, vector<36x256xf32>, vector<4x256xf32> -> vector<4x256xf32>
    %c0_43 = arith.constant 0 : index
    %c0_44 = arith.constant 0 : index
    %102 = vector.load %arg9[%c0_43, %c0_44] : memref<4x1xf32, #tpu.memory_space<vmem>>, vector<4x1xf32>
    %103 = vector.broadcast %102 : vector<4x1xf32> to vector<4x256xf32>
    %104 = arith.addf %101, %103 : vector<4x256xf32>
    %105 = arith.addf %11, %13 : vector<4x256xf32>
    %106 = vector.broadcast %0 : f32 to vector<4x256xf32>
    %107 = arith.mulf %106, %105 : vector<4x256xf32>
    %108 = arith.addf %104, %107 : vector<4x256xf32>
    %cst_45 = arith.constant 0.000000e+00 : f32
    %109 = vector.broadcast %cst_45 : f32 to vector<4x17xf32>
    %110 = vector.extract_strided_slice %108 {offsets = [0, 0], sizes = [4, 239], strides = [1, 1]} : vector<4x256xf32> to vector<4x239xf32>
    %111 = tpu.concatenate %109, %110 in 1 : vector<4x17xf32>, vector<4x239xf32> -> vector<4x256xf32>
    %112 = vector.broadcast %1 : vector<1x256xf32> to vector<4x256xf32>
    %113 = arith.mulf %111, %112 : vector<4x256xf32>
    %cst_46 = arith.constant 0.000000e+00 : f32
    %114 = vector.broadcast %cst_46 : f32 to vector<4x16xf32>
    %115 = vector.extract_strided_slice %108 {offsets = [0, 0], sizes = [4, 240], strides = [1, 1]} : vector<4x256xf32> to vector<4x240xf32>
    %116 = tpu.concatenate %114, %115 in 1 : vector<4x16xf32>, vector<4x240xf32> -> vector<4x256xf32>
    %117 = vector.broadcast %2 : vector<1x256xf32> to vector<4x256xf32>
    %118 = arith.mulf %116, %117 : vector<4x256xf32>
    %cst_47 = arith.constant 0.000000e+00 : f32
    %119 = vector.broadcast %cst_47 : f32 to vector<4x15xf32>
    %120 = vector.extract_strided_slice %108 {offsets = [0, 0], sizes = [4, 241], strides = [1, 1]} : vector<4x256xf32> to vector<4x241xf32>
    %121 = tpu.concatenate %119, %120 in 1 : vector<4x15xf32>, vector<4x241xf32> -> vector<4x256xf32>
    %122 = vector.broadcast %3 : vector<1x256xf32> to vector<4x256xf32>
    %123 = arith.mulf %121, %122 : vector<4x256xf32>
    %cst_48 = arith.constant 0.000000e+00 : f32
    %124 = vector.broadcast %cst_48 : f32 to vector<4x1xf32>
    %125 = vector.extract_strided_slice %108 {offsets = [0, 0], sizes = [4, 255], strides = [1, 1]} : vector<4x256xf32> to vector<4x255xf32>
    %126 = tpu.concatenate %124, %125 in 1 : vector<4x1xf32>, vector<4x255xf32> -> vector<4x256xf32>
    %127 = vector.broadcast %4 : vector<1x256xf32> to vector<4x256xf32>
    %128 = arith.mulf %126, %127 : vector<4x256xf32>
    %129 = vector.broadcast %5 : vector<1x256xf32> to vector<4x256xf32>
    %130 = arith.mulf %108, %129 : vector<4x256xf32>
    %131 = vector.extract_strided_slice %108 {offsets = [0, 1], sizes = [4, 255], strides = [1, 1]} : vector<4x256xf32> to vector<4x255xf32>
    %cst_49 = arith.constant 0.000000e+00 : f32
    %132 = vector.broadcast %cst_49 : f32 to vector<4x1xf32>
    %133 = tpu.concatenate %131, %132 in 1 : vector<4x255xf32>, vector<4x1xf32> -> vector<4x256xf32>
    %134 = vector.broadcast %6 : vector<1x256xf32> to vector<4x256xf32>
    %135 = arith.mulf %133, %134 : vector<4x256xf32>
    %136 = vector.extract_strided_slice %108 {offsets = [0, 15], sizes = [4, 241], strides = [1, 1]} : vector<4x256xf32> to vector<4x241xf32>
    %cst_50 = arith.constant 0.000000e+00 : f32
    %137 = vector.broadcast %cst_50 : f32 to vector<4x15xf32>
    %138 = tpu.concatenate %136, %137 in 1 : vector<4x241xf32>, vector<4x15xf32> -> vector<4x256xf32>
    %139 = vector.broadcast %7 : vector<1x256xf32> to vector<4x256xf32>
    %140 = arith.mulf %138, %139 : vector<4x256xf32>
    %141 = vector.extract_strided_slice %108 {offsets = [0, 16], sizes = [4, 240], strides = [1, 1]} : vector<4x256xf32> to vector<4x240xf32>
    %cst_51 = arith.constant 0.000000e+00 : f32
    %142 = vector.broadcast %cst_51 : f32 to vector<4x16xf32>
    %143 = tpu.concatenate %141, %142 in 1 : vector<4x240xf32>, vector<4x16xf32> -> vector<4x256xf32>
    %144 = vector.broadcast %8 : vector<1x256xf32> to vector<4x256xf32>
    %145 = arith.mulf %143, %144 : vector<4x256xf32>
    %146 = vector.extract_strided_slice %108 {offsets = [0, 17], sizes = [4, 239], strides = [1, 1]} : vector<4x256xf32> to vector<4x239xf32>
    %cst_52 = arith.constant 0.000000e+00 : f32
    %147 = vector.broadcast %cst_52 : f32 to vector<4x17xf32>
    %148 = tpu.concatenate %146, %147 in 1 : vector<4x239xf32>, vector<4x17xf32> -> vector<4x256xf32>
    %149 = vector.broadcast %9 : vector<1x256xf32> to vector<4x256xf32>
    %150 = arith.mulf %148, %149 : vector<4x256xf32>
    %151 = tpu.concatenate %113, %118, %123, %128, %130, %135, %140, %145, %150 in 0 : vector<4x256xf32>, vector<4x256xf32>, vector<4x256xf32>, vector<4x256xf32>, vector<4x256xf32>, vector<4x256xf32>, vector<4x256xf32>, vector<4x256xf32>, vector<4x256xf32> -> vector<36x256xf32>
    %c0_53 = arith.constant 0 : index
    %c0_54 = arith.constant 0 : index
    %152 = vector.load %arg10[%c0_53, %c0_54] : memref<4x36xf32, #tpu.memory_space<vmem>>, vector<4x36xf32>
    %cst_55 = arith.constant dense<0.000000e+00> : vector<4x256xf32>
    %153 = tpu.matmul %152, %151, %cst_55 {dimension_numbers = #tpu.dot_dimension_numbers<[1], [0], [0], [1], [0, 0, 1, 1], [], []>} : vector<4x36xf32>, vector<36x256xf32>, vector<4x256xf32> -> vector<4x256xf32>
    %c0_56 = arith.constant 0 : index
    %c0_57 = arith.constant 0 : index
    %154 = vector.load %arg11[%c0_56, %c0_57] : memref<4x1xf32, #tpu.memory_space<vmem>>, vector<4x1xf32>
    %155 = vector.broadcast %154 : vector<4x1xf32> to vector<4x256xf32>
    %156 = arith.addf %153, %155 : vector<4x256xf32>
    %cst_58 = arith.constant 0.000000e+00 : f32
    %157 = vector.broadcast %cst_58 : f32 to vector<4x256xf32>
    %158 = arith.maximumf %156, %157 : vector<4x256xf32>
    %cst_59 = arith.constant 0.000000e+00 : f32
    %159 = vector.broadcast %cst_59 : f32 to vector<4x17xf32>
    %160 = vector.extract_strided_slice %158 {offsets = [0, 0], sizes = [4, 239], strides = [1, 1]} : vector<4x256xf32> to vector<4x239xf32>
    %161 = tpu.concatenate %159, %160 in 1 : vector<4x17xf32>, vector<4x239xf32> -> vector<4x256xf32>
    %162 = vector.broadcast %1 : vector<1x256xf32> to vector<4x256xf32>
    %163 = arith.mulf %161, %162 : vector<4x256xf32>
    %cst_60 = arith.constant 0.000000e+00 : f32
    %164 = vector.broadcast %cst_60 : f32 to vector<4x16xf32>
    %165 = vector.extract_strided_slice %158 {offsets = [0, 0], sizes = [4, 240], strides = [1, 1]} : vector<4x256xf32> to vector<4x240xf32>
    %166 = tpu.concatenate %164, %165 in 1 : vector<4x16xf32>, vector<4x240xf32> -> vector<4x256xf32>
    %167 = vector.broadcast %2 : vector<1x256xf32> to vector<4x256xf32>
    %168 = arith.mulf %166, %167 : vector<4x256xf32>
    %cst_61 = arith.constant 0.000000e+00 : f32
    %169 = vector.broadcast %cst_61 : f32 to vector<4x15xf32>
    %170 = vector.extract_strided_slice %158 {offsets = [0, 0], sizes = [4, 241], strides = [1, 1]} : vector<4x256xf32> to vector<4x241xf32>
    %171 = tpu.concatenate %169, %170 in 1 : vector<4x15xf32>, vector<4x241xf32> -> vector<4x256xf32>
    %172 = vector.broadcast %3 : vector<1x256xf32> to vector<4x256xf32>
    %173 = arith.mulf %171, %172 : vector<4x256xf32>
    %cst_62 = arith.constant 0.000000e+00 : f32
    %174 = vector.broadcast %cst_62 : f32 to vector<4x1xf32>
    %175 = vector.extract_strided_slice %158 {offsets = [0, 0], sizes = [4, 255], strides = [1, 1]} : vector<4x256xf32> to vector<4x255xf32>
    %176 = tpu.concatenate %174, %175 in 1 : vector<4x1xf32>, vector<4x255xf32> -> vector<4x256xf32>
    %177 = vector.broadcast %4 : vector<1x256xf32> to vector<4x256xf32>
    %178 = arith.mulf %176, %177 : vector<4x256xf32>
    %179 = vector.broadcast %5 : vector<1x256xf32> to vector<4x256xf32>
    %180 = arith.mulf %158, %179 : vector<4x256xf32>
    %181 = vector.extract_strided_slice %158 {offsets = [0, 1], sizes = [4, 255], strides = [1, 1]} : vector<4x256xf32> to vector<4x255xf32>
    %cst_63 = arith.constant 0.000000e+00 : f32
    %182 = vector.broadcast %cst_63 : f32 to vector<4x1xf32>
    %183 = tpu.concatenate %181, %182 in 1 : vector<4x255xf32>, vector<4x1xf32> -> vector<4x256xf32>
    %184 = vector.broadcast %6 : vector<1x256xf32> to vector<4x256xf32>
    %185 = arith.mulf %183, %184 : vector<4x256xf32>
    %186 = vector.extract_strided_slice %158 {offsets = [0, 15], sizes = [4, 241], strides = [1, 1]} : vector<4x256xf32> to vector<4x241xf32>
    %cst_64 = arith.constant 0.000000e+00 : f32
    %187 = vector.broadcast %cst_64 : f32 to vector<4x15xf32>
    %188 = tpu.concatenate %186, %187 in 1 : vector<4x241xf32>, vector<4x15xf32> -> vector<4x256xf32>
    %189 = vector.broadcast %7 : vector<1x256xf32> to vector<4x256xf32>
    %190 = arith.mulf %188, %189 : vector<4x256xf32>
    %191 = vector.extract_strided_slice %158 {offsets = [0, 16], sizes = [4, 240], strides = [1, 1]} : vector<4x256xf32> to vector<4x240xf32>
    %cst_65 = arith.constant 0.000000e+00 : f32
    %192 = vector.broadcast %cst_65 : f32 to vector<4x16xf32>
    %193 = tpu.concatenate %191, %192 in 1 : vector<4x240xf32>, vector<4x16xf32> -> vector<4x256xf32>
    %194 = vector.broadcast %8 : vector<1x256xf32> to vector<4x256xf32>
    %195 = arith.mulf %193, %194 : vector<4x256xf32>
    %196 = vector.extract_strided_slice %158 {offsets = [0, 17], sizes = [4, 239], strides = [1, 1]} : vector<4x256xf32> to vector<4x239xf32>
    %cst_66 = arith.constant 0.000000e+00 : f32
    %197 = vector.broadcast %cst_66 : f32 to vector<4x17xf32>
    %198 = tpu.concatenate %196, %197 in 1 : vector<4x239xf32>, vector<4x17xf32> -> vector<4x256xf32>
    %199 = vector.broadcast %9 : vector<1x256xf32> to vector<4x256xf32>
    %200 = arith.mulf %198, %199 : vector<4x256xf32>
    %201 = tpu.concatenate %163, %168, %173, %178, %180, %185, %190, %195, %200 in 0 : vector<4x256xf32>, vector<4x256xf32>, vector<4x256xf32>, vector<4x256xf32>, vector<4x256xf32>, vector<4x256xf32>, vector<4x256xf32>, vector<4x256xf32>, vector<4x256xf32> -> vector<36x256xf32>
    %c0_67 = arith.constant 0 : index
    %c0_68 = arith.constant 0 : index
    %202 = vector.load %arg12[%c0_67, %c0_68] : memref<4x36xf32, #tpu.memory_space<vmem>>, vector<4x36xf32>
    %cst_69 = arith.constant dense<0.000000e+00> : vector<4x256xf32>
    %203 = tpu.matmul %202, %201, %cst_69 {dimension_numbers = #tpu.dot_dimension_numbers<[1], [0], [0], [1], [0, 0, 1, 1], [], []>} : vector<4x36xf32>, vector<36x256xf32>, vector<4x256xf32> -> vector<4x256xf32>
    %c0_70 = arith.constant 0 : index
    %c0_71 = arith.constant 0 : index
    %204 = vector.load %arg13[%c0_70, %c0_71] : memref<4x1xf32, #tpu.memory_space<vmem>>, vector<4x1xf32>
    %205 = vector.broadcast %204 : vector<4x1xf32> to vector<4x256xf32>
    %206 = arith.addf %203, %205 : vector<4x256xf32>
    %207 = arith.subf %206, %13 : vector<4x256xf32>
    %cst_72 = arith.constant 0.000000e+00 : f32
    %208 = vector.broadcast %cst_72 : f32 to vector<4x17xf32>
    %209 = vector.extract_strided_slice %207 {offsets = [0, 0], sizes = [4, 239], strides = [1, 1]} : vector<4x256xf32> to vector<4x239xf32>
    %210 = tpu.concatenate %208, %209 in 1 : vector<4x17xf32>, vector<4x239xf32> -> vector<4x256xf32>
    %211 = vector.broadcast %1 : vector<1x256xf32> to vector<4x256xf32>
    %212 = arith.mulf %210, %211 : vector<4x256xf32>
    %cst_73 = arith.constant 0.000000e+00 : f32
    %213 = vector.broadcast %cst_73 : f32 to vector<4x16xf32>
    %214 = vector.extract_strided_slice %207 {offsets = [0, 0], sizes = [4, 240], strides = [1, 1]} : vector<4x256xf32> to vector<4x240xf32>
    %215 = tpu.concatenate %213, %214 in 1 : vector<4x16xf32>, vector<4x240xf32> -> vector<4x256xf32>
    %216 = vector.broadcast %2 : vector<1x256xf32> to vector<4x256xf32>
    %217 = arith.mulf %215, %216 : vector<4x256xf32>
    %cst_74 = arith.constant 0.000000e+00 : f32
    %218 = vector.broadcast %cst_74 : f32 to vector<4x15xf32>
    %219 = vector.extract_strided_slice %207 {offsets = [0, 0], sizes = [4, 241], strides = [1, 1]} : vector<4x256xf32> to vector<4x241xf32>
    %220 = tpu.concatenate %218, %219 in 1 : vector<4x15xf32>, vector<4x241xf32> -> vector<4x256xf32>
    %221 = vector.broadcast %3 : vector<1x256xf32> to vector<4x256xf32>
    %222 = arith.mulf %220, %221 : vector<4x256xf32>
    %cst_75 = arith.constant 0.000000e+00 : f32
    %223 = vector.broadcast %cst_75 : f32 to vector<4x1xf32>
    %224 = vector.extract_strided_slice %207 {offsets = [0, 0], sizes = [4, 255], strides = [1, 1]} : vector<4x256xf32> to vector<4x255xf32>
    %225 = tpu.concatenate %223, %224 in 1 : vector<4x1xf32>, vector<4x255xf32> -> vector<4x256xf32>
    %226 = vector.broadcast %4 : vector<1x256xf32> to vector<4x256xf32>
    %227 = arith.mulf %225, %226 : vector<4x256xf32>
    %228 = vector.broadcast %5 : vector<1x256xf32> to vector<4x256xf32>
    %229 = arith.mulf %207, %228 : vector<4x256xf32>
    %230 = vector.extract_strided_slice %207 {offsets = [0, 1], sizes = [4, 255], strides = [1, 1]} : vector<4x256xf32> to vector<4x255xf32>
    %cst_76 = arith.constant 0.000000e+00 : f32
    %231 = vector.broadcast %cst_76 : f32 to vector<4x1xf32>
    %232 = tpu.concatenate %230, %231 in 1 : vector<4x255xf32>, vector<4x1xf32> -> vector<4x256xf32>
    %233 = vector.broadcast %6 : vector<1x256xf32> to vector<4x256xf32>
    %234 = arith.mulf %232, %233 : vector<4x256xf32>
    %235 = vector.extract_strided_slice %207 {offsets = [0, 15], sizes = [4, 241], strides = [1, 1]} : vector<4x256xf32> to vector<4x241xf32>
    %cst_77 = arith.constant 0.000000e+00 : f32
    %236 = vector.broadcast %cst_77 : f32 to vector<4x15xf32>
    %237 = tpu.concatenate %235, %236 in 1 : vector<4x241xf32>, vector<4x15xf32> -> vector<4x256xf32>
    %238 = vector.broadcast %7 : vector<1x256xf32> to vector<4x256xf32>
    %239 = arith.mulf %237, %238 : vector<4x256xf32>
    %240 = vector.extract_strided_slice %207 {offsets = [0, 16], sizes = [4, 240], strides = [1, 1]} : vector<4x256xf32> to vector<4x240xf32>
    %cst_78 = arith.constant 0.000000e+00 : f32
    %241 = vector.broadcast %cst_78 : f32 to vector<4x16xf32>
    %242 = tpu.concatenate %240, %241 in 1 : vector<4x240xf32>, vector<4x16xf32> -> vector<4x256xf32>
    %243 = vector.broadcast %8 : vector<1x256xf32> to vector<4x256xf32>
    %244 = arith.mulf %242, %243 : vector<4x256xf32>
    %245 = vector.extract_strided_slice %207 {offsets = [0, 17], sizes = [4, 239], strides = [1, 1]} : vector<4x256xf32> to vector<4x239xf32>
    %cst_79 = arith.constant 0.000000e+00 : f32
    %246 = vector.broadcast %cst_79 : f32 to vector<4x17xf32>
    %247 = tpu.concatenate %245, %246 in 1 : vector<4x239xf32>, vector<4x17xf32> -> vector<4x256xf32>
    %248 = vector.broadcast %9 : vector<1x256xf32> to vector<4x256xf32>
    %249 = arith.mulf %247, %248 : vector<4x256xf32>
    %250 = tpu.concatenate %212, %217, %222, %227, %229, %234, %239, %244, %249 in 0 : vector<4x256xf32>, vector<4x256xf32>, vector<4x256xf32>, vector<4x256xf32>, vector<4x256xf32>, vector<4x256xf32>, vector<4x256xf32>, vector<4x256xf32>, vector<4x256xf32> -> vector<36x256xf32>
    %c0_80 = arith.constant 0 : index
    %c0_81 = arith.constant 0 : index
    %251 = vector.load %arg14[%c0_80, %c0_81] : memref<8x36xf32, #tpu.memory_space<vmem>>, vector<8x36xf32>
    %cst_82 = arith.constant dense<0.000000e+00> : vector<8x256xf32>
    %252 = tpu.matmul %251, %250, %cst_82 {dimension_numbers = #tpu.dot_dimension_numbers<[1], [0], [0], [1], [0, 0, 1, 1], [], []>} : vector<8x36xf32>, vector<36x256xf32>, vector<8x256xf32> -> vector<8x256xf32>
    %c0_83 = arith.constant 0 : index
    %c0_84 = arith.constant 0 : index
    %253 = vector.load %arg15[%c0_83, %c0_84] : memref<8x1xf32, #tpu.memory_space<vmem>>, vector<8x1xf32>
    %254 = vector.broadcast %253 : vector<8x1xf32> to vector<8x256xf32>
    %255 = arith.addf %252, %254 : vector<8x256xf32>
    %cst_85 = arith.constant 0.000000e+00 : f32
    %256 = vector.broadcast %cst_85 : f32 to vector<8x17xf32>
    %257 = vector.extract_strided_slice %255 {offsets = [0, 0], sizes = [8, 239], strides = [1, 1]} : vector<8x256xf32> to vector<8x239xf32>
    %258 = tpu.concatenate %256, %257 in 1 : vector<8x17xf32>, vector<8x239xf32> -> vector<8x256xf32>
    %259 = vector.broadcast %1 : vector<1x256xf32> to vector<8x256xf32>
    %260 = arith.mulf %258, %259 : vector<8x256xf32>
    %cst_86 = arith.constant 0.000000e+00 : f32
    %261 = vector.broadcast %cst_86 : f32 to vector<8x16xf32>
    %262 = vector.extract_strided_slice %255 {offsets = [0, 0], sizes = [8, 240], strides = [1, 1]} : vector<8x256xf32> to vector<8x240xf32>
    %263 = tpu.concatenate %261, %262 in 1 : vector<8x16xf32>, vector<8x240xf32> -> vector<8x256xf32>
    %264 = vector.broadcast %2 : vector<1x256xf32> to vector<8x256xf32>
    %265 = arith.mulf %263, %264 : vector<8x256xf32>
    %cst_87 = arith.constant 0.000000e+00 : f32
    %266 = vector.broadcast %cst_87 : f32 to vector<8x15xf32>
    %267 = vector.extract_strided_slice %255 {offsets = [0, 0], sizes = [8, 241], strides = [1, 1]} : vector<8x256xf32> to vector<8x241xf32>
    %268 = tpu.concatenate %266, %267 in 1 : vector<8x15xf32>, vector<8x241xf32> -> vector<8x256xf32>
    %269 = vector.broadcast %3 : vector<1x256xf32> to vector<8x256xf32>
    %270 = arith.mulf %268, %269 : vector<8x256xf32>
    %cst_88 = arith.constant 0.000000e+00 : f32
    %271 = vector.broadcast %cst_88 : f32 to vector<8x1xf32>
    %272 = vector.extract_strided_slice %255 {offsets = [0, 0], sizes = [8, 255], strides = [1, 1]} : vector<8x256xf32> to vector<8x255xf32>
    %273 = tpu.concatenate %271, %272 in 1 : vector<8x1xf32>, vector<8x255xf32> -> vector<8x256xf32>
    %274 = vector.broadcast %4 : vector<1x256xf32> to vector<8x256xf32>
    %275 = arith.mulf %273, %274 : vector<8x256xf32>
    %276 = vector.broadcast %5 : vector<1x256xf32> to vector<8x256xf32>
    %277 = arith.mulf %255, %276 : vector<8x256xf32>
    %278 = vector.extract_strided_slice %255 {offsets = [0, 1], sizes = [8, 255], strides = [1, 1]} : vector<8x256xf32> to vector<8x255xf32>
    %cst_89 = arith.constant 0.000000e+00 : f32
    %279 = vector.broadcast %cst_89 : f32 to vector<8x1xf32>
    %280 = tpu.concatenate %278, %279 in 1 : vector<8x255xf32>, vector<8x1xf32> -> vector<8x256xf32>
    %281 = vector.broadcast %6 : vector<1x256xf32> to vector<8x256xf32>
    %282 = arith.mulf %280, %281 : vector<8x256xf32>
    %283 = vector.extract_strided_slice %255 {offsets = [0, 15], sizes = [8, 241], strides = [1, 1]} : vector<8x256xf32> to vector<8x241xf32>
    %cst_90 = arith.constant 0.000000e+00 : f32
    %284 = vector.broadcast %cst_90 : f32 to vector<8x15xf32>
    %285 = tpu.concatenate %283, %284 in 1 : vector<8x241xf32>, vector<8x15xf32> -> vector<8x256xf32>
    %286 = vector.broadcast %7 : vector<1x256xf32> to vector<8x256xf32>
    %287 = arith.mulf %285, %286 : vector<8x256xf32>
    %288 = vector.extract_strided_slice %255 {offsets = [0, 16], sizes = [8, 240], strides = [1, 1]} : vector<8x256xf32> to vector<8x240xf32>
    %cst_91 = arith.constant 0.000000e+00 : f32
    %289 = vector.broadcast %cst_91 : f32 to vector<8x16xf32>
    %290 = tpu.concatenate %288, %289 in 1 : vector<8x240xf32>, vector<8x16xf32> -> vector<8x256xf32>
    %291 = vector.broadcast %8 : vector<1x256xf32> to vector<8x256xf32>
    %292 = arith.mulf %290, %291 : vector<8x256xf32>
    %293 = vector.extract_strided_slice %255 {offsets = [0, 17], sizes = [8, 239], strides = [1, 1]} : vector<8x256xf32> to vector<8x239xf32>
    %cst_92 = arith.constant 0.000000e+00 : f32
    %294 = vector.broadcast %cst_92 : f32 to vector<8x17xf32>
    %295 = tpu.concatenate %293, %294 in 1 : vector<8x239xf32>, vector<8x17xf32> -> vector<8x256xf32>
    %296 = vector.broadcast %9 : vector<1x256xf32> to vector<8x256xf32>
    %297 = arith.mulf %295, %296 : vector<8x256xf32>
    %298 = tpu.concatenate %260, %265, %270, %275, %277, %282, %287, %292, %297 in 0 : vector<8x256xf32>, vector<8x256xf32>, vector<8x256xf32>, vector<8x256xf32>, vector<8x256xf32>, vector<8x256xf32>, vector<8x256xf32>, vector<8x256xf32>, vector<8x256xf32> -> vector<72x256xf32>
    %c0_93 = arith.constant 0 : index
    %c0_94 = arith.constant 0 : index
    %299 = vector.load %arg16[%c0_93, %c0_94] : memref<8x72xf32, #tpu.memory_space<vmem>>, vector<8x72xf32>
    %cst_95 = arith.constant dense<0.000000e+00> : vector<8x256xf32>
    %300 = tpu.matmul %299, %298, %cst_95 {dimension_numbers = #tpu.dot_dimension_numbers<[1], [0], [0], [1], [0, 0, 1, 1], [], []>} : vector<8x72xf32>, vector<72x256xf32>, vector<8x256xf32> -> vector<8x256xf32>
    %c0_96 = arith.constant 0 : index
    %c0_97 = arith.constant 0 : index
    %301 = vector.load %arg17[%c0_96, %c0_97] : memref<8x1xf32, #tpu.memory_space<vmem>>, vector<8x1xf32>
    %302 = vector.broadcast %301 : vector<8x1xf32> to vector<8x256xf32>
    %303 = arith.addf %300, %302 : vector<8x256xf32>
    %cst_98 = arith.constant 0.000000e+00 : f32
    %304 = vector.broadcast %cst_98 : f32 to vector<8x256xf32>
    %305 = arith.maximumf %303, %304 : vector<8x256xf32>
    %cst_99 = arith.constant 0.000000e+00 : f32
    %306 = vector.broadcast %cst_99 : f32 to vector<8x17xf32>
    %307 = vector.extract_strided_slice %305 {offsets = [0, 0], sizes = [8, 239], strides = [1, 1]} : vector<8x256xf32> to vector<8x239xf32>
    %308 = tpu.concatenate %306, %307 in 1 : vector<8x17xf32>, vector<8x239xf32> -> vector<8x256xf32>
    %309 = vector.broadcast %1 : vector<1x256xf32> to vector<8x256xf32>
    %310 = arith.mulf %308, %309 : vector<8x256xf32>
    %cst_100 = arith.constant 0.000000e+00 : f32
    %311 = vector.broadcast %cst_100 : f32 to vector<8x16xf32>
    %312 = vector.extract_strided_slice %305 {offsets = [0, 0], sizes = [8, 240], strides = [1, 1]} : vector<8x256xf32> to vector<8x240xf32>
    %313 = tpu.concatenate %311, %312 in 1 : vector<8x16xf32>, vector<8x240xf32> -> vector<8x256xf32>
    %314 = vector.broadcast %2 : vector<1x256xf32> to vector<8x256xf32>
    %315 = arith.mulf %313, %314 : vector<8x256xf32>
    %cst_101 = arith.constant 0.000000e+00 : f32
    %316 = vector.broadcast %cst_101 : f32 to vector<8x15xf32>
    %317 = vector.extract_strided_slice %305 {offsets = [0, 0], sizes = [8, 241], strides = [1, 1]} : vector<8x256xf32> to vector<8x241xf32>
    %318 = tpu.concatenate %316, %317 in 1 : vector<8x15xf32>, vector<8x241xf32> -> vector<8x256xf32>
    %319 = vector.broadcast %3 : vector<1x256xf32> to vector<8x256xf32>
    %320 = arith.mulf %318, %319 : vector<8x256xf32>
    %cst_102 = arith.constant 0.000000e+00 : f32
    %321 = vector.broadcast %cst_102 : f32 to vector<8x1xf32>
    %322 = vector.extract_strided_slice %305 {offsets = [0, 0], sizes = [8, 255], strides = [1, 1]} : vector<8x256xf32> to vector<8x255xf32>
    %323 = tpu.concatenate %321, %322 in 1 : vector<8x1xf32>, vector<8x255xf32> -> vector<8x256xf32>
    %324 = vector.broadcast %4 : vector<1x256xf32> to vector<8x256xf32>
    %325 = arith.mulf %323, %324 : vector<8x256xf32>
    %326 = vector.broadcast %5 : vector<1x256xf32> to vector<8x256xf32>
    %327 = arith.mulf %305, %326 : vector<8x256xf32>
    %328 = vector.extract_strided_slice %305 {offsets = [0, 1], sizes = [8, 255], strides = [1, 1]} : vector<8x256xf32> to vector<8x255xf32>
    %cst_103 = arith.constant 0.000000e+00 : f32
    %329 = vector.broadcast %cst_103 : f32 to vector<8x1xf32>
    %330 = tpu.concatenate %328, %329 in 1 : vector<8x255xf32>, vector<8x1xf32> -> vector<8x256xf32>
    %331 = vector.broadcast %6 : vector<1x256xf32> to vector<8x256xf32>
    %332 = arith.mulf %330, %331 : vector<8x256xf32>
    %333 = vector.extract_strided_slice %305 {offsets = [0, 15], sizes = [8, 241], strides = [1, 1]} : vector<8x256xf32> to vector<8x241xf32>
    %cst_104 = arith.constant 0.000000e+00 : f32
    %334 = vector.broadcast %cst_104 : f32 to vector<8x15xf32>
    %335 = tpu.concatenate %333, %334 in 1 : vector<8x241xf32>, vector<8x15xf32> -> vector<8x256xf32>
    %336 = vector.broadcast %7 : vector<1x256xf32> to vector<8x256xf32>
    %337 = arith.mulf %335, %336 : vector<8x256xf32>
    %338 = vector.extract_strided_slice %305 {offsets = [0, 16], sizes = [8, 240], strides = [1, 1]} : vector<8x256xf32> to vector<8x240xf32>
    %cst_105 = arith.constant 0.000000e+00 : f32
    %339 = vector.broadcast %cst_105 : f32 to vector<8x16xf32>
    %340 = tpu.concatenate %338, %339 in 1 : vector<8x240xf32>, vector<8x16xf32> -> vector<8x256xf32>
    %341 = vector.broadcast %8 : vector<1x256xf32> to vector<8x256xf32>
    %342 = arith.mulf %340, %341 : vector<8x256xf32>
    %343 = vector.extract_strided_slice %305 {offsets = [0, 17], sizes = [8, 239], strides = [1, 1]} : vector<8x256xf32> to vector<8x239xf32>
    %cst_106 = arith.constant 0.000000e+00 : f32
    %344 = vector.broadcast %cst_106 : f32 to vector<8x17xf32>
    %345 = tpu.concatenate %343, %344 in 1 : vector<8x239xf32>, vector<8x17xf32> -> vector<8x256xf32>
    %346 = vector.broadcast %9 : vector<1x256xf32> to vector<8x256xf32>
    %347 = arith.mulf %345, %346 : vector<8x256xf32>
    %348 = tpu.concatenate %310, %315, %320, %325, %327, %332, %337, %342, %347 in 0 : vector<8x256xf32>, vector<8x256xf32>, vector<8x256xf32>, vector<8x256xf32>, vector<8x256xf32>, vector<8x256xf32>, vector<8x256xf32>, vector<8x256xf32>, vector<8x256xf32> -> vector<72x256xf32>
    %c0_107 = arith.constant 0 : index
    %c0_108 = arith.constant 0 : index
    %349 = vector.load %arg18[%c0_107, %c0_108] : memref<8x72xf32, #tpu.memory_space<vmem>>, vector<8x72xf32>
    %cst_109 = arith.constant dense<0.000000e+00> : vector<8x256xf32>
    %350 = tpu.matmul %349, %348, %cst_109 {dimension_numbers = #tpu.dot_dimension_numbers<[1], [0], [0], [1], [0, 0, 1, 1], [], []>} : vector<8x72xf32>, vector<72x256xf32>, vector<8x256xf32> -> vector<8x256xf32>
    %c0_110 = arith.constant 0 : index
    %c0_111 = arith.constant 0 : index
    %351 = vector.load %arg19[%c0_110, %c0_111] : memref<8x1xf32, #tpu.memory_space<vmem>>, vector<8x1xf32>
    %352 = vector.broadcast %351 : vector<8x1xf32> to vector<8x256xf32>
    %353 = arith.addf %350, %352 : vector<8x256xf32>
    %354 = arith.addf %255, %353 : vector<8x256xf32>
    %cst_112 = arith.constant 0.000000e+00 : f32
    %355 = vector.broadcast %cst_112 : f32 to vector<8x17xf32>
    %356 = vector.extract_strided_slice %354 {offsets = [0, 0], sizes = [8, 239], strides = [1, 1]} : vector<8x256xf32> to vector<8x239xf32>
    %357 = tpu.concatenate %355, %356 in 1 : vector<8x17xf32>, vector<8x239xf32> -> vector<8x256xf32>
    %358 = vector.broadcast %1 : vector<1x256xf32> to vector<8x256xf32>
    %359 = arith.mulf %357, %358 : vector<8x256xf32>
    %cst_113 = arith.constant 0.000000e+00 : f32
    %360 = vector.broadcast %cst_113 : f32 to vector<8x16xf32>
    %361 = vector.extract_strided_slice %354 {offsets = [0, 0], sizes = [8, 240], strides = [1, 1]} : vector<8x256xf32> to vector<8x240xf32>
    %362 = tpu.concatenate %360, %361 in 1 : vector<8x16xf32>, vector<8x240xf32> -> vector<8x256xf32>
    %363 = vector.broadcast %2 : vector<1x256xf32> to vector<8x256xf32>
    %364 = arith.mulf %362, %363 : vector<8x256xf32>
    %cst_114 = arith.constant 0.000000e+00 : f32
    %365 = vector.broadcast %cst_114 : f32 to vector<8x15xf32>
    %366 = vector.extract_strided_slice %354 {offsets = [0, 0], sizes = [8, 241], strides = [1, 1]} : vector<8x256xf32> to vector<8x241xf32>
    %367 = tpu.concatenate %365, %366 in 1 : vector<8x15xf32>, vector<8x241xf32> -> vector<8x256xf32>
    %368 = vector.broadcast %3 : vector<1x256xf32> to vector<8x256xf32>
    %369 = arith.mulf %367, %368 : vector<8x256xf32>
    %cst_115 = arith.constant 0.000000e+00 : f32
    %370 = vector.broadcast %cst_115 : f32 to vector<8x1xf32>
    %371 = vector.extract_strided_slice %354 {offsets = [0, 0], sizes = [8, 255], strides = [1, 1]} : vector<8x256xf32> to vector<8x255xf32>
    %372 = tpu.concatenate %370, %371 in 1 : vector<8x1xf32>, vector<8x255xf32> -> vector<8x256xf32>
    %373 = vector.broadcast %4 : vector<1x256xf32> to vector<8x256xf32>
    %374 = arith.mulf %372, %373 : vector<8x256xf32>
    %375 = vector.broadcast %5 : vector<1x256xf32> to vector<8x256xf32>
    %376 = arith.mulf %354, %375 : vector<8x256xf32>
    %377 = vector.extract_strided_slice %354 {offsets = [0, 1], sizes = [8, 255], strides = [1, 1]} : vector<8x256xf32> to vector<8x255xf32>
    %cst_116 = arith.constant 0.000000e+00 : f32
    %378 = vector.broadcast %cst_116 : f32 to vector<8x1xf32>
    %379 = tpu.concatenate %377, %378 in 1 : vector<8x255xf32>, vector<8x1xf32> -> vector<8x256xf32>
    %380 = vector.broadcast %6 : vector<1x256xf32> to vector<8x256xf32>
    %381 = arith.mulf %379, %380 : vector<8x256xf32>
    %382 = vector.extract_strided_slice %354 {offsets = [0, 15], sizes = [8, 241], strides = [1, 1]} : vector<8x256xf32> to vector<8x241xf32>
    %cst_117 = arith.constant 0.000000e+00 : f32
    %383 = vector.broadcast %cst_117 : f32 to vector<8x15xf32>
    %384 = tpu.concatenate %382, %383 in 1 : vector<8x241xf32>, vector<8x15xf32> -> vector<8x256xf32>
    %385 = vector.broadcast %7 : vector<1x256xf32> to vector<8x256xf32>
    %386 = arith.mulf %384, %385 : vector<8x256xf32>
    %387 = vector.extract_strided_slice %354 {offsets = [0, 16], sizes = [8, 240], strides = [1, 1]} : vector<8x256xf32> to vector<8x240xf32>
    %cst_118 = arith.constant 0.000000e+00 : f32
    %388 = vector.broadcast %cst_118 : f32 to vector<8x16xf32>
    %389 = tpu.concatenate %387, %388 in 1 : vector<8x240xf32>, vector<8x16xf32> -> vector<8x256xf32>
    %390 = vector.broadcast %8 : vector<1x256xf32> to vector<8x256xf32>
    %391 = arith.mulf %389, %390 : vector<8x256xf32>
    %392 = vector.extract_strided_slice %354 {offsets = [0, 17], sizes = [8, 239], strides = [1, 1]} : vector<8x256xf32> to vector<8x239xf32>
    %cst_119 = arith.constant 0.000000e+00 : f32
    %393 = vector.broadcast %cst_119 : f32 to vector<8x17xf32>
    %394 = tpu.concatenate %392, %393 in 1 : vector<8x239xf32>, vector<8x17xf32> -> vector<8x256xf32>
    %395 = vector.broadcast %9 : vector<1x256xf32> to vector<8x256xf32>
    %396 = arith.mulf %394, %395 : vector<8x256xf32>
    %397 = tpu.concatenate %359, %364, %369, %374, %376, %381, %386, %391, %396 in 0 : vector<8x256xf32>, vector<8x256xf32>, vector<8x256xf32>, vector<8x256xf32>, vector<8x256xf32>, vector<8x256xf32>, vector<8x256xf32>, vector<8x256xf32>, vector<8x256xf32> -> vector<72x256xf32>
    %c0_120 = arith.constant 0 : index
    %c0_121 = arith.constant 0 : index
    %398 = vector.load %arg20[%c0_120, %c0_121] : memref<8x72xf32, #tpu.memory_space<vmem>>, vector<8x72xf32>
    %cst_122 = arith.constant dense<0.000000e+00> : vector<8x256xf32>
    %399 = tpu.matmul %398, %397, %cst_122 {dimension_numbers = #tpu.dot_dimension_numbers<[1], [0], [0], [1], [0, 0, 1, 1], [], []>} : vector<8x72xf32>, vector<72x256xf32>, vector<8x256xf32> -> vector<8x256xf32>
    %c0_123 = arith.constant 0 : index
    %c0_124 = arith.constant 0 : index
    %400 = vector.load %arg21[%c0_123, %c0_124] : memref<8x1xf32, #tpu.memory_space<vmem>>, vector<8x1xf32>
    %401 = vector.broadcast %400 : vector<8x1xf32> to vector<8x256xf32>
    %402 = arith.addf %399, %401 : vector<8x256xf32>
    %cst_125 = arith.constant 0.000000e+00 : f32
    %403 = vector.broadcast %cst_125 : f32 to vector<8x256xf32>
    %404 = arith.maximumf %402, %403 : vector<8x256xf32>
    %cst_126 = arith.constant 0.000000e+00 : f32
    %405 = vector.broadcast %cst_126 : f32 to vector<8x17xf32>
    %406 = vector.extract_strided_slice %404 {offsets = [0, 0], sizes = [8, 239], strides = [1, 1]} : vector<8x256xf32> to vector<8x239xf32>
    %407 = tpu.concatenate %405, %406 in 1 : vector<8x17xf32>, vector<8x239xf32> -> vector<8x256xf32>
    %408 = vector.broadcast %1 : vector<1x256xf32> to vector<8x256xf32>
    %409 = arith.mulf %407, %408 : vector<8x256xf32>
    %cst_127 = arith.constant 0.000000e+00 : f32
    %410 = vector.broadcast %cst_127 : f32 to vector<8x16xf32>
    %411 = vector.extract_strided_slice %404 {offsets = [0, 0], sizes = [8, 240], strides = [1, 1]} : vector<8x256xf32> to vector<8x240xf32>
    %412 = tpu.concatenate %410, %411 in 1 : vector<8x16xf32>, vector<8x240xf32> -> vector<8x256xf32>
    %413 = vector.broadcast %2 : vector<1x256xf32> to vector<8x256xf32>
    %414 = arith.mulf %412, %413 : vector<8x256xf32>
    %cst_128 = arith.constant 0.000000e+00 : f32
    %415 = vector.broadcast %cst_128 : f32 to vector<8x15xf32>
    %416 = vector.extract_strided_slice %404 {offsets = [0, 0], sizes = [8, 241], strides = [1, 1]} : vector<8x256xf32> to vector<8x241xf32>
    %417 = tpu.concatenate %415, %416 in 1 : vector<8x15xf32>, vector<8x241xf32> -> vector<8x256xf32>
    %418 = vector.broadcast %3 : vector<1x256xf32> to vector<8x256xf32>
    %419 = arith.mulf %417, %418 : vector<8x256xf32>
    %cst_129 = arith.constant 0.000000e+00 : f32
    %420 = vector.broadcast %cst_129 : f32 to vector<8x1xf32>
    %421 = vector.extract_strided_slice %404 {offsets = [0, 0], sizes = [8, 255], strides = [1, 1]} : vector<8x256xf32> to vector<8x255xf32>
    %422 = tpu.concatenate %420, %421 in 1 : vector<8x1xf32>, vector<8x255xf32> -> vector<8x256xf32>
    %423 = vector.broadcast %4 : vector<1x256xf32> to vector<8x256xf32>
    %424 = arith.mulf %422, %423 : vector<8x256xf32>
    %425 = vector.broadcast %5 : vector<1x256xf32> to vector<8x256xf32>
    %426 = arith.mulf %404, %425 : vector<8x256xf32>
    %427 = vector.extract_strided_slice %404 {offsets = [0, 1], sizes = [8, 255], strides = [1, 1]} : vector<8x256xf32> to vector<8x255xf32>
    %cst_130 = arith.constant 0.000000e+00 : f32
    %428 = vector.broadcast %cst_130 : f32 to vector<8x1xf32>
    %429 = tpu.concatenate %427, %428 in 1 : vector<8x255xf32>, vector<8x1xf32> -> vector<8x256xf32>
    %430 = vector.broadcast %6 : vector<1x256xf32> to vector<8x256xf32>
    %431 = arith.mulf %429, %430 : vector<8x256xf32>
    %432 = vector.extract_strided_slice %404 {offsets = [0, 15], sizes = [8, 241], strides = [1, 1]} : vector<8x256xf32> to vector<8x241xf32>
    %cst_131 = arith.constant 0.000000e+00 : f32
    %433 = vector.broadcast %cst_131 : f32 to vector<8x15xf32>
    %434 = tpu.concatenate %432, %433 in 1 : vector<8x241xf32>, vector<8x15xf32> -> vector<8x256xf32>
    %435 = vector.broadcast %7 : vector<1x256xf32> to vector<8x256xf32>
    %436 = arith.mulf %434, %435 : vector<8x256xf32>
    %437 = vector.extract_strided_slice %404 {offsets = [0, 16], sizes = [8, 240], strides = [1, 1]} : vector<8x256xf32> to vector<8x240xf32>
    %cst_132 = arith.constant 0.000000e+00 : f32
    %438 = vector.broadcast %cst_132 : f32 to vector<8x16xf32>
    %439 = tpu.concatenate %437, %438 in 1 : vector<8x240xf32>, vector<8x16xf32> -> vector<8x256xf32>
    %440 = vector.broadcast %8 : vector<1x256xf32> to vector<8x256xf32>
    %441 = arith.mulf %439, %440 : vector<8x256xf32>
    %442 = vector.extract_strided_slice %404 {offsets = [0, 17], sizes = [8, 239], strides = [1, 1]} : vector<8x256xf32> to vector<8x239xf32>
    %cst_133 = arith.constant 0.000000e+00 : f32
    %443 = vector.broadcast %cst_133 : f32 to vector<8x17xf32>
    %444 = tpu.concatenate %442, %443 in 1 : vector<8x239xf32>, vector<8x17xf32> -> vector<8x256xf32>
    %445 = vector.broadcast %9 : vector<1x256xf32> to vector<8x256xf32>
    %446 = arith.mulf %444, %445 : vector<8x256xf32>
    %447 = tpu.concatenate %409, %414, %419, %424, %426, %431, %436, %441, %446 in 0 : vector<8x256xf32>, vector<8x256xf32>, vector<8x256xf32>, vector<8x256xf32>, vector<8x256xf32>, vector<8x256xf32>, vector<8x256xf32>, vector<8x256xf32>, vector<8x256xf32> -> vector<72x256xf32>
    %c0_134 = arith.constant 0 : index
    %c0_135 = arith.constant 0 : index
    %448 = vector.load %arg22[%c0_134, %c0_135] : memref<8x72xf32, #tpu.memory_space<vmem>>, vector<8x72xf32>
    %cst_136 = arith.constant dense<0.000000e+00> : vector<8x256xf32>
    %449 = tpu.matmul %448, %447, %cst_136 {dimension_numbers = #tpu.dot_dimension_numbers<[1], [0], [0], [1], [0, 0, 1, 1], [], []>} : vector<8x72xf32>, vector<72x256xf32>, vector<8x256xf32> -> vector<8x256xf32>
    %c0_137 = arith.constant 0 : index
    %c0_138 = arith.constant 0 : index
    %450 = vector.load %arg23[%c0_137, %c0_138] : memref<8x1xf32, #tpu.memory_space<vmem>>, vector<8x1xf32>
    %451 = vector.broadcast %450 : vector<8x1xf32> to vector<8x256xf32>
    %452 = arith.addf %449, %451 : vector<8x256xf32>
    %453 = arith.addf %354, %452 : vector<8x256xf32>
    %cst_139 = arith.constant 0.000000e+00 : f32
    %454 = vector.broadcast %cst_139 : f32 to vector<8x17xf32>
    %455 = vector.extract_strided_slice %453 {offsets = [0, 0], sizes = [8, 239], strides = [1, 1]} : vector<8x256xf32> to vector<8x239xf32>
    %456 = tpu.concatenate %454, %455 in 1 : vector<8x17xf32>, vector<8x239xf32> -> vector<8x256xf32>
    %457 = vector.broadcast %1 : vector<1x256xf32> to vector<8x256xf32>
    %458 = arith.mulf %456, %457 : vector<8x256xf32>
    %cst_140 = arith.constant 0.000000e+00 : f32
    %459 = vector.broadcast %cst_140 : f32 to vector<8x16xf32>
    %460 = vector.extract_strided_slice %453 {offsets = [0, 0], sizes = [8, 240], strides = [1, 1]} : vector<8x256xf32> to vector<8x240xf32>
    %461 = tpu.concatenate %459, %460 in 1 : vector<8x16xf32>, vector<8x240xf32> -> vector<8x256xf32>
    %462 = vector.broadcast %2 : vector<1x256xf32> to vector<8x256xf32>
    %463 = arith.mulf %461, %462 : vector<8x256xf32>
    %cst_141 = arith.constant 0.000000e+00 : f32
    %464 = vector.broadcast %cst_141 : f32 to vector<8x15xf32>
    %465 = vector.extract_strided_slice %453 {offsets = [0, 0], sizes = [8, 241], strides = [1, 1]} : vector<8x256xf32> to vector<8x241xf32>
    %466 = tpu.concatenate %464, %465 in 1 : vector<8x15xf32>, vector<8x241xf32> -> vector<8x256xf32>
    %467 = vector.broadcast %3 : vector<1x256xf32> to vector<8x256xf32>
    %468 = arith.mulf %466, %467 : vector<8x256xf32>
    %cst_142 = arith.constant 0.000000e+00 : f32
    %469 = vector.broadcast %cst_142 : f32 to vector<8x1xf32>
    %470 = vector.extract_strided_slice %453 {offsets = [0, 0], sizes = [8, 255], strides = [1, 1]} : vector<8x256xf32> to vector<8x255xf32>
    %471 = tpu.concatenate %469, %470 in 1 : vector<8x1xf32>, vector<8x255xf32> -> vector<8x256xf32>
    %472 = vector.broadcast %4 : vector<1x256xf32> to vector<8x256xf32>
    %473 = arith.mulf %471, %472 : vector<8x256xf32>
    %474 = vector.broadcast %5 : vector<1x256xf32> to vector<8x256xf32>
    %475 = arith.mulf %453, %474 : vector<8x256xf32>
    %476 = vector.extract_strided_slice %453 {offsets = [0, 1], sizes = [8, 255], strides = [1, 1]} : vector<8x256xf32> to vector<8x255xf32>
    %cst_143 = arith.constant 0.000000e+00 : f32
    %477 = vector.broadcast %cst_143 : f32 to vector<8x1xf32>
    %478 = tpu.concatenate %476, %477 in 1 : vector<8x255xf32>, vector<8x1xf32> -> vector<8x256xf32>
    %479 = vector.broadcast %6 : vector<1x256xf32> to vector<8x256xf32>
    %480 = arith.mulf %478, %479 : vector<8x256xf32>
    %481 = vector.extract_strided_slice %453 {offsets = [0, 15], sizes = [8, 241], strides = [1, 1]} : vector<8x256xf32> to vector<8x241xf32>
    %cst_144 = arith.constant 0.000000e+00 : f32
    %482 = vector.broadcast %cst_144 : f32 to vector<8x15xf32>
    %483 = tpu.concatenate %481, %482 in 1 : vector<8x241xf32>, vector<8x15xf32> -> vector<8x256xf32>
    %484 = vector.broadcast %7 : vector<1x256xf32> to vector<8x256xf32>
    %485 = arith.mulf %483, %484 : vector<8x256xf32>
    %486 = vector.extract_strided_slice %453 {offsets = [0, 16], sizes = [8, 240], strides = [1, 1]} : vector<8x256xf32> to vector<8x240xf32>
    %cst_145 = arith.constant 0.000000e+00 : f32
    %487 = vector.broadcast %cst_145 : f32 to vector<8x16xf32>
    %488 = tpu.concatenate %486, %487 in 1 : vector<8x240xf32>, vector<8x16xf32> -> vector<8x256xf32>
    %489 = vector.broadcast %8 : vector<1x256xf32> to vector<8x256xf32>
    %490 = arith.mulf %488, %489 : vector<8x256xf32>
    %491 = vector.extract_strided_slice %453 {offsets = [0, 17], sizes = [8, 239], strides = [1, 1]} : vector<8x256xf32> to vector<8x239xf32>
    %cst_146 = arith.constant 0.000000e+00 : f32
    %492 = vector.broadcast %cst_146 : f32 to vector<8x17xf32>
    %493 = tpu.concatenate %491, %492 in 1 : vector<8x239xf32>, vector<8x17xf32> -> vector<8x256xf32>
    %494 = vector.broadcast %9 : vector<1x256xf32> to vector<8x256xf32>
    %495 = arith.mulf %493, %494 : vector<8x256xf32>
    %496 = tpu.concatenate %458, %463, %468, %473, %475, %480, %485, %490, %495 in 0 : vector<8x256xf32>, vector<8x256xf32>, vector<8x256xf32>, vector<8x256xf32>, vector<8x256xf32>, vector<8x256xf32>, vector<8x256xf32>, vector<8x256xf32>, vector<8x256xf32> -> vector<72x256xf32>
    %c0_147 = arith.constant 0 : index
    %c0_148 = arith.constant 0 : index
    %497 = vector.load %arg24[%c0_147, %c0_148] : memref<8x72xf32, #tpu.memory_space<vmem>>, vector<8x72xf32>
    %cst_149 = arith.constant dense<0.000000e+00> : vector<8x256xf32>
    %498 = tpu.matmul %497, %496, %cst_149 {dimension_numbers = #tpu.dot_dimension_numbers<[1], [0], [0], [1], [0, 0, 1, 1], [], []>} : vector<8x72xf32>, vector<72x256xf32>, vector<8x256xf32> -> vector<8x256xf32>
    %c0_150 = arith.constant 0 : index
    %c0_151 = arith.constant 0 : index
    %499 = vector.load %arg25[%c0_150, %c0_151] : memref<8x1xf32, #tpu.memory_space<vmem>>, vector<8x1xf32>
    %500 = vector.broadcast %499 : vector<8x1xf32> to vector<8x256xf32>
    %501 = arith.addf %498, %500 : vector<8x256xf32>
    %502 = arith.addf %501, %255 : vector<8x256xf32>
    %cst_152 = arith.constant 0.000000e+00 : f32
    %503 = vector.broadcast %cst_152 : f32 to vector<8x17xf32>
    %504 = vector.extract_strided_slice %502 {offsets = [0, 0], sizes = [8, 239], strides = [1, 1]} : vector<8x256xf32> to vector<8x239xf32>
    %505 = tpu.concatenate %503, %504 in 1 : vector<8x17xf32>, vector<8x239xf32> -> vector<8x256xf32>
    %506 = vector.broadcast %1 : vector<1x256xf32> to vector<8x256xf32>
    %507 = arith.mulf %505, %506 : vector<8x256xf32>
    %cst_153 = arith.constant 0.000000e+00 : f32
    %508 = vector.broadcast %cst_153 : f32 to vector<8x16xf32>
    %509 = vector.extract_strided_slice %502 {offsets = [0, 0], sizes = [8, 240], strides = [1, 1]} : vector<8x256xf32> to vector<8x240xf32>
    %510 = tpu.concatenate %508, %509 in 1 : vector<8x16xf32>, vector<8x240xf32> -> vector<8x256xf32>
    %511 = vector.broadcast %2 : vector<1x256xf32> to vector<8x256xf32>
    %512 = arith.mulf %510, %511 : vector<8x256xf32>
    %cst_154 = arith.constant 0.000000e+00 : f32
    %513 = vector.broadcast %cst_154 : f32 to vector<8x15xf32>
    %514 = vector.extract_strided_slice %502 {offsets = [0, 0], sizes = [8, 241], strides = [1, 1]} : vector<8x256xf32> to vector<8x241xf32>
    %515 = tpu.concatenate %513, %514 in 1 : vector<8x15xf32>, vector<8x241xf32> -> vector<8x256xf32>
    %516 = vector.broadcast %3 : vector<1x256xf32> to vector<8x256xf32>
    %517 = arith.mulf %515, %516 : vector<8x256xf32>
    %cst_155 = arith.constant 0.000000e+00 : f32
    %518 = vector.broadcast %cst_155 : f32 to vector<8x1xf32>
    %519 = vector.extract_strided_slice %502 {offsets = [0, 0], sizes = [8, 255], strides = [1, 1]} : vector<8x256xf32> to vector<8x255xf32>
    %520 = tpu.concatenate %518, %519 in 1 : vector<8x1xf32>, vector<8x255xf32> -> vector<8x256xf32>
    %521 = vector.broadcast %4 : vector<1x256xf32> to vector<8x256xf32>
    %522 = arith.mulf %520, %521 : vector<8x256xf32>
    %523 = vector.broadcast %5 : vector<1x256xf32> to vector<8x256xf32>
    %524 = arith.mulf %502, %523 : vector<8x256xf32>
    %525 = vector.extract_strided_slice %502 {offsets = [0, 1], sizes = [8, 255], strides = [1, 1]} : vector<8x256xf32> to vector<8x255xf32>
    %cst_156 = arith.constant 0.000000e+00 : f32
    %526 = vector.broadcast %cst_156 : f32 to vector<8x1xf32>
    %527 = tpu.concatenate %525, %526 in 1 : vector<8x255xf32>, vector<8x1xf32> -> vector<8x256xf32>
    %528 = vector.broadcast %6 : vector<1x256xf32> to vector<8x256xf32>
    %529 = arith.mulf %527, %528 : vector<8x256xf32>
    %530 = vector.extract_strided_slice %502 {offsets = [0, 15], sizes = [8, 241], strides = [1, 1]} : vector<8x256xf32> to vector<8x241xf32>
    %cst_157 = arith.constant 0.000000e+00 : f32
    %531 = vector.broadcast %cst_157 : f32 to vector<8x15xf32>
    %532 = tpu.concatenate %530, %531 in 1 : vector<8x241xf32>, vector<8x15xf32> -> vector<8x256xf32>
    %533 = vector.broadcast %7 : vector<1x256xf32> to vector<8x256xf32>
    %534 = arith.mulf %532, %533 : vector<8x256xf32>
    %535 = vector.extract_strided_slice %502 {offsets = [0, 16], sizes = [8, 240], strides = [1, 1]} : vector<8x256xf32> to vector<8x240xf32>
    %cst_158 = arith.constant 0.000000e+00 : f32
    %536 = vector.broadcast %cst_158 : f32 to vector<8x16xf32>
    %537 = tpu.concatenate %535, %536 in 1 : vector<8x240xf32>, vector<8x16xf32> -> vector<8x256xf32>
    %538 = vector.broadcast %8 : vector<1x256xf32> to vector<8x256xf32>
    %539 = arith.mulf %537, %538 : vector<8x256xf32>
    %540 = vector.extract_strided_slice %502 {offsets = [0, 17], sizes = [8, 239], strides = [1, 1]} : vector<8x256xf32> to vector<8x239xf32>
    %cst_159 = arith.constant 0.000000e+00 : f32
    %541 = vector.broadcast %cst_159 : f32 to vector<8x17xf32>
    %542 = tpu.concatenate %540, %541 in 1 : vector<8x239xf32>, vector<8x17xf32> -> vector<8x256xf32>
    %543 = vector.broadcast %9 : vector<1x256xf32> to vector<8x256xf32>
    %544 = arith.mulf %542, %543 : vector<8x256xf32>
    %545 = tpu.concatenate %507, %512, %517, %522, %524, %529, %534, %539, %544 in 0 : vector<8x256xf32>, vector<8x256xf32>, vector<8x256xf32>, vector<8x256xf32>, vector<8x256xf32>, vector<8x256xf32>, vector<8x256xf32>, vector<8x256xf32>, vector<8x256xf32> -> vector<72x256xf32>
    %c0_160 = arith.constant 0 : index
    %c0_161 = arith.constant 0 : index
    %546 = vector.load %arg26[%c0_160, %c0_161] : memref<4x72xf32, #tpu.memory_space<vmem>>, vector<4x72xf32>
    %cst_162 = arith.constant dense<0.000000e+00> : vector<4x256xf32>
    %547 = tpu.matmul %546, %545, %cst_162 {dimension_numbers = #tpu.dot_dimension_numbers<[1], [0], [0], [1], [0, 0, 1, 1], [], []>} : vector<4x72xf32>, vector<72x256xf32>, vector<4x256xf32> -> vector<4x256xf32>
    %c0_163 = arith.constant 0 : index
    %c0_164 = arith.constant 0 : index
    %548 = vector.load %arg27[%c0_163, %c0_164] : memref<4x1xf32, #tpu.memory_space<vmem>>, vector<4x1xf32>
    %549 = vector.broadcast %548 : vector<4x1xf32> to vector<4x256xf32>
    %550 = arith.addf %547, %549 : vector<4x256xf32>
    %551 = arith.subf %13, %206 : vector<4x256xf32>
    %552 = arith.addf %551, %550 : vector<4x256xf32>
    %c0_165 = arith.constant 0 : index
    %c0_166 = arith.constant 0 : index
    %c0_167 = arith.constant 0 : index
    %553 = vector.load %arg28[%c0_165, %c0_166, %c0_167] : memref<1x4x256xf32, #tpu.memory_space<vmem>>, vector<1x4x256xf32>
    %554 = vector.shape_cast %553 : vector<1x4x256xf32> to vector<4x256xf32>
    %555 = vector.shape_cast %550 : vector<4x256xf32> to vector<1x4x256xf32>
    tpu.vector_store %arg28[%c0_165, %c0_166, %c0_167], %555 {strides = array<i32>} : memref<1x4x256xf32, #tpu.memory_space<vmem>>, vector<1x4x256xf32>,
    %c0_168 = arith.constant 0 : index
    %c0_169 = arith.constant 0 : index
    %c0_170 = arith.constant 0 : index
    %556 = vector.load %arg29[%c0_168, %c0_169, %c0_170] : memref<1x4x256xf32, #tpu.memory_space<vmem>>, vector<1x4x256xf32>
    %557 = vector.shape_cast %556 : vector<1x4x256xf32> to vector<4x256xf32>
    %558 = vector.shape_cast %552 : vector<4x256xf32> to vector<1x4x256xf32>
    tpu.vector_store %arg29[%c0_168, %c0_169, %c0_170], %558 {strides = array<i32>} : memref<1x4x256xf32, #tpu.memory_space<vmem>>, vector<1x4x256xf32>,
    return
  }
  func.func @transform_0(%arg0: i32) -> i32 {
    %c0_i32 = arith.constant 0 : i32
    %c0_i32_0 = arith.constant 0 : i32
    return %c0_i32 : i32
  }
  func.func @transform_1(%arg0: i32) -> (i32, i32) {
    %c0_i32 = arith.constant 0 : i32
    %c0_i32_0 = arith.constant 0 : i32
    %c0_i32_1 = arith.constant 0 : i32
    return %c0_i32, %c0_i32_0 : i32, i32
  }
  func.func @transform_2(%arg0: i32) -> (i32, i32, i32) {
    %c0_i32 = arith.constant 0 : i32
    %c0_i32_0 = arith.constant 0 : i32
    %c0_i32_1 = arith.constant 0 : i32
    return %arg0, %c0_i32, %c0_i32_0 : i32, i32, i32
  }
  func.func @transform_3(%arg0: i32) -> (i32, i32, i32) {
    %c0_i32 = arith.constant 0 : i32
    %c0_i32_0 = arith.constant 0 : i32
    %c0_i32_1 = arith.constant 0 : i32
    return %arg0, %c0_i32, %c0_i32_0 : i32, i32, i32
  }
  func.func @transform_4(%arg0: i32) -> (i32, i32, i32) {
    %c0_i32 = arith.constant 0 : i32
    %c0_i32_0 = arith.constant 0 : i32
    %c0_i32_1 = arith.constant 0 : i32
    return %arg0, %c0_i32, %c0_i32_0 : i32, i32, i32
  }
  func.func @transform_5(%arg0: i32) -> (i32, i32) {
    %c0_i32 = arith.constant 0 : i32
    %c0_i32_0 = arith.constant 0 : i32
    %c0_i32_1 = arith.constant 0 : i32
    return %c0_i32, %c0_i32_0 : i32, i32
  }
  func.func @transform_6(%arg0: i32) -> (i32, i32) {
    %c0_i32 = arith.constant 0 : i32
    %c0_i32_0 = arith.constant 0 : i32
    %c0_i32_1 = arith.constant 0 : i32
    return %c0_i32, %c0_i32_0 : i32, i32
  }
  func.func @transform_7(%arg0: i32) -> (i32, i32) {
    %c0_i32 = arith.constant 0 : i32
    %c0_i32_0 = arith.constant 0 : i32
    %c0_i32_1 = arith.constant 0 : i32
    return %c0_i32, %c0_i32_0 : i32, i32
  }
  func.func @transform_8(%arg0: i32) -> (i32, i32) {
    %c0_i32 = arith.constant 0 : i32
    %c0_i32_0 = arith.constant 0 : i32
    %c0_i32_1 = arith.constant 0 : i32
    return %c0_i32, %c0_i32_0 : i32, i32
  }
  func.func @transform_9(%arg0: i32) -> (i32, i32) {
    %c0_i32 = arith.constant 0 : i32
    %c0_i32_0 = arith.constant 0 : i32
    %c0_i32_1 = arith.constant 0 : i32
    return %c0_i32, %c0_i32_0 : i32, i32
  }
  func.func @transform_10(%arg0: i32) -> (i32, i32) {
    %c0_i32 = arith.constant 0 : i32
    %c0_i32_0 = arith.constant 0 : i32
    %c0_i32_1 = arith.constant 0 : i32
    return %c0_i32, %c0_i32_0 : i32, i32
  }
  func.func @transform_11(%arg0: i32) -> (i32, i32) {
    %c0_i32 = arith.constant 0 : i32
    %c0_i32_0 = arith.constant 0 : i32
    %c0_i32_1 = arith.constant 0 : i32
    return %c0_i32, %c0_i32_0 : i32, i32
  }
  func.func @transform_12(%arg0: i32) -> (i32, i32) {
    %c0_i32 = arith.constant 0 : i32
    %c0_i32_0 = arith.constant 0 : i32
    %c0_i32_1 = arith.constant 0 : i32
    return %c0_i32, %c0_i32_0 : i32, i32
  }
  func.func @transform_13(%arg0: i32) -> (i32, i32) {
    %c0_i32 = arith.constant 0 : i32
    %c0_i32_0 = arith.constant 0 : i32
    %c0_i32_1 = arith.constant 0 : i32
    return %c0_i32, %c0_i32_0 : i32, i32
  }
  func.func @transform_14(%arg0: i32) -> (i32, i32) {
    %c0_i32 = arith.constant 0 : i32
    %c0_i32_0 = arith.constant 0 : i32
    %c0_i32_1 = arith.constant 0 : i32
    return %c0_i32, %c0_i32_0 : i32, i32
  }
  func.func @transform_15(%arg0: i32) -> (i32, i32) {
    %c0_i32 = arith.constant 0 : i32
    %c0_i32_0 = arith.constant 0 : i32
    %c0_i32_1 = arith.constant 0 : i32
    return %c0_i32, %c0_i32_0 : i32, i32
  }
  func.func @transform_16(%arg0: i32) -> (i32, i32) {
    %c0_i32 = arith.constant 0 : i32
    %c0_i32_0 = arith.constant 0 : i32
    %c0_i32_1 = arith.constant 0 : i32
    return %c0_i32, %c0_i32_0 : i32, i32
  }
  func.func @transform_17(%arg0: i32) -> (i32, i32) {
    %c0_i32 = arith.constant 0 : i32
    %c0_i32_0 = arith.constant 0 : i32
    %c0_i32_1 = arith.constant 0 : i32
    return %c0_i32, %c0_i32_0 : i32, i32
  }
  func.func @transform_18(%arg0: i32) -> (i32, i32) {
    %c0_i32 = arith.constant 0 : i32
    %c0_i32_0 = arith.constant 0 : i32
    %c0_i32_1 = arith.constant 0 : i32
    return %c0_i32, %c0_i32_0 : i32, i32
  }
  func.func @transform_19(%arg0: i32) -> (i32, i32) {
    %c0_i32 = arith.constant 0 : i32
    %c0_i32_0 = arith.constant 0 : i32
    %c0_i32_1 = arith.constant 0 : i32
    return %c0_i32, %c0_i32_0 : i32, i32
  }
  func.func @transform_20(%arg0: i32) -> (i32, i32) {
    %c0_i32 = arith.constant 0 : i32
    %c0_i32_0 = arith.constant 0 : i32
    %c0_i32_1 = arith.constant 0 : i32
    return %c0_i32, %c0_i32_0 : i32, i32
  }
  func.func @transform_21(%arg0: i32) -> (i32, i32) {
    %c0_i32 = arith.constant 0 : i32
    %c0_i32_0 = arith.constant 0 : i32
    %c0_i32_1 = arith.constant 0 : i32
    return %c0_i32, %c0_i32_0 : i32, i32
  }
  func.func @transform_22(%arg0: i32) -> (i32, i32) {
    %c0_i32 = arith.constant 0 : i32
    %c0_i32_0 = arith.constant 0 : i32
    %c0_i32_1 = arith.constant 0 : i32
    return %c0_i32, %c0_i32_0 : i32, i32
  }
  func.func @transform_23(%arg0: i32) -> (i32, i32) {
    %c0_i32 = arith.constant 0 : i32
    %c0_i32_0 = arith.constant 0 : i32
    %c0_i32_1 = arith.constant 0 : i32
    return %c0_i32, %c0_i32_0 : i32, i32
  }
  func.func @transform_24(%arg0: i32) -> (i32, i32) {
    %c0_i32 = arith.constant 0 : i32
    %c0_i32_0 = arith.constant 0 : i32
    %c0_i32_1 = arith.constant 0 : i32
    return %c0_i32, %c0_i32_0 : i32, i32
  }
  func.func @transform_25(%arg0: i32) -> (i32, i32) {
    %c0_i32 = arith.constant 0 : i32
    %c0_i32_0 = arith.constant 0 : i32
    %c0_i32_1 = arith.constant 0 : i32
    return %c0_i32, %c0_i32_0 : i32, i32
  }
  func.func @transform_26(%arg0: i32) -> (i32, i32) {
    %c0_i32 = arith.constant 0 : i32
    %c0_i32_0 = arith.constant 0 : i32
    %c0_i32_1 = arith.constant 0 : i32
    return %c0_i32, %c0_i32_0 : i32, i32
  }
  func.func @transform_27(%arg0: i32) -> (i32, i32, i32) {
    %c0_i32 = arith.constant 0 : i32
    %c0_i32_0 = arith.constant 0 : i32
    %c0_i32_1 = arith.constant 0 : i32
    return %arg0, %c0_i32, %c0_i32_0 : i32, i32, i32
  }
  func.func @transform_28(%arg0: i32) -> (i32, i32, i32) {
    %c0_i32 = arith.constant 0 : i32
    %c0_i32_0 = arith.constant 0 : i32
    %c0_i32_1 = arith.constant 0 : i32
    return %arg0, %c0_i32, %c0_i32_0 : i32, i32, i32
  }
}

</mosaic_0001>

<bundles_post_ra>
// kernel: admm_block_forward_pallas.1
= control target key start
LH: loop header
LB: loop body
LE: loop exit
PB: predicated region body
PF: predicated region fallthrough
CT: control target
= control target key end

     0   :  { %s3463_s30 = smov 0   ;;  %s4393_s0 = inlined_call_operand.<no memory space> [shape: f32[1], index: 0, kind: input, shape index: {}]   ;;  %s4394_s1 = inlined_call_operand.vmem [shape: f32[9,256], index: 1, kind: input, shape index: {}]   ;;  %s4395_s2 = inlined_call_operand.vmem [shape: f32[2,4,256], index: 2, kind: input, shape index: {}]   ;;  %s4396_s3 = inlined_call_operand.vmem [shape: f32[2,4,256], index: 3, kind: input, shape index: {}]   ;;  %s4397_s4 = inlined_call_operand.vmem [shape: f32[2,1,256], index: 4, kind: input, shape index: {}]   ;;  %s4398_s5 = inlined_call_operand.vmem [shape: f32[4,9], index: 5, kind: input, shape index: {}]   ;;  %s4399_s6 = inlined_call_operand.vmem [shape: f32[4,1], index: 6, kind: input, shape index: {}]   ;;  %s4400_s7 = inlined_call_operand.vmem [shape: f32[4,36], index: 7, kind: input, shape index: {}]   ;;  %s4401_s8 = inlined_call_operand.vmem [shape: f32[4,1], index: 8, kind: input, shape index: {}]   ;;  %s4402_s9 = inlined_call_operand.vmem [shape: f32[4,36], index: 9, kind: input, shape index: {}]   ;;  %s4403_s10 = inlined_call_operand.vmem [shape: f32[4,1], index: 10, kind: input, shape index: {}]   ;;  %s4404_s11 = inlined_call_operand.vmem [shape: f32[4,36], index: 11, kind: input, shape index: {}]   ;;  %s4405_s12 = inlined_call_operand.vmem [shape: f32[4,1], index: 12, kind: input, shape index: {}]   ;;  %s4406_s13 = inlined_call_operand.vmem [shape: f32[8,36], index: 13, kind: input, shape index: {}]   ;;  %s4407_s14 = inlined_call_operand.vmem [shape: f32[8,1], index: 14, kind: input, shape index: {}]   ;;  %s4408_s15 = inlined_call_operand.vmem [shape: f32[8,72], index: 15, kind: input, shape index: {}]   ;;  %s4409_s16 = inlined_call_operand.vmem [shape: f32[8,1], index: 16, kind: input, shape index: {}]   ;;  %s4410_s17 = inlined_call_operand.vmem [shape: f32[8,72], index: 17, kind: input, shape index: {}]   ;;  %s4411_s18 = inlined_call_operand.vmem [shape: f32[8,1], index: 18, kind: input, shape index: {}]   ;;  %s4412_s19 = inlined_call_operand.vmem [shape: f32[8,72], index: 19, kind: input, shape index: {}]   ;;  %s4413_s20 = inlined_call_operand.vmem [shape: f32[8,1], index: 20, kind: input, shape index: {}]   ;;  %s4414_s21 = inlined_call_operand.vmem [shape: f32[8,72], index: 21, kind: input, shape index: {}]   ;;  %s4415_s22 = inlined_call_operand.vmem [shape: f32[8,1], index: 22, kind: input, shape index: {}]   ;;  %s4416_s23 = inlined_call_operand.vmem [shape: f32[8,72], index: 23, kind: input, shape index: {}]   ;;  %s4417_s24 = inlined_call_operand.vmem [shape: f32[8,1], index: 24, kind: input, shape index: {}]   ;;  %s4418_s25 = inlined_call_operand.vmem [shape: f32[4,72], index: 25, kind: input, shape index: {}]   ;;  %s4419_s26 = inlined_call_operand.vmem [shape: f32[4,1], index: 26, kind: input, shape index: {}]   ;;  %s4420_s27 = inlined_call_operand.vmem [shape: f32[2,4,256], index: 27, kind: output, shape index: {0}]   ;;  %s4421_s28 = inlined_call_operand.vmem [shape: f32[2,4,256], index: 28, kind: output, shape index: {1}]  }
   0x1   :  { %4441 = sst [smem:[#allocation4_spill]] %s4393_s0 }
   0x2   :  { %4442 = sst [smem:[#allocation5_spill]] %s4394_s1 }
   0x3   :  { %4443 = sst [smem:[#allocation6_spill]] %s4395_s2 }
   0x4   :  { %4444 = sst [smem:[#allocation7_spill]] %s4396_s3 }
   0x5   :  { %4445 = sst [smem:[#allocation8_spill]] %s4397_s4 }
   0x6   :  { %4446 = sst [smem:[#allocation9_spill]] %s4398_s5 }
   0x7   :  { %4447 = sst [smem:[#allocation10_spill]] %s4399_s6 }
   0x8   :  { %4448 = sst [smem:[#allocation11_spill]] %s4400_s7 }
   0x9   :  { %4449 = sst [smem:[#allocation12_spill]] %s4401_s8 }
   0xa   :  { %4450 = sst [smem:[#allocation13_spill]] %s4402_s9 }
   0xb   :  { %4451 = sst [smem:[#allocation14_spill]] %s4403_s10 }
   0xc   :  { %4452 = sst [smem:[#allocation15_spill]] %s4404_s11 }
   0xd   :  { %4453 = sst [smem:[#allocation16_spill]] %s4405_s12 }
   0xe   :  { %4454 = sst [smem:[#allocation17_spill]] %s4421_s28 }
   0xf   :  { %s4455_s9 = sld [smem:[#allocation4_spill]] }
  0x15   :  { %34 = sst [smem:[#allocation2]] %s4455_s9 }
  0x16 LB: > { %4456 = sst [smem:[#allocation3_spill]] %s3303_s30  ;;  %s3226_s3 = sadd.s32 4294967295, %s3303_s30   ;;  %s3303_s30 = sphi %s3463_s30, %s40_s30  }
  0x17   : > { %p3230_p0 = scmp.ge.s32.totalorder %s3303_s30, 1  ;;  %p785_p1 = scmp.lt.s32.totalorder %s3303_s30, 3 }
  0x19   : > { %p786_p2 = pnand %p3230_p0, %p785_p1 }
  0x1a   : > { %p873_p3 = scmp.lt.s32.totalorder (!%p786_p2), %s3226_s3, 1  ;;  %s4457_s11 = sld [smem:[#allocation8_spill]] (!%p786_p2) }
  0x1b   : > { %789 = sbr.rel (%p786_p2) target bundleno = 3848 (0xf08), region = 128  ;;  %s4425_s2 = smov (!%p786_p2), 15  }
  0x1c   : > { %s4429_s7 = smov (!%p786_p2), 16   ;;  %s4458_s4 = sld [smem:[#allocation5_spill]] (!%p786_p2) }
  0x1d   : > { %s4423_s8 = smov (!%p786_p2), 17   ;;  %s4433_s5 = smov (!%p786_p2), 1  }
  0x1e   : > { %s4437_s9 = smov (!%p786_p2), 127   ;;  %s4435_s10 = smov (!%p786_p2), 112  }
  0x1f   : > { %s4431_s0 = smov (!%p786_p2), 111   ;;  %s4459_s12 = sld [smem:[#allocation10_spill]] (!%p786_p2) }
  0x20   : > { %v919_v0 = vlaneseq  ;;  %s4480_s3 = smov (!%p873_p3, %s3226_s3), 1  ;;  %v3311_v13 = vmov 0.0   ;;  %v3312_v14 = vmov 0   ;;  %vm975_vm0 = vcmask 121856   ;;  %s4465_s1 = smov 17  }
  0x21   : > { %s3235_s6 = sshll.u32 %s4480_s3, 1  ;;  %1253 = vmatprep.mubr.f32.mxu0 %v3311_v13  ;;  %1470 = vmatprep.mubr.f32.mxu1 %v3311_v13  ;;  %vm953_vm1 = vcmask 130048   ;;  %vm931_vm2 = vcmask 138240   ;;  %vm997_vm3 = vcmask 7168   ;;  %vm1151_vm4 = vcmask 1040384  }
  0x22   : > { %v920_v1 = vshrl.u32 %v919_v0, 7  ;;  %s886_s29 = scalar_lea.vmem %s4457_s11, %s3235_s6  ;;  %v3243_v7 = vld [vmem:[%s4458_s4 + $0x4] ss:$8 sm:$0x3]  ;;  %s4427_s6 = smov 113   ;;  %3293 = vset.pattern.permute.xlu0 %v3312_v14  ;;  %3294 = vset.pattern.permute.xlu1 %v3312_v14  ;;  %vm1020_vm5 = vcmask 1039360  }
  0x23   : > { %v917_v4 = vld [vmem:[%s886_s29] sm:$0x3]  ;;  %v3241_v22 = vld [vmem:[%s4458_s4 + $0x2] ss:$8 sm:$0x3]  ;;  %vm1154_vm6 = vcmask 1041408  }
  0x24   : > { %v3474_v2 = vsub.s32 0, %v920_v1  ;;  %v3479_v3 = vsub.s32 1, %v920_v1  ;;  %v3488_v8 = vmul.f32 %v3243_v7, %v917_v4  ;;  %v3240_v23 = vld [vmem:[%s4458_s4 + $0x1] ss:$8 sm:$0x3]  ;;  %vm1042_vm7 = vcmask 924672  }
  0x25   : > { %v1173_v15 = vld [vmem:[%s4459_s12] sm:$0xf]  ;;  %v3244_v31 = vld [vmem:[%s4458_s4 + $0x5] ss:$8 sm:$0x3]  ;;  %vm1157_vm8 = vcmask 1042432  }
  0x26   : > { %v922_v5 = vrot.slane %v917_v4, %v3474_v2  ;;  %v926_v6 = vrot.slane %v917_v4, %v3479_v3  ;;  %v1130_v9 = vrot.slane %v3488_v8, %v3479_v3  ;;  %v1126_v10 = vrot.slane %v3488_v8, %v3474_v2  ;;  %v898_v24 = vld [vmem:[%s4458_s4] ss:$8 sm:$0x3]  ;;  %v3242_v25 = vld [vmem:[%s4458_s4 + $0x3] ss:$8 sm:$0x3] }
  0x27   : > { %v3505_v11 = vrot.slane %v3243_v7, %v3474_v2  ;;  %v3508_v12 = vrot.slane %v3243_v7, %v3479_v3  ;;  %v3532_v26 = vrot.slane %v3241_v22, %v3474_v2  ;;  %v3535_v27 = vrot.slane %v3240_v23, %v3474_v2  ;;  %v3245_v38 = vld [vmem:[%s4458_s4 + $0x6] ss:$8 sm:$0x3]  ;;  %v3246_v47 = vld [vmem:[%s4458_s4 + $0x7] ss:$8 sm:$0x3] }
  0x28   : > { %971 = vrot.lane.b32.xlu1 %v922_v5, %s4425_s2  ;;  %949 = vrot.lane.b32.xlu0 %v922_v5, %s4429_s7  ;;  %v3538_v28 = vrot.slane %v3241_v22, %v3479_v3  ;;  %v3544_v32 = vrot.slane %v3240_v23, %v3479_v3  ;;  %v3547_v33 = vrot.slane %v898_v24, %v3474_v2  ;;  %vm1064_vm9 = vcmask 916480   ;;  %v3247_v59 = vld [vmem:[%s4458_s4 + $0x10] ss:$8 sm:$0x3]  ;;  %s4464_s12 = smov 15   ;;  %s4467_s29 = sld [smem:[#allocation11_spill]] }
  0x29   : > { %v3550_v34 = vrot.slane %v898_v24, %v3479_v3  ;;  %v3554_v36 = vrot.slane %v3242_v25, %v3474_v2  ;;  %v3557_v37 = vrot.slane %v3242_v25, %v3479_v3  ;;  %v3564_v40 = vrot.slane %v3244_v31, %v3474_v2  ;;  %s4468_s4 = sld [smem:[#allocation6_spill]] }
  0x2a   : > { %v3567_v41 = vrot.slane %v3244_v31, %v3479_v3  ;;  %v3579_v51 = vrot.slane %v3245_v38, %v3474_v2  ;;  %v3584_v54 = vrot.slane %v3245_v38, %v3479_v3  ;;  %v3590_v58 = vrot.slane %v3246_v47, %v3474_v2 }
  0x2b   : > { %vm1160_vm10 = vcmask 1043456   ;;  %v3599_v1 = vrot.slane %v3246_v47, %v3479_v3  ;;  %vm1163_vm11 = vcmask 1044480   ;;  %vm1086_vm12 = vcmask 908288  }
  0x2c   : > { %973 = vrot.lane.b32.xlu1 %v926_v6, %s4425_s2  ;;  %951 = vrot.lane.b32.xlu0 %v926_v6, %s4429_s7  ;;  %vm1166_vm13 = vcmask 1045504   ;;  %vm1169_vm14 = vcmask 1046528   ;;  %s4460_s7 = sld [smem:[#allocation9_spill]]  ;;  %vm1179_vm15 = vcmask 72704  }
  0x2d   : > { %s4466_s2 = sld [smem:[#allocation12_spill]] }
  0x30   : > { %929 = vrot.lane.b32.xlu1 %v926_v6, %s4423_s8  ;;  %927 = vrot.lane.b32.xlu0 %v922_v5, %s4423_s8  ;;  %s4461_s8 = smov 111  }
  0x34   : > { %995 = vrot.lane.b32.xlu1 %v926_v6, %s4433_s5  ;;  %993 = vrot.lane.b32.xlu0 %v922_v5, %s4433_s5 }
  0x38   : > { %1016 = vrot.lane.b32.xlu1 %v922_v5, %s4437_s9  ;;  %1018 = vrot.lane.b32.xlu0 %v926_v6, %s4437_s9 }
  0x3c   : > { %1038 = vrot.lane.b32.xlu1 %v922_v5, %s4427_s6  ;;  %1040 = vrot.lane.b32.xlu0 %v926_v6, %s4427_s6  ;;  %s4462_s6 = smov 16  }
  0x40   : > { %1060 = vrot.lane.b32.xlu1 %v922_v5, %s4435_s10  ;;  %1062 = vrot.lane.b32.xlu0 %v926_v6, %s4435_s10 }
  0x44   : > { %1082 = vrot.lane.b32.xlu1 %v922_v5, %s4431_s0  ;;  %1084 = vrot.lane.b32.xlu0 %v926_v6, %s4431_s0  ;;  %s4463_s0 = smov 113  }
  0x48   : > { %1176 = vperm.xlu0 %3293, %v1173_v15  }
  0x9a   : > { %v972_v16 = vpop.permute.xlu1 %971  ;;  %v950_v17 = vpop.permute.xlu0 %949 }
  0x9b   : > { %v957_v39 = vsel %vm953_vm1, 0.0, %v950_v17  ;;  %v979_v52 = vsel %vm975_vm0, 0.0, %v972_v16 }
  0x9c   : > { %v969_v53 = vmul.f32 %v3535_v27, %v957_v39  ;;  %v991_v4 = vmul.f32 %v3532_v26, %v979_v52 }
  0x9e   : > { %v974_v18 = vpop.permute.xlu1 %973  ;;  %v952_v19 = vpop.permute.xlu0 %951  ;;  %v1106_v14 = vrot.slane %v969_v53, 7 }
  0x9f   : > { %v954_v35 = vsel %vm953_vm1, %v950_v17, %v952_v19  ;;  %v976_v42 = vsel %vm975_vm0, %v972_v16, %v974_v18  ;;  %v3606_v16 = vrot.slane %v3247_v59, %v3474_v2 }
  0xa0   : > { %v970_v48 = vmul.f32 %v3544_v32, %v954_v35  ;;  %v992_v55 = vmul.f32 %v3538_v28, %v976_v42 }
  0xa2   : > { %v930_v20 = vpop.permute.xlu1 %929  ;;  %v928_v21 = vpop.permute.xlu0 %927  ;;  %v1107_v5 = vrot.slane %v970_v48, 7  ;;  %v1113_v17 = vrot.slane %v992_v55, 6 }
  0xa3   : > { %v932_v43 = vsel %vm931_vm2, %v928_v21, %v930_v20  ;;  %v935_v49 = vsel %vm931_vm2, 0.0, %v928_v21 }
  0xa4   : > { %v948_v56 = vmul.f32 %v3550_v34, %v932_v43  ;;  %v947_v60 = vmul.f32 %v3547_v33, %v935_v49  ;;  %v3619_v43 = vrot.slane %v3247_v59, %v3479_v3 }
  0xa6   : > { %v996_v29 = vpop.permute.xlu1 %995  ;;  %v994_v30 = vpop.permute.xlu0 %993  ;;  %v1153_v20 = vsel %vm1151_vm4, %v948_v56, %v1107_v5 }
  0xa7   : > { %v998_v44 = vsel %vm997_vm3, %v994_v30, %v996_v29  ;;  %v1001_v50 = vsel %vm997_vm3, 0.0, %v994_v30  ;;  %v1152_v29 = vsel %vm1151_vm4, %v947_v60, %v1106_v14  ;;  %v1112_v30 = vrot.slane %v991_v4, 6 }
  0xa8   : > { %v1014_v57 = vmul.f32 %v3557_v37, %v998_v44  ;;  %v1013_v61 = vmul.f32 %v3554_v36, %v1001_v50  ;;  %v1156_v44 = vsel %vm1154_vm6, %v1153_v20, %v1113_v17  ;;  %v1390_v20 = vld [vmem:[%s4466_s2] sm:$0xf]  ;;  %s3718_s2 = sshll.u32 %s4480_s3, 3  ;;  %s4470_s3 = smov 127  }
  0xa9   : > { %s877_s30 = scalar_lea.vmem %s4468_s4, %s3718_s2  ;;  %s4471_s4 = smov 112  }
  0xaa   : > { %v1017_v45 = vpop.permute.xlu1 %1016  ;;  %v1019_v46 = vpop.permute.xlu0 %1018  ;;  %v1119_v18 = vrot.slane %v1014_v57, 5  ;;  %v1118_v21 = vrot.slane %v1013_v61, 5 }
  0xab   : > { %v1024_v62 = vsel %vm1020_vm5, %v1019_v46, 0.0  ;;  %v1021_v6 = vsel %vm1020_vm5, %v1017_v45, %v1019_v46  ;;  %v1155_v46 = vsel %vm1154_vm6, %v1152_v29, %v1112_v30  ;;  %vm2192_vm6 = vcmask 588800  }
  0xac   : > { %v1037_v19 = vmul.f32 %v3567_v41, %v1024_v62  ;;  %v1036_v22 = vmul.f32 %v3564_v40, %v1021_v6  ;;  %v1159_v47 = vsel %vm1157_vm8, %v1156_v44, %v1119_v18  ;;  %v1158_v53 = vsel %vm1157_vm8, %v1155_v46, %v1118_v21 }
  0xad   : > { %v1161_v4 = vsel %vm1160_vm10, %v1158_v53, %v1126_v10 }
  0xae   : > { %v1039_v63 = vpop.permute.xlu1 %1038  ;;  %v1041_v0 = vpop.permute.xlu0 %1040  ;;  %v1136_v45 = vrot.slane %v1037_v19, 3  ;;  %v1135_v48 = vrot.slane %v1036_v22, 3 }
  0xaf   : > { %v1046_v7 = vsel %vm1042_vm7, %v1041_v0, 0.0  ;;  %v1043_v15 = vsel %vm1042_vm7, %v1039_v63, %v1041_v0  ;;  %v1162_v63 = vsel %vm1160_vm10, %v1159_v47, %v1130_v9  ;;  %v1172_v9 = vld [vmem:[%s4460_s7] sm:$0xf] }
  0xb0   : > { %v1059_v23 = vmul.f32 %v3584_v54, %v1046_v7  ;;  %v1058_v31 = vmul.f32 %v3579_v51, %v1043_v15  ;;  %v1165_v0 = vsel %vm1163_vm11, %v1162_v63, %v1136_v45  ;;  %v1164_v6 = vsel %vm1163_vm11, %v1161_v4, %v1135_v48 }
  0xb2   : > { %v1061_v24 = vpop.permute.xlu1 %1060  ;;  %v1063_v25 = vpop.permute.xlu0 %1062  ;;  %v1142_v49 = vrot.slane %v1059_v23, 2  ;;  %v1141_v55 = vrot.slane %v1058_v31, 2 }
  0xb3   : > { %v1065_v35 = vsel %vm1064_vm9, %v1061_v24, %v1063_v25  ;;  %v1068_v38 = vsel %vm1064_vm9, %v1063_v25, 0.0 }
  0xb4   : > { %v1080_v39 = vmul.f32 %v3590_v58, %v1065_v35  ;;  %v1081_v42 = vmul.f32 %v3599_v1, %v1068_v38  ;;  %v1168_v5 = vsel %vm1166_vm13, %v1165_v0, %v1142_v49  ;;  %v1167_v3 = vsel %vm1166_vm13, %v1164_v6, %v1141_v55 }
  0xb6   : > { %v1083_v50 = vpop.permute.xlu1 %1082  ;;  %v1085_v52 = vpop.permute.xlu0 %1084  ;;  %v1148_v56 = vrot.slane %v1081_v42, 1  ;;  %v1147_v60 = vrot.slane %v1080_v39, 1 }
  0xb7   : > { %v1087_v57 = vsel %vm1086_vm12, %v1083_v50, %v1085_v52  ;;  %v1090_v59 = vsel %vm1086_vm12, %v1085_v52, 0.0 }
  0xb8   : > { %v1103_v61 = vmul.f32 %v3619_v43, %v1090_v59  ;;  %v1102_v62 = vmul.f32 %v3606_v16, %v1087_v57  ;;  %v1171_v7 = vsel %vm1169_vm14, %v1168_v5, %v1148_v56  ;;  %v1170_v2 = vsel %vm1169_vm14, %v1167_v3, %v1147_v60 }
  0xba   : > { %3248 = vmatprep.subr.msk.mxu0 %vm1151_vm4, %v1103_v61 }
  0xbb   : > { %3249 = vmatpush1.msk.msra.mxu0 %vm1151_vm4, %v1102_v62  ;;  %vm1396_vm4 = vcmask 293888  }
  0xbc   : > { %1219 = vmatprep.subr.mxu0 %v1171_v7 }
  0xbd   : > { %1220 = vmatpush1.msra.mxu0 %v1170_v2 }
  0xbe   : > { %3250 = vmatmul.mubr.msk.f32.vlgmr.msra.gmra.mxu0 %vm1179_vm15, %v1172_v9 }
  0xbf   : > { %1681 = vmatprep.mubr.f32.mxu0 %v3311_v13 }
  0xc3   : > { %v1177_v8 = vpop.permute.xlu0 %1176 }
 0x17e   : > { %v1255_v10 = vpop.f32.mrf.mxu0 }
 0x17f   : > { %v1256_v14 = vadd.f32 %v1255_v10, %v1177_v8 }
 0x180   : > { %v1257_v17 = vpop.f32.mrf.mxu0 }
 0x181   : > { %v1260_v15 = vmax.f32 %v1256_v14, 0.0  ;;  %v1258_v18 = vadd.f32 %v1257_v17, %v1177_v8 }
 0x183   : > { %1317 = vrot.lane.b32.xlu0 %v1260_v15, %s4437_s9  ;;  %1337 = vrot.lane.b32.xlu1 %v1260_v15, %s4435_s10  ;;  %v1261_v19 = vmax.f32 %v1258_v18, 0.0  ;;  %v1315_v0 = vmul.f32 %v3505_v11, %v1260_v15 }
 0x185   : > { %v1316_v63 = vmul.f32 %v3508_v12, %v1261_v19 }
 0x187   : > { %1294 = vrot.lane.b32.xlu0 %v1260_v15, %s4433_s5  ;;  %1347 = vrot.lane.b32.xlu1 %v1260_v15, %s4461_s8 }
 0x18b   : > { %1274 = vrot.lane.b32.xlu0 %v1260_v15, %s4462_s6  ;;  %1327 = vrot.lane.b32.xlu1 %v1260_v15, %s4463_s0 }
 0x18f   : > { %1349 = vrot.lane.b32.xlu0 %v1261_v19, %s4461_s8  ;;  %1339 = vrot.lane.b32.xlu1 %v1261_v19, %s4435_s10  ;;  %s4473_s10 = sld [smem:[#allocation14_spill]] }
 0x193   : > { %1329 = vrot.lane.b32.xlu0 %v1261_v19, %s4463_s0  ;;  %1319 = vrot.lane.b32.xlu1 %v1261_v19, %s4437_s9  ;;  %s4472_s9 = smov 1  }
 0x197   : > { %1284 = vrot.lane.b32.xlu0 %v1260_v15, %s4464_s12  ;;  %1296 = vrot.lane.b32.xlu1 %v1261_v19, %s4433_s5  ;;  %s897_s5 = sld [smem:[#allocation2]] }
 0x19b   : > { %1264 = vrot.lane.b32.xlu0 %v1260_v15, %s4465_s1  ;;  %1276 = vrot.lane.b32.xlu1 %v1261_v19, %s4462_s6 }
 0x19f   : > { %1393 = vperm.xlu0 %3293, %v1390_v20   ;;  %1286 = vrot.lane.b32.xlu1 %v1261_v19, %s4464_s12 }
 0x1a3   : > { %1266 = vrot.lane.b32.xlu1 %v1261_v19, %s4465_s1 }
 0x1f5   : > { %v1318_v21 = vpop.permute.xlu0 %1317  ;;  %v1338_v22 = vpop.permute.xlu1 %1337 }
 0x1f9   : > { %v1295_v23 = vpop.permute.xlu0 %1294  ;;  %v1348_v24 = vpop.permute.xlu1 %1347 }
 0x1fa   : > { %v1301_v14 = vsel %vm997_vm3, 0.0, %v1295_v23 }
 0x1fb   : > { %v1302_v19 = vmul.f32 %v1301_v14, %v3554_v36 }
 0x1fd   : > { %v1275_v25 = vpop.permute.xlu0 %1274  ;;  %v1328_v29 = vpop.permute.xlu1 %1327 }
 0x201   : > { %v1350_v30 = vpop.permute.xlu0 %1349  ;;  %v1340_v31 = vpop.permute.xlu1 %1339 }
 0x202   : > { %v1351_v35 = vsel %vm1086_vm12, %v1348_v24, %v1350_v30  ;;  %v1341_v38 = vsel %vm1064_vm9, %v1338_v22, %v1340_v31  ;;  %v1344_v39 = vsel %vm1064_vm9, %v1340_v31, 0.0  ;;  %v1354_v42 = vsel %vm1086_vm12, %v1350_v30, 0.0 }
 0x203   : > { %v1345_v44 = vmul.f32 %v1341_v38, %v3590_v58  ;;  %v1346_v45 = vmul.f32 %v1344_v39, %v3599_v1  ;;  %v1356_v46 = vmul.f32 %v1354_v42, %v3619_v43  ;;  %v1355_v47 = vmul.f32 %v1351_v35, %v3606_v16 }
 0x204   : > { %v1281_v22 = vsel %vm953_vm1, 0.0, %v1275_v25  ;;  %v1365_v39 = vrot.slane %v1302_v19, 4 }
 0x205   : > { %v1377_v48 = vrot.slane %v1345_v44, 4  ;;  %v1378_v49 = vrot.slane %v1346_v45, 4  ;;  %3251 = vmatprep.subr.msk.mxu1 %vm1160_vm10, %v1356_v46  ;;  %v1330_v50 = vpop.permute.xlu0 %1329  ;;  %v1320_v52 = vpop.permute.xlu1 %1319  ;;  %v1282_v42 = vmul.f32 %v1281_v22, %v3535_v27 }
 0x206   : > { %v1331_v53 = vsel %vm1042_vm7, %v1328_v29, %v1330_v50  ;;  %v1334_v55 = vsel %vm1042_vm7, %v1330_v50, 0.0  ;;  %v1321_v56 = vsel %vm1020_vm5, %v1318_v21, %v1320_v52  ;;  %v1324_v57 = vsel %vm1020_vm5, %v1320_v52, 0.0  ;;  %3252 = vmatpush1.msk.msra.mxu1 %vm1160_vm10, %v1355_v47 }
 0x207   : > { %v1335_v59 = vmul.f32 %v1331_v53, %v3579_v51  ;;  %v1336_v60 = vmul.f32 %v1334_v55, %v3584_v54  ;;  %v1325_v61 = vmul.f32 %v1321_v56, %v3564_v40  ;;  %v1326_v62 = vmul.f32 %v1324_v57, %v3567_v41  ;;  %v1389_v53 = vld [vmem:[%s4467_s29] sm:$0xf]  ;;  %s4469_s29 = sld [smem:[#allocation7_spill]] }
 0x208   : > { %v1359_v50 = vrot.slane %v1282_v42, 4  ;;  %v915_v56 = vld [vmem:[%s877_s30] sm:$0xff] }
 0x209   : > { %v1371_v4 = vrot.slane %v1325_v61, 4  ;;  %v1372_v5 = vrot.slane %v1326_v62, 4  ;;  %v1297_v6 = vpop.permute.xlu1 %1296  ;;  %v1388_v7 = vsel %vm1160_vm10, %v1336_v60, %v1378_v49  ;;  %v1387_v3 = vsel %vm1160_vm10, %v1335_v59, %v1377_v48  ;;  %v1285_v9 = vpop.permute.xlu0 %1284 }
 0x20a   : > { %1430 = vmatprep.subr.mxu1 %v1388_v7  ;;  %v1298_v10 = vsel %vm997_vm3, %v1295_v23, %v1297_v6  ;;  %v1291_v17 = vsel %vm975_vm0, 0.0, %v1285_v9  ;;  %v1478_v60 = vstv %s897_s5  ;;  %s4477_s5 = sld [smem:[#allocation17_spill]] }
 0x20b   : > { %1431 = vmatpush1.msra.mxu1 %v1387_v3  ;;  %v1386_v2 = vsel %vm1160_vm10, %v1316_v63, %v1372_v5  ;;  %v1385_v8 = vsel %vm1160_vm10, %v1315_v0, %v1371_v4  ;;  %v1303_v18 = vmul.f32 %v1298_v10, %v3557_v37  ;;  %v1292_v29 = vmul.f32 %v1291_v17, %v3532_v26 }
 0x20c   : > { %1432 = vmatprep.subr.mxu1 %v1386_v2 }
 0x20d   : > { %v1277_v15 = vpop.permute.xlu1 %1276  ;;  %1433 = vmatpush1.msra.mxu1 %v1385_v8  ;;  %v1265_v20 = vpop.permute.xlu0 %1264  ;;  %v1366_v31 = vrot.slane %v1303_v18, 4  ;;  %v1383_v47 = vsel %vm1160_vm10, %v1292_v29, %v1365_v39  ;;  %s3728_s28 = scalar_lea.vmem %s4469_s29, %s3718_s2  ;;  %s4474_s29 = sld [smem:[#allocation13_spill]] }
 0x20e   : > { %v1278_v21 = vsel %vm953_vm1, %v1275_v25, %v1277_v15  ;;  %v1271_v23 = vsel %vm931_vm2, 0.0, %v1265_v20  ;;  %v3731_v57 = vld [vmem:[%s3728_s28] sm:$0xff] }
 0x20f   : > { %v1283_v35 = vmul.f32 %v1278_v21, %v3544_v32  ;;  %v1272_v25 = vmul.f32 %v1271_v23, %v3547_v33  ;;  %v1477_v59 = vadd.f32 %v3731_v57, %v915_v56 }
 0x211   : > { %v1287_v24 = vpop.permute.xlu1 %1286  ;;  %v1360_v48 = vrot.slane %v1283_v35, 4  ;;  %v1381_v55 = vsel %vm1160_vm10, %v1272_v25, %v1359_v50  ;;  %v1479_v61 = vmul.f32 %v1478_v60, %v1477_v59 }
 0x212   : > { %v1288_v30 = vsel %vm975_vm0, %v1285_v9, %v1287_v24  ;;  %v1602_v9 = vld [vmem:[%s4473_s10] sm:$0xf]  ;;  %s4475_s10 = sld [smem:[#allocation16_spill]] }
 0x213   : > { %v1293_v38 = vmul.f32 %v1288_v30, %v3538_v28  ;;  %v1481_v7 = vcombine.high %v1479_v61, %v1479_v61 }
 0x215   : > { %v1267_v44 = vpop.permute.xlu1 %1266  ;;  %v1384_v45 = vsel %vm1160_vm10, %v1293_v38, %v1366_v31 }
 0x216   : > { %v1268_v46 = vsel %vm931_vm2, %v1265_v20, %v1267_v44  ;;  %1434 = vmatprep.subr.mxu1 %v1384_v45 }
 0x217   : > { %v1273_v49 = vmul.f32 %v1268_v46, %v3550_v34  ;;  %1435 = vmatpush1.msra.mxu1 %v1383_v47 }
 0x219   : > { %v1382_v52 = vsel %vm1160_vm10, %v1273_v49, %v1360_v48 }
 0x21a   : > { %1436 = vmatprep.subr.mxu1 %v1382_v52  ;;  %v1394_v62 = vpop.permute.xlu0 %1393 }
 0x21b   : > { %1437 = vmatpush1.msra.mxu1 %v1381_v55 }
 0x21c   : > { %3253 = vmatmul.mubr.msk.f32.vlgmr.msra.gmra.mxu1 %vm1396_vm4, %v1389_v53 }
 0x21d   : > { %1886 = vmatprep.mubr.f32.mxu1 %v3311_v13 }
 0x2dc   : > { %v1472_v63 = vpop.f32.mrf.mxu1 }
 0x2dd   : > { %v1473_v0 = vadd.f32 %v1472_v63, %v1394_v62 }
 0x2de   : > { %v1474_v5 = vpop.f32.mrf.mxu1 }
 0x2df   : > { %v3734_v4 = vadd.f32 %v1479_v61, %v1473_v0  ;;  %v1475_v6 = vadd.f32 %v1474_v5, %v1394_v62 }
 0x2e1   : > { %1529 = vrot.lane.b32.xlu1 %v3734_v4, %s4470_s3  ;;  %1549 = vrot.lane.b32.xlu0 %v3734_v4, %s4471_s4  ;;  %v1484_v3 = vadd.f32 %v1481_v7, %v1475_v6 }
 0x2e3   : > { %v1528_v5 = vmul.f32 %v1484_v3, %v3508_v12 }
 0x2e5   : > { %1517 = vrot.lane.b32.xlu1 %v3734_v4, %s4472_s9  ;;  %1559 = vrot.lane.b32.xlu0 %v3734_v4, %s4461_s8 }
 0x2e9   : > { %1497 = vrot.lane.b32.xlu1 %v3734_v4, %s4462_s6  ;;  %1539 = vrot.lane.b32.xlu0 %v3734_v4, %s4463_s0 }
 0x2ed   : > { %1531 = vrot.lane.b32.xlu0 %v1484_v3, %s4470_s3  ;;  %1551 = vrot.lane.b32.xlu1 %v1484_v3, %s4471_s4 }
 0x2f1   : > { %1519 = vrot.lane.b32.xlu0 %v1484_v3, %s4472_s9  ;;  %1561 = vrot.lane.b32.xlu1 %v1484_v3, %s4461_s8 }
 0x2f5   : > { %1499 = vrot.lane.b32.xlu0 %v1484_v3, %s4462_s6  ;;  %1541 = vrot.lane.b32.xlu1 %v1484_v3, %s4463_s0 }
 0x2f9   : > { %1509 = vrot.lane.b32.xlu0 %v1484_v3, %s4464_s12  ;;  %1507 = vrot.lane.b32.xlu1 %v3734_v4, %s4464_s12 }
 0x2fd   : > { %1489 = vrot.lane.b32.xlu0 %v1484_v3, %s4465_s1  ;;  %1487 = vrot.lane.b32.xlu1 %v3734_v4, %s4465_s1 }
 0x301   : > { %1605 = vperm.xlu1 %3294, %v1602_v9  }
 0x353   : > { %v1530_v2 = vpop.permute.xlu1 %1529  ;;  %v1550_v8 = vpop.permute.xlu0 %1549 }
 0x357   : > { %v1518_v10 = vpop.permute.xlu1 %1517  ;;  %v1560_v14 = vpop.permute.xlu0 %1559 }
 0x358   : > { %v1524_v24 = vsel %vm997_vm3, 0.0, %v1518_v10 }
 0x359   : > { %v1525_v47 = vmul.f32 %v1524_v24, %v3554_v36 }
 0x35b   : > { %v1498_v15 = vpop.permute.xlu1 %1497  ;;  %v1540_v17 = vpop.permute.xlu0 %1539  ;;  %v1577_v6 = vrot.slane %v1525_v47, 4 }
 0x35c   : > { %v1504_v48 = vsel %vm953_vm1, 0.0, %v1498_v15 }
 0x35f   : > { %v1532_v18 = vpop.permute.xlu0 %1531  ;;  %v1552_v19 = vpop.permute.xlu1 %1551 }
 0x360   : > { %v1536_v20 = vsel %vm1020_vm5, %v1532_v18, 0.0  ;;  %v1553_v21 = vsel %vm1064_vm9, %v1550_v8, %v1552_v19  ;;  %v1556_v22 = vsel %vm1064_vm9, %v1552_v19, 0.0  ;;  %v1533_v29 = vsel %vm1020_vm5, %v1530_v2, %v1532_v18 }
 0x361   : > { %v1538_v23 = vmul.f32 %v1536_v20, %v3567_v41  ;;  %v1557_v35 = vmul.f32 %v1553_v21, %v3590_v58  ;;  %v1558_v42 = vmul.f32 %v1556_v22, %v3599_v1  ;;  %v1537_v25 = vmul.f32 %v1533_v29, %v3564_v40 }
 0x363   : > { %v1520_v30 = vpop.permute.xlu0 %1519  ;;  %v1562_v31 = vpop.permute.xlu1 %1561  ;;  %v1584_v52 = vrot.slane %v1538_v23, 4  ;;  %v1589_v53 = vrot.slane %v1557_v35, 4  ;;  %v1590_v59 = vrot.slane %v1558_v42, 4  ;;  %v1583_v63 = vrot.slane %v1537_v25, 4  ;;  %v1601_v25 = vld [vmem:[%s4474_s29] sm:$0xf] }
 0x364   : > { %v1563_v38 = vsel %vm1086_vm12, %v1560_v14, %v1562_v31  ;;  %v1566_v39 = vsel %vm1086_vm12, %v1562_v31, 0.0  ;;  %v1521_v46 = vsel %vm997_vm3, %v1518_v10, %v1520_v30  ;;  %v1527_v10 = vmul.f32 %v3734_v4, %v3505_v11  ;;  %s4476_s29 = sld [smem:[#allocation15_spill]] }
 0x365   : > { %v1567_v44 = vmul.f32 %v1563_v38, %v3606_v16  ;;  %v1568_v45 = vmul.f32 %v1566_v39, %v3619_v43  ;;  %v1526_v60 = vmul.f32 %v1521_v46, %v3557_v37  ;;  %v1505_v14 = vmul.f32 %v1504_v48, %v3535_v27 }
 0x366   : > { %v1597_v4 = vsel %vm1160_vm10, %v1527_v10, %v1583_v63 }
 0x367   : > { %v1500_v49 = vpop.permute.xlu0 %1499  ;;  %3254 = vmatprep.subr.msk.mxu0 %vm1160_vm10, %v1568_v45  ;;  %v1542_v50 = vpop.permute.xlu1 %1541  ;;  %v1578_v3 = vrot.slane %v1526_v60, 4  ;;  %v1571_v35 = vrot.slane %v1505_v14, 4 }
 0x368   : > { %v1543_v55 = vsel %vm1042_vm7, %v1540_v17, %v1542_v50  ;;  %v1546_v56 = vsel %vm1042_vm7, %v1542_v50, 0.0  ;;  %3255 = vmatpush1.msk.msra.mxu0 %vm1160_vm10, %v1567_v44  ;;  %v1501_v0 = vsel %vm953_vm1, %v1498_v15, %v1500_v49  ;;  %v1598_v15 = vsel %vm1160_vm10, %v1528_v5, %v1584_v52 }
 0x369   : > { %v1547_v61 = vmul.f32 %v1543_v55, %v3579_v51  ;;  %v1548_v62 = vmul.f32 %v1546_v56, %v3584_v54  ;;  %v1506_v19 = vmul.f32 %v1501_v0, %v3544_v32  ;;  %v1807_v55 = vld [vmem:[%s4475_s10] sm:$0xf]  ;;  %s896_s10 = scalar_lea.vmem %s4477_s5, %s3718_s2 }
 0x36b   : > { %v1510_v7 = vpop.permute.xlu0 %1509  ;;  %v1508_v9 = vpop.permute.xlu1 %1507  ;;  %v1600_v2 = vsel %vm1160_vm10, %v1548_v62, %v1590_v59  ;;  %v1599_v8 = vsel %vm1160_vm10, %v1547_v61, %v1589_v53  ;;  %v1572_v38 = vrot.slane %v1506_v19, 4 }
 0x36c   : > { %v1511_v17 = vsel %vm975_vm0, %v1508_v9, %v1510_v7  ;;  %v1514_v18 = vsel %vm975_vm0, 0.0, %v1508_v9  ;;  %1641 = vmatprep.subr.mxu0 %v1600_v2 }
 0x36d   : > { %v1515_v20 = vmul.f32 %v1514_v18, %v3532_v26  ;;  %v1516_v21 = vmul.f32 %v1511_v17, %v3538_v28  ;;  %1642 = vmatpush1.msra.mxu0 %v1599_v8 }
 0x36e   : > { %1643 = vmatprep.subr.mxu0 %v1598_v15 }
 0x36f   : > { %v1490_v22 = vpop.permute.xlu0 %1489  ;;  %v1488_v24 = vpop.permute.xlu1 %1487  ;;  %1644 = vmatpush1.msra.mxu0 %v1597_v4  ;;  %v1596_v29 = vsel %vm1160_vm10, %v1516_v21, %v1578_v3  ;;  %v1595_v30 = vsel %vm1160_vm10, %v1515_v20, %v1577_v6 }
 0x370   : > { %v1491_v31 = vsel %vm931_vm2, %v1488_v24, %v1490_v22  ;;  %v1494_v23 = vsel %vm931_vm2, 0.0, %v1488_v24  ;;  %1645 = vmatprep.subr.mxu0 %v1596_v29 }
 0x371   : > { %v1495_v39 = vmul.f32 %v1494_v23, %v3547_v33  ;;  %v1496_v42 = vmul.f32 %v1491_v31, %v3550_v34  ;;  %1646 = vmatpush1.msra.mxu0 %v1595_v30 }
 0x373   : > { %v1594_v44 = vsel %vm1160_vm10, %v1496_v42, %v1572_v38  ;;  %v1593_v45 = vsel %vm1160_vm10, %v1495_v39, %v1571_v35 }
 0x374   : > { %1647 = vmatprep.subr.mxu0 %v1594_v44 }
 0x375   : > { %1648 = vmatpush1.msra.mxu0 %v1593_v45 }
 0x376   : > { %3256 = vmatmul.mubr.msk.f32.vlgmr.msra.gmra.mxu0 %vm1396_vm4, %v1601_v25 }
 0x377   : > { %2094 = vmatprep.mubr.f32.mxu0 %v3311_v13 }
 0x37c   : > { %v1606_v46 = vpop.permute.xlu1 %1605 }
 0x436   : > { %v1683_v47 = vpop.f32.mrf.mxu0 }
 0x437   : > { %v1684_v48 = vadd.f32 %v1683_v47, %v1606_v46 }
 0x438   : > { %v1685_v50 = vpop.f32.mrf.mxu0 }
 0x439   : > { %v3813_v49 = vmax.f32 %v1684_v48, 0.0  ;;  %v1686_v52 = vadd.f32 %v1685_v50, %v1606_v46 }
 0x43b   : > { %1734 = vrot.lane.b32.xlu0 %v3813_v49, %s4470_s3  ;;  %1754 = vrot.lane.b32.xlu1 %v3813_v49, %s4471_s4  ;;  %v1689_v53 = vmax.f32 %v1686_v52, 0.0 }
 0x43d   : > { %v1733_v48 = vmul.f32 %v1689_v53, %v3508_v12 }
 0x43f   : > { %1722 = vrot.lane.b32.xlu0 %v3813_v49, %s4472_s9  ;;  %1764 = vrot.lane.b32.xlu1 %v3813_v49, %s4461_s8 }
 0x443   : > { %1702 = vrot.lane.b32.xlu0 %v3813_v49, %s4462_s6  ;;  %1744 = vrot.lane.b32.xlu1 %v3813_v49, %s4463_s0 }
 0x447   : > { %1756 = vrot.lane.b32.xlu0 %v1689_v53, %s4471_s4  ;;  %1736 = vrot.lane.b32.xlu1 %v1689_v53, %s4470_s3 }
 0x44b   : > { %1766 = vrot.lane.b32.xlu0 %v1689_v53, %s4461_s8  ;;  %1724 = vrot.lane.b32.xlu1 %v1689_v53, %s4472_s9 }
 0x44f   : > { %1746 = vrot.lane.b32.xlu0 %v1689_v53, %s4463_s0  ;;  %1704 = vrot.lane.b32.xlu1 %v1689_v53, %s4462_s6 }
 0x453   : > { %1712 = vrot.lane.b32.xlu0 %v3813_v49, %s4464_s12  ;;  %1714 = vrot.lane.b32.xlu1 %v1689_v53, %s4464_s12 }
 0x457   : > { %1692 = vrot.lane.b32.xlu0 %v3813_v49, %s4465_s1  ;;  %1694 = vrot.lane.b32.xlu1 %v1689_v53, %s4465_s1 }
 0x45b   : > { %1810 = vperm.xlu0 %3293, %v1807_v55  }
 0x4ad   : > { %v1735_v56 = vpop.permute.xlu0 %1734  ;;  %v1755_v59 = vpop.permute.xlu1 %1754 }
 0x4b1   : > { %v1723_v60 = vpop.permute.xlu0 %1722  ;;  %v1765_v61 = vpop.permute.xlu1 %1764 }
 0x4b2   : > { %v1729_v2 = vsel %vm997_vm3, 0.0, %v1723_v60 }
 0x4b3   : > { %v1730_v24 = vmul.f32 %v1729_v2, %v3554_v36 }
 0x4b5   : > { %v1703_v62 = vpop.permute.xlu0 %1702  ;;  %v1745_v63 = vpop.permute.xlu1 %1744  ;;  %v1782_v50 = vrot.slane %v1730_v24, 4 }
 0x4b6   : > { %v1709_v29 = vsel %vm953_vm1, 0.0, %v1703_v62 }
 0x4b9   : > { %v1757_v0 = vpop.permute.xlu0 %1756  ;;  %v1737_v5 = vpop.permute.xlu1 %1736 }
 0x4ba   : > { %v1758_v6 = vsel %vm1064_vm9, %v1755_v59, %v1757_v0  ;;  %v1741_v7 = vsel %vm1020_vm5, %v1737_v5, 0.0  ;;  %v1761_v9 = vsel %vm1064_vm9, %v1757_v0, 0.0  ;;  %v1738_v8 = vsel %vm1020_vm5, %v1735_v56, %v1737_v5 }
 0x4bb   : > { %v1762_v17 = vmul.f32 %v1758_v6, %v3590_v58  ;;  %v1743_v18 = vmul.f32 %v1741_v7, %v3567_v41  ;;  %v1763_v19 = vmul.f32 %v1761_v9, %v3599_v1  ;;  %v1742_v4 = vmul.f32 %v1738_v8, %v3564_v40 }
 0x4bd   : > { %v1767_v10 = vpop.permute.xlu0 %1766  ;;  %v1725_v14 = vpop.permute.xlu1 %1724  ;;  %v1794_v23 = vrot.slane %v1762_v17, 4  ;;  %v1789_v35 = vrot.slane %v1743_v18, 4  ;;  %v1795_v42 = vrot.slane %v1763_v19, 4  ;;  %v1788_v46 = vrot.slane %v1742_v4, 4  ;;  %v1806_v4 = vld [vmem:[%s4476_s29] sm:$0xf] }
 0x4be   : > { %v1768_v15 = vsel %vm1086_vm12, %v1765_v61, %v1767_v10  ;;  %v1771_v3 = vsel %vm1086_vm12, %v1767_v10, 0.0  ;;  %v1726_v22 = vsel %vm997_vm3, %v1723_v60, %v1725_v14  ;;  %v1732_v60 = vmul.f32 %v3813_v49, %v3505_v11 }
 0x4bf   : > { %v1772_v20 = vmul.f32 %v1768_v15, %v3606_v16  ;;  %v1773_v21 = vmul.f32 %v1771_v3, %v3619_v43  ;;  %v1731_v44 = vmul.f32 %v1726_v22, %v3557_v37  ;;  %v1710_v61 = vmul.f32 %v1709_v29, %v3535_v27 }
 0x4c0   : > { %v1802_v49 = vsel %vm1160_vm10, %v1732_v60, %v1788_v46 }
 0x4c1   : > { %3257 = vmatprep.subr.msk.mxu1 %vm1160_vm10, %v1773_v21  ;;  %v1747_v30 = vpop.permute.xlu0 %1746  ;;  %v1705_v31 = vpop.permute.xlu1 %1704  ;;  %v1783_v53 = vrot.slane %v1731_v44, 4  ;;  %v1776_v18 = vrot.slane %v1710_v61, 4 }
 0x4c2   : > { %v1748_v38 = vsel %vm1042_vm7, %v1745_v63, %v1747_v30  ;;  %v1751_v39 = vsel %vm1042_vm7, %v1747_v30, 0.0  ;;  %3258 = vmatpush1.msk.msra.mxu1 %vm1160_vm10, %v1772_v20  ;;  %v1706_v47 = vsel %vm953_vm1, %v1703_v62, %v1705_v31  ;;  %v1803_v62 = vsel %vm1160_vm10, %v1733_v48, %v1789_v35 }
 0x4c3   : > { %v1752_v45 = vmul.f32 %v1748_v38, %v3579_v51  ;;  %v1753_v25 = vmul.f32 %v1751_v39, %v3584_v54  ;;  %v1711_v5 = vmul.f32 %v1706_v47, %v3544_v32  ;;  %v1894_v38 = vcombine.high %v3731_v57, %v3731_v57 }
 0x4c5   : > { %v1713_v52 = vpop.permute.xlu0 %1712  ;;  %v1715_v55 = vpop.permute.xlu1 %1714  ;;  %v1805_v56 = vsel %vm1160_vm10, %v1753_v25, %v1795_v42  ;;  %v1804_v59 = vsel %vm1160_vm10, %v1752_v45, %v1794_v23  ;;  %v1777_v15 = vrot.slane %v1711_v5, 4 }
 0x4c6   : > { %v1719_v63 = vsel %vm975_vm0, 0.0, %v1713_v52  ;;  %v1716_v0 = vsel %vm975_vm0, %v1713_v52, %v1715_v55  ;;  %1846 = vmatprep.subr.mxu1 %v1805_v56 }
 0x4c7   : > { %v1720_v6 = vmul.f32 %v1719_v63, %v3532_v26  ;;  %v1721_v7 = vmul.f32 %v1716_v0, %v3538_v28  ;;  %1847 = vmatpush1.msra.mxu1 %v1804_v59 }
 0x4c8   : > { %1848 = vmatprep.subr.mxu1 %v1803_v62 }
 0x4c9   : > { %v1693_v9 = vpop.permute.xlu0 %1692  ;;  %v1695_v2 = vpop.permute.xlu1 %1694  ;;  %1849 = vmatpush1.msra.mxu1 %v1802_v49  ;;  %v1801_v8 = vsel %vm1160_vm10, %v1721_v7, %v1783_v53  ;;  %v1800_v10 = vsel %vm1160_vm10, %v1720_v6, %v1782_v50 }
 0x4ca   : > { %v1699_v14 = vsel %vm931_vm2, 0.0, %v1693_v9  ;;  %v1696_v17 = vsel %vm931_vm2, %v1693_v9, %v1695_v2  ;;  %1850 = vmatprep.subr.mxu1 %v1801_v8 }
 0x4cb   : > { %v1700_v3 = vmul.f32 %v1699_v14, %v3547_v33  ;;  %v1701_v19 = vmul.f32 %v1696_v17, %v3550_v34  ;;  %1851 = vmatpush1.msra.mxu1 %v1800_v10 }
 0x4cd   : > { %v1799_v20 = vsel %vm1160_vm10, %v1701_v19, %v1777_v15  ;;  %v1798_v21 = vsel %vm1160_vm10, %v1700_v3, %v1776_v18 }
 0x4ce   : > { %1852 = vmatprep.subr.mxu1 %v1799_v20 }
 0x4cf   : > { %1853 = vmatpush1.msra.mxu1 %v1798_v21 }
 0x4d0   : > { %3259 = vmatmul.mubr.msk.f32.vlgmr.msra.gmra.mxu1 %vm1396_vm4, %v1806_v4 }
 0x4d1   : > { %2260 = vmatprep.mubr.f32.mxu1 %v3311_v13 }
 0x4d6   : > { %v1811_v22 = vpop.permute.xlu0 %1810 }
 0x590   : > { %v1888_v24 = vpop.f32.mrf.mxu1 }
 0x591   : > { %v3892_v29 = vadd.f32 %v1888_v24, %v1811_v22 }
 0x592   : > { %v1890_v30 = vpop.f32.mrf.mxu1 }
 0x593   : > { %v3896_v31 = vsub.f32 %v3892_v29, %v3731_v57  ;;  %v3898_v23 = vadd.f32 %v1890_v30, %v1811_v22  ;;  %v2015_v57 = vld [vmem:[%s4407_s14] sm:$0xff] }
 0x595   : > { %v3104_v35 = vcombine.low %v3892_v29, %v3898_v23  ;;  %1942 = vrot.lane.b32.xlu1 %v3896_v31, %s4470_s3  ;;  %1962 = vrot.lane.b32.xlu0 %v3896_v31, %s4471_s4  ;;  %v1897_v39 = vsub.f32 %v3898_v23, %v1894_v38 }
 0x597   : > { %v1941_v38 = vmul.f32 %v1897_v39, %v3508_v12 }
 0x599   : > { %1930 = vrot.lane.b32.xlu1 %v3896_v31, %s4472_s9  ;;  %1972 = vrot.lane.b32.xlu0 %v3896_v31, %s4461_s8 }
 0x59d   : > { %1910 = vrot.lane.b32.xlu1 %v3896_v31, %s4462_s6  ;;  %1952 = vrot.lane.b32.xlu0 %v3896_v31, %s4463_s0 }
 0x5a1   : > { %1964 = vrot.lane.b32.xlu1 %v1897_v39, %s4471_s4  ;;  %1944 = vrot.lane.b32.xlu0 %v1897_v39, %s4470_s3 }
 0x5a5   : > { %1974 = vrot.lane.b32.xlu1 %v1897_v39, %s4461_s8  ;;  %1932 = vrot.lane.b32.xlu0 %v1897_v39, %s4472_s9 }
 0x5a9   : > { %1954 = vrot.lane.b32.xlu1 %v1897_v39, %s4463_s0  ;;  %1912 = vrot.lane.b32.xlu0 %v1897_v39, %s4462_s6 }
 0x5ad   : > { %1920 = vrot.lane.b32.xlu1 %v3896_v31, %s4464_s12  ;;  %1922 = vrot.lane.b32.xlu0 %v1897_v39, %s4464_s12 }
 0x5b1   : > { %1900 = vrot.lane.b32.xlu1 %v3896_v31, %s4465_s1  ;;  %1902 = vrot.lane.b32.xlu0 %v1897_v39, %s4465_s1 }
 0x5b5   : > { %2018 = vperm.xlu1 %3294, %v2015_v57  }
 0x607   : > { %v1943_v42 = vpop.permute.xlu1 %1942  ;;  %v1963_v44 = vpop.permute.xlu0 %1962 }
 0x60b   : > { %v1931_v45 = vpop.permute.xlu1 %1930  ;;  %v1973_v25 = vpop.permute.xlu0 %1972 }
 0x60c   : > { %v1937_v59 = vsel %vm997_vm3, 0.0, %v1931_v45 }
 0x60d   : > { %v1938_v8 = vmul.f32 %v1937_v59, %v3554_v36 }
 0x60f   : > { %v1911_v46 = vpop.permute.xlu1 %1910  ;;  %v1953_v47 = vpop.permute.xlu0 %1952  ;;  %v1990_v57 = vrot.slane %v1938_v8, 4  ;;  %v2014_v8 = vld [vmem:[%s4406_s13] sm:$0xff] }
 0x610   : > { %v1917_v10 = vsel %vm953_vm1, 0.0, %v1911_v46 }
 0x613   : > { %v1965_v48 = vpop.permute.xlu1 %1964  ;;  %v1945_v50 = vpop.permute.xlu0 %1944 }
 0x614   : > { %v1966_v52 = vsel %vm1064_vm9, %v1963_v44, %v1965_v48  ;;  %v1949_v55 = vsel %vm1020_vm5, %v1945_v50, 0.0  ;;  %v1969_v56 = vsel %vm1064_vm9, %v1965_v48, 0.0  ;;  %v1946_v60 = vsel %vm1020_vm5, %v1943_v42, %v1945_v50 }
 0x615   : > { %v1970_v0 = vmul.f32 %v1966_v52, %v3590_v58  ;;  %v1951_v62 = vmul.f32 %v1949_v55, %v3567_v41  ;;  %v1971_v6 = vmul.f32 %v1969_v56, %v3599_v1  ;;  %v1950_v9 = vmul.f32 %v1946_v60, %v3564_v40 }
 0x616   : > { %v1918_v48 = vmul.f32 %v1917_v10, %v3535_v27 }
 0x617   : > { %v1975_v61 = vpop.permute.xlu1 %1974  ;;  %v1933_v63 = vpop.permute.xlu0 %1932  ;;  %v2002_v18 = vrot.slane %v1970_v0, 4  ;;  %v1997_v15 = vrot.slane %v1951_v62, 4  ;;  %v2003_v20 = vrot.slane %v1971_v6, 4  ;;  %v1996_v24 = vrot.slane %v1950_v9, 4 }
 0x618   : > { %v1976_v53 = vsel %vm1086_vm12, %v1973_v25, %v1975_v61  ;;  %v1979_v5 = vsel %vm1086_vm12, %v1975_v61, 0.0  ;;  %v1934_v2 = vsel %vm997_vm3, %v1931_v45, %v1933_v63 }
 0x619   : > { %v1980_v7 = vmul.f32 %v1976_v53, %v3606_v16  ;;  %v1981_v49 = vmul.f32 %v1979_v5, %v3619_v43  ;;  %v1939_v21 = vmul.f32 %v1934_v2, %v3557_v37  ;;  %v1984_v5 = vrot.slane %v1918_v48, 4 }
 0x61b   : > { %3260 = vmatprep.subr.msk.mxu0 %vm1160_vm10, %v1981_v49  ;;  %v1955_v14 = vpop.permute.xlu1 %1954  ;;  %v1913_v17 = vpop.permute.xlu0 %1912  ;;  %v1991_v39 = vrot.slane %v1939_v21, 4 }
 0x61c   : > { %v1956_v3 = vsel %vm1042_vm7, %v1953_v47, %v1955_v14  ;;  %v1959_v19 = vsel %vm1042_vm7, %v1955_v14, 0.0  ;;  %3261 = vmatpush1.msk.msra.mxu0 %vm1160_vm10, %v1980_v7  ;;  %v1914_v30 = vsel %vm953_vm1, %v1911_v46, %v1913_v17  ;;  %v1940_v47 = vmul.f32 %v3896_v31, %v3505_v11 }
 0x61d   : > { %v1960_v4 = vmul.f32 %v1956_v3, %v3579_v51  ;;  %v1961_v22 = vmul.f32 %v1959_v19, %v3584_v54  ;;  %v2011_v46 = vsel %vm1160_vm10, %v1941_v38, %v1997_v15  ;;  %v1919_v55 = vmul.f32 %v1914_v30, %v3544_v32  ;;  %v2186_v3 = vld [vmem:[%s4409_s16] sm:$0xff] }
 0x61e   : > { %v2010_v31 = vsel %vm1160_vm10, %v1940_v47, %v1996_v24 }
 0x61f   : > { %v1921_v42 = vpop.permute.xlu1 %1920  ;;  %v1923_v44 = vpop.permute.xlu0 %1922  ;;  %v2013_v45 = vsel %vm1160_vm10, %v1961_v22, %v2003_v20  ;;  %v2012_v25 = vsel %vm1160_vm10, %v1960_v4, %v2002_v18  ;;  %v1985_v6 = vrot.slane %v1919_v55, 4 }
 0x620   : > { %v1927_v50 = vsel %vm975_vm0, 0.0, %v1921_v42  ;;  %v1924_v52 = vsel %vm975_vm0, %v1921_v42, %v1923_v44  ;;  %2054 = vmatprep.subr.mxu0 %v2013_v45 }
 0x621   : > { %v1928_v56 = vmul.f32 %v1927_v50, %v3532_v26  ;;  %v1929_v59 = vmul.f32 %v1924_v52, %v3538_v28  ;;  %2055 = vmatpush1.msra.mxu0 %v2012_v25 }
 0x622   : > { %2056 = vmatprep.subr.mxu0 %v2011_v46 }
 0x623   : > { %v1901_v60 = vpop.permute.xlu1 %1900  ;;  %v1903_v61 = vpop.permute.xlu0 %1902  ;;  %2057 = vmatpush1.msra.mxu0 %v2010_v31  ;;  %v2009_v63 = vsel %vm1160_vm10, %v1929_v59, %v1991_v39  ;;  %v2008_v0 = vsel %vm1160_vm10, %v1928_v56, %v1990_v57 }
 0x624   : > { %v1907_v62 = vsel %vm931_vm2, 0.0, %v1901_v60  ;;  %v1904_v53 = vsel %vm931_vm2, %v1901_v60, %v1903_v61  ;;  %2058 = vmatprep.subr.mxu0 %v2009_v63 }
 0x625   : > { %v1908_v7 = vmul.f32 %v1907_v62, %v3547_v33  ;;  %v1909_v49 = vmul.f32 %v1904_v53, %v3550_v34  ;;  %2059 = vmatpush1.msra.mxu0 %v2008_v0 }
 0x627   : > { %v2007_v9 = vsel %vm1160_vm10, %v1909_v49, %v1985_v6  ;;  %v2006_v2 = vsel %vm1160_vm10, %v1908_v7, %v1984_v5 }
 0x628   : > { %2060 = vmatprep.subr.mxu0 %v2007_v9 }
 0x629   : > { %2061 = vmatpush1.msra.mxu0 %v2006_v2 }
 0x62a   : > { %3262 = vmatmul.mubr.msk.f32.vlgmr.msra.gmra.mxu0 %vm1396_vm4, %v2014_v8 }
 0x62b   : > { %2427 = vmatprep.mubr.f32.mxu0 %v3311_v13 }
 0x630   : > { %v2019_v10 = vpop.permute.xlu1 %2018 }
 0x6ea   : > { %v2096_v14 = vpop.f32.mrf.mxu0 }
 0x6eb   : > { %v3982_v17 = vadd.f32 %v2096_v14, %v2019_v10 }
 0x6ec   : > { %v2098_v18 = vpop.f32.mrf.mxu0 }
 0x6ed   : > { %2133 = vrot.lane.b32.xlu0 %v3982_v17, %s4472_s9  ;;  %2175 = vrot.lane.b32.xlu1 %v3982_v17, %s4461_s8  ;;  %v3988_v15 = vadd.f32 %v2098_v18, %v2019_v10  ;;  %v2143_v49 = vmul.f32 %v3982_v17, %v3505_v11 }
 0x6ef   : > { %v2144_v6 = vmul.f32 %v3988_v15, %v3508_v12 }
 0x6f1   : > { %2177 = vrot.lane.b32.xlu0 %v3988_v15, %s4461_s8  ;;  %2165 = vrot.lane.b32.xlu1 %v3982_v17, %s4471_s4 }
 0x6f5   : > { %2167 = vrot.lane.b32.xlu0 %v3988_v15, %s4471_s4  ;;  %2155 = vrot.lane.b32.xlu1 %v3982_v17, %s4463_s0 }
 0x6f9   : > { %2157 = vrot.lane.b32.xlu0 %v3988_v15, %s4463_s0  ;;  %2145 = vrot.lane.b32.xlu1 %v3982_v17, %s4470_s3 }
 0x6fd   : > { %2147 = vrot.lane.b32.xlu0 %v3988_v15, %s4470_s3  ;;  %2135 = vrot.lane.b32.xlu1 %v3988_v15, %s4472_s9 }
 0x701   : > { %2123 = vrot.lane.b32.xlu0 %v3982_v17, %s4464_s12  ;;  %2125 = vrot.lane.b32.xlu1 %v3988_v15, %s4464_s12 }
 0x705   : > { %2113 = vrot.lane.b32.xlu0 %v3982_v17, %s4462_s6  ;;  %2115 = vrot.lane.b32.xlu1 %v3988_v15, %s4462_s6 }
 0x709   : > { %2103 = vrot.lane.b32.xlu0 %v3982_v17, %s4465_s1  ;;  %2105 = vrot.lane.b32.xlu1 %v3988_v15, %s4465_s1 }
 0x70d   : > { %2189 = vperm.xlu0 %3293, %v2186_v3  }
 0x75f   : > { %v2134_v19 = vpop.permute.xlu0 %2133  ;;  %v2176_v20 = vpop.permute.xlu1 %2175 }
 0x760   : > { %v2140_v62 = vsel %vm997_vm3, 0.0, %v2134_v19 }
 0x761   : > { %v2141_v8 = vmul.f32 %v2140_v62, %v3554_v36 }
 0x763   : > { %v2178_v21 = vpop.permute.xlu0 %2177  ;;  %v2166_v4 = vpop.permute.xlu1 %2165 }
 0x764   : > { %v2179_v22 = vsel %vm1086_vm12, %v2176_v20, %v2178_v21  ;;  %v2182_v24 = vsel %vm1086_vm12, %v2178_v21, 0.0 }
 0x765   : > { %v2183_v30 = vmul.f32 %v2179_v22, %v3606_v16  ;;  %v2184_v38 = vmul.f32 %v2182_v24, %v3619_v43 }
 0x767   : > { %2210 = vmatprep.subr.mxu1 %v2184_v38  ;;  %v2168_v57 = vpop.permute.xlu0 %2167  ;;  %v2156_v42 = vpop.permute.xlu1 %2155 }
 0x768   : > { %v2169_v44 = vsel %vm1064_vm9, %v2166_v4, %v2168_v57  ;;  %v2172_v45 = vsel %vm1064_vm9, %v2168_v57, 0.0  ;;  %2211 = vmatpush1.msra.mxu1 %v2183_v30 }
 0x769   : > { %v2173_v25 = vmul.f32 %v2169_v44, %v3590_v58  ;;  %v2174_v47 = vmul.f32 %v2172_v45, %v3599_v1  ;;  %v2185_v44 = vld [vmem:[%s4408_s15] sm:$0xff] }
 0x76b   : > { %v2158_v48 = vpop.permute.xlu0 %2157  ;;  %2212 = vmatprep.subr.mxu1 %v2174_v47  ;;  %v2146_v50 = vpop.permute.xlu1 %2145 }
 0x76c   : > { %v2159_v52 = vsel %vm1042_vm7, %v2156_v42, %v2158_v48  ;;  %v2162_v46 = vsel %vm1042_vm7, %v2158_v48, 0.0  ;;  %2213 = vmatpush1.msra.mxu1 %v2173_v25 }
 0x76d   : > { %v2163_v39 = vmul.f32 %v2159_v52, %v3579_v51  ;;  %v2164_v55 = vmul.f32 %v2162_v46, %v3584_v54 }
 0x76f   : > { %v2148_v56 = vpop.permute.xlu0 %2147  ;;  %2214 = vmatprep.subr.mxu1 %v2164_v55  ;;  %v2136_v59 = vpop.permute.xlu1 %2135 }
 0x770   : > { %v2149_v31 = vsel %vm1020_vm5, %v2146_v50, %v2148_v56  ;;  %v2152_v60 = vsel %vm1020_vm5, %v2148_v56, 0.0  ;;  %2215 = vmatpush1.msra.mxu1 %v2163_v39  ;;  %v2137_v0 = vsel %vm997_vm3, %v2134_v19, %v2136_v59  ;;  %v2354_v39 = vld [vmem:[%s4411_s18] sm:$0xff] }
 0x771   : > { %v2153_v61 = vmul.f32 %v2149_v31, %v3564_v40  ;;  %v2154_v63 = vmul.f32 %v2152_v60, %v3567_v41  ;;  %v2142_v9 = vmul.f32 %v2137_v0, %v3557_v37 }
 0x773   : > { %v2124_v53 = vpop.permute.xlu0 %2123  ;;  %2216 = vmatprep.subr.mxu1 %v2154_v63  ;;  %v2126_v5 = vpop.permute.xlu1 %2125 }
 0x774   : > { %v2127_v7 = vsel %vm975_vm0, %v2124_v53, %v2126_v5  ;;  %2217 = vmatpush1.msra.mxu1 %v2153_v61  ;;  %v2130_v2 = vsel %vm975_vm0, 0.0, %v2124_v53 }
 0x775   : > { %2218 = vmatprep.subr.mxu1 %v2144_v6  ;;  %v2132_v10 = vmul.f32 %v2127_v7, %v3538_v28  ;;  %v2131_v3 = vmul.f32 %v2130_v2, %v3532_v26 }
 0x776   : > { %2219 = vmatpush1.msra.mxu1 %v2143_v49 }
 0x777   : > { %v2114_v14 = vpop.permute.xlu0 %2113  ;;  %v2116_v18 = vpop.permute.xlu1 %2115  ;;  %2220 = vmatprep.subr.mxu1 %v2142_v9 }
 0x778   : > { %v2120_v19 = vsel %vm953_vm1, 0.0, %v2114_v14  ;;  %v2117_v20 = vsel %vm953_vm1, %v2114_v14, %v2116_v18  ;;  %2221 = vmatpush1.msra.mxu1 %v2141_v8 }
 0x779   : > { %v2121_v21 = vmul.f32 %v2120_v19, %v3535_v27  ;;  %v2122_v4 = vmul.f32 %v2117_v20, %v3544_v32  ;;  %2222 = vmatprep.subr.mxu1 %v2132_v10 }
 0x77a   : > { %2223 = vmatpush1.msra.mxu1 %v2131_v3 }
 0x77b   : > { %v2104_v22 = vpop.permute.xlu0 %2103  ;;  %v2106_v24 = vpop.permute.xlu1 %2105  ;;  %2224 = vmatprep.subr.mxu1 %v2122_v4 }
 0x77c   : > { %v2110_v30 = vsel %vm931_vm2, 0.0, %v2104_v22  ;;  %v2107_v38 = vsel %vm931_vm2, %v2104_v22, %v2106_v24  ;;  %2225 = vmatpush1.msra.mxu1 %v2121_v21 }
 0x77d   : > { %v2111_v57 = vmul.f32 %v2110_v30, %v3547_v33  ;;  %v2112_v42 = vmul.f32 %v2107_v38, %v3550_v34 }
 0x77f   : > { %2226 = vmatprep.subr.mxu1 %v2112_v42 }
 0x780   : > { %2227 = vmatpush1.msra.mxu1 %v2111_v57 }
 0x781   : > { %3263 = vmatmul.mubr.msk.f32.vlgmr.msra.gmra.mxu1 %vm2192_vm6, %v2185_v44 }
 0x782   : > { %2594 = vmatprep.mubr.f32.mxu1 %v3311_v13 }
 0x788   : > { %v2190_v45 = vpop.permute.xlu0 %2189 }
 0x841   : > { %v2262_v25 = vpop.f32.mrf.mxu1 }
 0x842   : > { %v2263_v47 = vadd.f32 %v2262_v25, %v2190_v45 }
 0x843   : > { %v2264_v48 = vpop.f32.mrf.mxu1 }
 0x844   : > { %v2267_v50 = vmax.f32 %v2263_v47, 0.0  ;;  %v2265_v52 = vadd.f32 %v2264_v48, %v2190_v45 }
 0x846   : > { %2301 = vrot.lane.b32.xlu1 %v2267_v50, %s4472_s9  ;;  %2343 = vrot.lane.b32.xlu0 %v2267_v50, %s4461_s8  ;;  %v2268_v46 = vmax.f32 %v2265_v52, 0.0  ;;  %v2311_v45 = vmul.f32 %v2267_v50, %v3505_v11 }
 0x848   : > { %v2312_v42 = vmul.f32 %v2268_v46, %v3508_v12 }
 0x84a   : > { %2345 = vrot.lane.b32.xlu1 %v2268_v46, %s4461_s8  ;;  %2333 = vrot.lane.b32.xlu0 %v2267_v50, %s4471_s4 }
 0x84e   : > { %2335 = vrot.lane.b32.xlu1 %v2268_v46, %s4471_s4  ;;  %2323 = vrot.lane.b32.xlu0 %v2267_v50, %s4463_s0 }
 0x852   : > { %2325 = vrot.lane.b32.xlu1 %v2268_v46, %s4463_s0  ;;  %2313 = vrot.lane.b32.xlu0 %v2267_v50, %s4470_s3 }
 0x856   : > { %2315 = vrot.lane.b32.xlu1 %v2268_v46, %s4470_s3  ;;  %2303 = vrot.lane.b32.xlu0 %v2268_v46, %s4472_s9 }
 0x85a   : > { %2291 = vrot.lane.b32.xlu1 %v2267_v50, %s4464_s12  ;;  %2293 = vrot.lane.b32.xlu0 %v2268_v46, %s4464_s12 }
 0x85e   : > { %2281 = vrot.lane.b32.xlu1 %v2267_v50, %s4462_s6  ;;  %2283 = vrot.lane.b32.xlu0 %v2268_v46, %s4462_s6 }
 0x862   : > { %2271 = vrot.lane.b32.xlu1 %v2267_v50, %s4465_s1  ;;  %2273 = vrot.lane.b32.xlu0 %v2268_v46, %s4465_s1 }
 0x866   : > { %2357 = vperm.xlu1 %3294, %v2354_v39  }
 0x8b8   : > { %v2302_v55 = vpop.permute.xlu1 %2301  ;;  %v2344_v56 = vpop.permute.xlu0 %2343 }
 0x8b9   : > { %v2308_v30 = vsel %vm997_vm3, 0.0, %v2302_v55 }
 0x8ba   : > { %v2309_v48 = vmul.f32 %v2308_v30, %v3554_v36 }
 0x8bc   : > { %v2346_v59 = vpop.permute.xlu1 %2345  ;;  %v2334_v31 = vpop.permute.xlu0 %2333 }
 0x8bd   : > { %v2347_v60 = vsel %vm1086_vm12, %v2344_v56, %v2346_v59  ;;  %v2350_v61 = vsel %vm1086_vm12, %v2346_v59, 0.0 }
 0x8be   : > { %v2351_v63 = vmul.f32 %v2347_v60, %v3606_v16  ;;  %v2352_v0 = vmul.f32 %v2350_v61, %v3619_v43 }
 0x8c0   : > { %2377 = vmatprep.subr.mxu0 %v2352_v0  ;;  %v2336_v62 = vpop.permute.xlu1 %2335  ;;  %v2324_v53 = vpop.permute.xlu0 %2323 }
 0x8c1   : > { %v2337_v5 = vsel %vm1064_vm9, %v2334_v31, %v2336_v62  ;;  %v2340_v6 = vsel %vm1064_vm9, %v2336_v62, 0.0  ;;  %2378 = vmatpush1.msra.mxu0 %v2351_v63 }
 0x8c2   : > { %v2341_v7 = vmul.f32 %v2337_v5, %v3590_v58  ;;  %v2342_v49 = vmul.f32 %v2340_v6, %v3599_v1  ;;  %v2353_v5 = vld [vmem:[%s4410_s17] sm:$0xff] }
 0x8c4   : > { %v2326_v9 = vpop.permute.xlu1 %2325  ;;  %2379 = vmatprep.subr.mxu0 %v2342_v49  ;;  %v2314_v2 = vpop.permute.xlu0 %2313 }
 0x8c5   : > { %v2327_v8 = vsel %vm1042_vm7, %v2324_v53, %v2326_v9  ;;  %v2330_v10 = vsel %vm1042_vm7, %v2326_v9, 0.0  ;;  %2380 = vmatpush1.msra.mxu0 %v2341_v7 }
 0x8c6   : > { %v2331_v14 = vmul.f32 %v2327_v8, %v3579_v51  ;;  %v2332_v18 = vmul.f32 %v2330_v10, %v3584_v54 }
 0x8c8   : > { %v2316_v3 = vpop.permute.xlu1 %2315  ;;  %2381 = vmatprep.subr.mxu0 %v2332_v18  ;;  %v2304_v19 = vpop.permute.xlu0 %2303 }
 0x8c9   : > { %v2317_v20 = vsel %vm1020_vm5, %v2314_v2, %v2316_v3  ;;  %v2320_v21 = vsel %vm1020_vm5, %v2316_v3, 0.0  ;;  %2382 = vmatpush1.msra.mxu0 %v2331_v14  ;;  %v2305_v24 = vsel %vm997_vm3, %v2302_v55, %v2304_v19  ;;  %v2521_v14 = vld [vmem:[%s4413_s20] sm:$0xff] }
 0x8ca   : > { %v2321_v4 = vmul.f32 %v2317_v20, %v3564_v40  ;;  %v2322_v22 = vmul.f32 %v2320_v21, %v3567_v41  ;;  %v2310_v25 = vmul.f32 %v2305_v24, %v3557_v37 }
 0x8cc   : > { %v2292_v38 = vpop.permute.xlu1 %2291  ;;  %2383 = vmatprep.subr.mxu0 %v2322_v22  ;;  %v2294_v57 = vpop.permute.xlu0 %2293 }
 0x8cd   : > { %v2295_v44 = vsel %vm975_vm0, %v2292_v38, %v2294_v57  ;;  %2384 = vmatpush1.msra.mxu0 %v2321_v4  ;;  %v2298_v47 = vsel %vm975_vm0, 0.0, %v2292_v38 }
 0x8ce   : > { %2385 = vmatprep.subr.mxu0 %v2312_v42  ;;  %v2300_v52 = vmul.f32 %v2295_v44, %v3538_v28  ;;  %v2299_v46 = vmul.f32 %v2298_v47, %v3532_v26 }
 0x8cf   : > { %2386 = vmatpush1.msra.mxu0 %v2311_v45 }
 0x8d0   : > { %v2282_v39 = vpop.permute.xlu1 %2281  ;;  %v2284_v55 = vpop.permute.xlu0 %2283  ;;  %2387 = vmatprep.subr.mxu0 %v2310_v25 }
 0x8d1   : > { %v2288_v56 = vsel %vm953_vm1, 0.0, %v2282_v39  ;;  %v2285_v59 = vsel %vm953_vm1, %v2282_v39, %v2284_v55  ;;  %2388 = vmatpush1.msra.mxu0 %v2309_v48 }
 0x8d2   : > { %v2289_v50 = vmul.f32 %v2288_v56, %v3535_v27  ;;  %v2290_v31 = vmul.f32 %v2285_v59, %v3544_v32  ;;  %2389 = vmatprep.subr.mxu0 %v2300_v52 }
 0x8d3   : > { %2390 = vmatpush1.msra.mxu0 %v2299_v46 }
 0x8d4   : > { %v2272_v60 = vpop.permute.xlu1 %2271  ;;  %v2274_v61 = vpop.permute.xlu0 %2273  ;;  %2391 = vmatprep.subr.mxu0 %v2290_v31 }
 0x8d5   : > { %v2278_v63 = vsel %vm931_vm2, 0.0, %v2272_v60  ;;  %v2275_v0 = vsel %vm931_vm2, %v2272_v60, %v2274_v61  ;;  %2392 = vmatpush1.msra.mxu0 %v2289_v50 }
 0x8d6   : > { %v2279_v62 = vmul.f32 %v2278_v63, %v3547_v33  ;;  %v2280_v53 = vmul.f32 %v2275_v0, %v3550_v34 }
 0x8d8   : > { %2393 = vmatprep.subr.mxu0 %v2280_v53 }
 0x8d9   : > { %2394 = vmatpush1.msra.mxu0 %v2279_v62 }
 0x8da   : > { %3264 = vmatmul.mubr.msk.f32.vlgmr.msra.gmra.mxu0 %vm2192_vm6, %v2353_v5 }
 0x8db   : > { %2761 = vmatprep.mubr.f32.mxu0 %v3311_v13 }
 0x8e1   : > { %v2358_v6 = vpop.permute.xlu1 %2357 }
 0x99a   : > { %v2429_v7 = vpop.f32.mrf.mxu0 }
 0x99b   : > { %v2430_v49 = vadd.f32 %v2429_v7, %v2358_v6 }
 0x99c   : > { %v2431_v9 = vpop.f32.mrf.mxu0 }
 0x99d   : > { %v4121_v2 = vadd.f32 %v2430_v49, %v3982_v17  ;;  %v2432_v8 = vadd.f32 %v2431_v9, %v2358_v6 }
 0x99f   : > { %2468 = vrot.lane.b32.xlu0 %v4121_v2, %s4472_s9  ;;  %2510 = vrot.lane.b32.xlu1 %v4121_v2, %s4461_s8  ;;  %v4128_v10 = vadd.f32 %v2432_v8, %v3988_v15  ;;  %v2478_v6 = vmul.f32 %v4121_v2, %v3505_v11 }
 0x9a1   : > { %v2479_v53 = vmul.f32 %v4128_v10, %v3508_v12 }
 0x9a3   : > { %2512 = vrot.lane.b32.xlu0 %v4128_v10, %s4461_s8  ;;  %2500 = vrot.lane.b32.xlu1 %v4121_v2, %s4471_s4 }
 0x9a7   : > { %2502 = vrot.lane.b32.xlu0 %v4128_v10, %s4471_s4  ;;  %2490 = vrot.lane.b32.xlu1 %v4121_v2, %s4463_s0 }
 0x9ab   : > { %2492 = vrot.lane.b32.xlu0 %v4128_v10, %s4463_s0  ;;  %2480 = vrot.lane.b32.xlu1 %v4121_v2, %s4470_s3 }
 0x9af   : > { %2482 = vrot.lane.b32.xlu0 %v4128_v10, %s4470_s3  ;;  %2470 = vrot.lane.b32.xlu1 %v4128_v10, %s4472_s9 }
 0x9b3   : > { %2458 = vrot.lane.b32.xlu0 %v4121_v2, %s4464_s12  ;;  %2460 = vrot.lane.b32.xlu1 %v4128_v10, %s4464_s12 }
 0x9b7   : > { %2448 = vrot.lane.b32.xlu0 %v4121_v2, %s4462_s6  ;;  %2450 = vrot.lane.b32.xlu1 %v4128_v10, %s4462_s6 }
 0x9bb   : > { %2438 = vrot.lane.b32.xlu0 %v4121_v2, %s4465_s1  ;;  %2440 = vrot.lane.b32.xlu1 %v4128_v10, %s4465_s1 }
 0x9bf   : > { %2524 = vperm.xlu0 %3293, %v2521_v14  }
 0xa11   : > { %v2469_v18 = vpop.permute.xlu0 %2468  ;;  %v2511_v3 = vpop.permute.xlu1 %2510 }
 0xa12   : > { %v2475_v63 = vsel %vm997_vm3, 0.0, %v2469_v18 }
 0xa13   : > { %v2476_v9 = vmul.f32 %v2475_v63, %v3554_v36 }
 0xa15   : > { %v2513_v19 = vpop.permute.xlu0 %2512  ;;  %v2501_v20 = vpop.permute.xlu1 %2500 }
 0xa16   : > { %v2514_v21 = vsel %vm1086_vm12, %v2511_v3, %v2513_v19  ;;  %v2517_v4 = vsel %vm1086_vm12, %v2513_v19, 0.0 }
 0xa17   : > { %v2518_v22 = vmul.f32 %v2514_v21, %v3606_v16  ;;  %v2519_v24 = vmul.f32 %v2517_v4, %v3619_v43 }
 0xa19   : > { %2544 = vmatprep.subr.mxu1 %v2519_v24  ;;  %v2503_v30 = vpop.permute.xlu0 %2502  ;;  %v2491_v38 = vpop.permute.xlu1 %2490 }
 0xa1a   : > { %v2504_v57 = vsel %vm1064_vm9, %v2501_v20, %v2503_v30  ;;  %v2507_v42 = vsel %vm1064_vm9, %v2503_v30, 0.0  ;;  %2545 = vmatpush1.msra.mxu1 %v2518_v22 }
 0xa1b   : > { %v2508_v44 = vmul.f32 %v2504_v57, %v3590_v58  ;;  %v2509_v45 = vmul.f32 %v2507_v42, %v3599_v1 }
 0xa1d   : > { %v2493_v25 = vpop.permute.xlu0 %2492  ;;  %2546 = vmatprep.subr.mxu1 %v2509_v45  ;;  %v2481_v47 = vpop.permute.xlu1 %2480 }
 0xa1e   : > { %v2494_v48 = vsel %vm1042_vm7, %v2491_v38, %v2493_v25  ;;  %v2497_v52 = vsel %vm1042_vm7, %v2493_v25, 0.0  ;;  %2547 = vmatpush1.msra.mxu1 %v2508_v44  ;;  %v2520_v44 = vld [vmem:[%s4412_s19] sm:$0xff] }
 0xa1f   : > { %v2498_v39 = vmul.f32 %v2494_v48, %v3579_v51  ;;  %v2499_v55 = vmul.f32 %v2497_v52, %v3584_v54 }
 0xa21   : > { %v2483_v46 = vpop.permute.xlu0 %2482  ;;  %2548 = vmatprep.subr.mxu1 %v2499_v55  ;;  %v2471_v56 = vpop.permute.xlu1 %2470 }
 0xa22   : > { %v2484_v59 = vsel %vm1020_vm5, %v2481_v47, %v2483_v46  ;;  %v2487_v50 = vsel %vm1020_vm5, %v2483_v46, 0.0  ;;  %2549 = vmatpush1.msra.mxu1 %v2498_v39  ;;  %v2472_v61 = vsel %vm997_vm3, %v2469_v18, %v2471_v56  ;;  %v2688_v46 = vld [vmem:[%s4415_s22] sm:$0xff] }
 0xa23   : > { %v2488_v31 = vmul.f32 %v2484_v59, %v3564_v40  ;;  %v2489_v60 = vmul.f32 %v2487_v50, %v3567_v41  ;;  %v2477_v7 = vmul.f32 %v2472_v61, %v3557_v37 }
 0xa25   : > { %v2459_v0 = vpop.permute.xlu0 %2458  ;;  %2550 = vmatprep.subr.mxu1 %v2489_v60  ;;  %v2461_v62 = vpop.permute.xlu1 %2460 }
 0xa26   : > { %v2462_v5 = vsel %vm975_vm0, %v2459_v0, %v2461_v62  ;;  %2551 = vmatpush1.msra.mxu1 %v2488_v31  ;;  %v2465_v49 = vsel %vm975_vm0, 0.0, %v2459_v0 }
 0xa27   : > { %2552 = vmatprep.subr.mxu1 %v2479_v53  ;;  %v2467_v8 = vmul.f32 %v2462_v5, %v3538_v28  ;;  %v2466_v3 = vmul.f32 %v2465_v49, %v3532_v26 }
 0xa28   : > { %2553 = vmatpush1.msra.mxu1 %v2478_v6 }
 0xa29   : > { %v2449_v14 = vpop.permute.xlu0 %2448  ;;  %v2451_v18 = vpop.permute.xlu1 %2450  ;;  %2554 = vmatprep.subr.mxu1 %v2477_v7 }
 0xa2a   : > { %v2455_v19 = vsel %vm953_vm1, 0.0, %v2449_v14  ;;  %v2452_v20 = vsel %vm953_vm1, %v2449_v14, %v2451_v18  ;;  %2555 = vmatpush1.msra.mxu1 %v2476_v9 }
 0xa2b   : > { %v2456_v21 = vmul.f32 %v2455_v19, %v3535_v27  ;;  %v2457_v4 = vmul.f32 %v2452_v20, %v3544_v32  ;;  %2556 = vmatprep.subr.mxu1 %v2467_v8 }
 0xa2c   : > { %2557 = vmatpush1.msra.mxu1 %v2466_v3 }
 0xa2d   : > { %v2439_v22 = vpop.permute.xlu0 %2438  ;;  %v2441_v24 = vpop.permute.xlu1 %2440  ;;  %2558 = vmatprep.subr.mxu1 %v2457_v4 }
 0xa2e   : > { %v2445_v30 = vsel %vm931_vm2, 0.0, %v2439_v22  ;;  %v2442_v38 = vsel %vm931_vm2, %v2439_v22, %v2441_v24  ;;  %2559 = vmatpush1.msra.mxu1 %v2456_v21 }
 0xa2f   : > { %v2446_v57 = vmul.f32 %v2445_v30, %v3547_v33  ;;  %v2447_v42 = vmul.f32 %v2442_v38, %v3550_v34 }
 0xa31   : > { %2560 = vmatprep.subr.mxu1 %v2447_v42 }
 0xa32   : > { %2561 = vmatpush1.msra.mxu1 %v2446_v57 }
 0xa33   : > { %3265 = vmatmul.mubr.msk.f32.vlgmr.msra.gmra.mxu1 %vm2192_vm6, %v2520_v44 }
 0xa34   : > { %2928 = vmatprep.mubr.f32.mxu1 %v3311_v13 }
 0xa3a   : > { %v2525_v45 = vpop.permute.xlu0 %2524 }
 0xaf3   : > { %v2596_v25 = vpop.f32.mrf.mxu1 }
 0xaf4   : > { %v2597_v47 = vadd.f32 %v2596_v25, %v2525_v45 }
 0xaf5   : > { %v2598_v48 = vpop.f32.mrf.mxu1 }
 0xaf6   : > { %v2601_v52 = vmax.f32 %v2597_v47, 0.0  ;;  %v2599_v39 = vadd.f32 %v2598_v48, %v2525_v45 }
 0xaf8   : > { %2635 = vrot.lane.b32.xlu1 %v2601_v52, %s4472_s9  ;;  %2677 = vrot.lane.b32.xlu0 %v2601_v52, %s4461_s8  ;;  %v2602_v55 = vmax.f32 %v2599_v39, 0.0  ;;  %v2645_v47 = vmul.f32 %v2601_v52, %v3505_v11 }
 0xafa   : > { %v2646_v45 = vmul.f32 %v2602_v55, %v3508_v12 }
 0xafc   : > { %2679 = vrot.lane.b32.xlu1 %v2602_v55, %s4461_s8  ;;  %2667 = vrot.lane.b32.xlu0 %v2601_v52, %s4471_s4 }
 0xb00   : > { %2669 = vrot.lane.b32.xlu1 %v2602_v55, %s4471_s4  ;;  %2657 = vrot.lane.b32.xlu0 %v2601_v52, %s4463_s0 }
 0xb04   : > { %2659 = vrot.lane.b32.xlu1 %v2602_v55, %s4463_s0  ;;  %2647 = vrot.lane.b32.xlu0 %v2601_v52, %s4470_s3 }
 0xb08   : > { %2649 = vrot.lane.b32.xlu1 %v2602_v55, %s4470_s3  ;;  %2637 = vrot.lane.b32.xlu0 %v2602_v55, %s4472_s9 }
 0xb0c   : > { %2625 = vrot.lane.b32.xlu1 %v2601_v52, %s4464_s12  ;;  %2627 = vrot.lane.b32.xlu0 %v2602_v55, %s4464_s12 }
 0xb10   : > { %2615 = vrot.lane.b32.xlu1 %v2601_v52, %s4462_s6  ;;  %2617 = vrot.lane.b32.xlu0 %v2602_v55, %s4462_s6 }
 0xb14   : > { %2605 = vrot.lane.b32.xlu1 %v2601_v52, %s4465_s1  ;;  %2607 = vrot.lane.b32.xlu0 %v2602_v55, %s4465_s1 }
 0xb18   : > { %2691 = vperm.xlu1 %3294, %v2688_v46  }
 0xb6a   : > { %v2636_v56 = vpop.permute.xlu1 %2635  ;;  %v2678_v59 = vpop.permute.xlu0 %2677 }
 0xb6b   : > { %v2642_v57 = vsel %vm997_vm3, 0.0, %v2636_v56 }
 0xb6c   : > { %v2643_v46 = vmul.f32 %v2642_v57, %v3554_v36 }
 0xb6e   : > { %v2680_v50 = vpop.permute.xlu1 %2679  ;;  %v2668_v31 = vpop.permute.xlu0 %2667 }
 0xb6f   : > { %v2681_v60 = vsel %vm1086_vm12, %v2678_v59, %v2680_v50  ;;  %v2684_v61 = vsel %vm1086_vm12, %v2680_v50, 0.0 }
 0xb70   : > { %v2685_v63 = vmul.f32 %v2681_v60, %v3606_v16  ;;  %v2686_v0 = vmul.f32 %v2684_v61, %v3619_v43 }
 0xb72   : > { %2711 = vmatprep.subr.mxu0 %v2686_v0  ;;  %v2670_v62 = vpop.permute.xlu1 %2669  ;;  %v2658_v53 = vpop.permute.xlu0 %2657 }
 0xb73   : > { %v2671_v5 = vsel %vm1064_vm9, %v2668_v31, %v2670_v62  ;;  %v2674_v6 = vsel %vm1064_vm9, %v2670_v62, 0.0  ;;  %2712 = vmatpush1.msra.mxu0 %v2685_v63 }
 0xb74   : > { %v2675_v7 = vmul.f32 %v2671_v5, %v3590_v58  ;;  %v2676_v49 = vmul.f32 %v2674_v6, %v3599_v1 }
 0xb76   : > { %v2660_v9 = vpop.permute.xlu1 %2659  ;;  %2713 = vmatprep.subr.mxu0 %v2676_v49  ;;  %v2648_v8 = vpop.permute.xlu0 %2647 }
 0xb77   : > { %v2661_v14 = vsel %vm1042_vm7, %v2658_v53, %v2660_v9  ;;  %v2664_v18 = vsel %vm1042_vm7, %v2660_v9, 0.0  ;;  %2714 = vmatpush1.msra.mxu0 %v2675_v7  ;;  %v2687_v7 = vld [vmem:[%s4414_s21] sm:$0xff] }
 0xb78   : > { %v2665_v3 = vmul.f32 %v2661_v14, %v3579_v51  ;;  %v2666_v19 = vmul.f32 %v2664_v18, %v3584_v54 }
 0xb7a   : > { %v2650_v20 = vpop.permute.xlu1 %2649  ;;  %2715 = vmatprep.subr.mxu0 %v2666_v19  ;;  %v2638_v21 = vpop.permute.xlu0 %2637 }
 0xb7b   : > { %v2651_v4 = vsel %vm1020_vm5, %v2648_v8, %v2650_v20  ;;  %v2654_v22 = vsel %vm1020_vm5, %v2650_v20, 0.0  ;;  %2716 = vmatpush1.msra.mxu0 %v2665_v3  ;;  %v2639_v38 = vsel %vm997_vm3, %v2636_v56, %v2638_v21 }
 0xb7c   : > { %v2655_v24 = vmul.f32 %v2651_v4, %v3564_v40  ;;  %v2656_v30 = vmul.f32 %v2654_v22, %v3567_v41  ;;  %v2644_v48 = vmul.f32 %v2639_v38, %v3557_v37 }
 0xb7e   : > { %v2626_v42 = vpop.permute.xlu1 %2625  ;;  %2717 = vmatprep.subr.mxu0 %v2656_v30  ;;  %v2628_v44 = vpop.permute.xlu0 %2627 }
 0xb7f   : > { %v2629_v25 = vsel %vm975_vm0, %v2626_v42, %v2628_v44  ;;  %2718 = vmatpush1.msra.mxu0 %v2655_v24  ;;  %v2632_v39 = vsel %vm975_vm0, 0.0, %v2626_v42 }
 0xb80   : > { %2719 = vmatprep.subr.mxu0 %v2646_v45  ;;  %v2634_v56 = vmul.f32 %v2629_v25, %v3538_v28  ;;  %v2633_v55 = vmul.f32 %v2632_v39, %v3532_v26 }
 0xb81   : > { %2720 = vmatpush1.msra.mxu0 %v2645_v47 }
 0xb82   : > { %v2616_v59 = vpop.permute.xlu1 %2615  ;;  %v2618_v50 = vpop.permute.xlu0 %2617  ;;  %2721 = vmatprep.subr.mxu0 %v2644_v48 }
 0xb83   : > { %v2622_v31 = vsel %vm953_vm1, 0.0, %v2616_v59  ;;  %v2619_v60 = vsel %vm953_vm1, %v2616_v59, %v2618_v50  ;;  %2722 = vmatpush1.msra.mxu0 %v2643_v46 }
 0xb84   : > { %v2623_v52 = vmul.f32 %v2622_v31, %v3535_v27  ;;  %v2624_v61 = vmul.f32 %v2619_v60, %v3544_v32  ;;  %2723 = vmatprep.subr.mxu0 %v2634_v56 }
 0xb85   : > { %2724 = vmatpush1.msra.mxu0 %v2633_v55 }
 0xb86   : > { %v2606_v63 = vpop.permute.xlu1 %2605  ;;  %v2608_v0 = vpop.permute.xlu0 %2607  ;;  %2725 = vmatprep.subr.mxu0 %v2624_v61 }
 0xb87   : > { %v2612_v62 = vsel %vm931_vm2, 0.0, %v2606_v63  ;;  %v2609_v53 = vsel %vm931_vm2, %v2606_v63, %v2608_v0  ;;  %2726 = vmatpush1.msra.mxu0 %v2623_v52 }
 0xb88   : > { %v2613_v5 = vmul.f32 %v2612_v62, %v3547_v33  ;;  %v2614_v6 = vmul.f32 %v2609_v53, %v3550_v34 }
 0xb8a   : > { %2727 = vmatprep.subr.mxu0 %v2614_v6 }
 0xb8b   : > { %2728 = vmatpush1.msra.mxu0 %v2613_v5 }
 0xb8c   : > { %3266 = vmatmul.mubr.msk.f32.vlgmr.msra.gmra.mxu0 %vm2192_vm6, %v2687_v7 }
 0xb8d   : > { %3095 = vmatprep.mubr.f32.mxu0 %v3311_v13  ;;  %v2855_v13 = vld [vmem:[%s4417_s24] sm:$0xff] }
 0xb93   : > { %v2692_v49 = vpop.permute.xlu1 %2691 }
 0xc4c   : > { %v2763_v9 = vpop.f32.mrf.mxu0 }
 0xc4d   : > { %v2764_v8 = vadd.f32 %v2763_v9, %v2692_v49 }
 0xc4e   : > { %v2765_v14 = vpop.f32.mrf.mxu0 }
 0xc4f   : > { %v2768_v18 = vadd.f32 %v2764_v8, %v4121_v2  ;;  %v2766_v3 = vadd.f32 %v2765_v14, %v2692_v49 }
 0xc51   : > { %2802 = vrot.lane.b32.xlu0 %v2768_v18, %s4472_s9  ;;  %2844 = vrot.lane.b32.xlu1 %v2768_v18, %s4461_s8  ;;  %v2769_v19 = vadd.f32 %v2766_v3, %v4128_v10  ;;  %v2812_v7 = vmul.f32 %v2768_v18, %v3505_v11 }
 0xc53   : > { %v2813_v5 = vmul.f32 %v2769_v19, %v3508_v12 }
 0xc55   : > { %2846 = vrot.lane.b32.xlu0 %v2769_v19, %s4461_s8  ;;  %2834 = vrot.lane.b32.xlu1 %v2768_v18, %s4471_s4 }
 0xc59   : > { %2836 = vrot.lane.b32.xlu0 %v2769_v19, %s4471_s4  ;;  %2824 = vrot.lane.b32.xlu1 %v2768_v18, %s4463_s0 }
 0xc5d   : > { %2826 = vrot.lane.b32.xlu0 %v2769_v19, %s4463_s0  ;;  %2814 = vrot.lane.b32.xlu1 %v2768_v18, %s4470_s3 }
 0xc61   : > { %2816 = vrot.lane.b32.xlu0 %v2769_v19, %s4470_s3  ;;  %2804 = vrot.lane.b32.xlu1 %v2769_v19, %s4472_s9 }
 0xc65   : > { %2792 = vrot.lane.b32.xlu0 %v2768_v18, %s4464_s12  ;;  %2794 = vrot.lane.b32.xlu1 %v2769_v19, %s4464_s12 }
 0xc69   : > { %2782 = vrot.lane.b32.xlu0 %v2768_v18, %s4462_s6  ;;  %2784 = vrot.lane.b32.xlu1 %v2769_v19, %s4462_s6 }
 0xc6d   : > { %2772 = vrot.lane.b32.xlu0 %v2768_v18, %s4465_s1  ;;  %2774 = vrot.lane.b32.xlu1 %v2769_v19, %s4465_s1 }
 0xc71   : > { %2858 = vperm.xlu0 %3293, %v2855_v13  }
 0xcc3   : > { %v2803_v2 = vpop.permute.xlu0 %2802  ;;  %v2845_v10 = vpop.permute.xlu1 %2844 }
 0xcc4   : > { %v2809_v0 = vsel %vm997_vm3, 0.0, %v2803_v2 }
 0xcc5   : > { %v2810_v8 = vmul.f32 %v2809_v0, %v3554_v36 }
 0xcc7   : > { %v2847_v20 = vpop.permute.xlu0 %2846  ;;  %v2835_v21 = vpop.permute.xlu1 %2834 }
 0xcc8   : > { %v2848_v4 = vsel %vm1086_vm12, %v2845_v10, %v2847_v20  ;;  %v2851_v22 = vsel %vm1086_vm12, %v2847_v20, 0.0 }
 0xcc9   : > { %v2852_v24 = vmul.f32 %v2848_v4, %v3606_v16  ;;  %v2853_v30 = vmul.f32 %v2851_v22, %v3619_v43 }
 0xccb   : > { %2878 = vmatprep.subr.mxu1 %v2853_v30  ;;  %v2837_v38 = vpop.permute.xlu0 %2836  ;;  %v2825_v57 = vpop.permute.xlu1 %2824 }
 0xccc   : > { %v2838_v42 = vsel %vm1064_vm9, %v2835_v21, %v2837_v38  ;;  %v2841_v44 = vsel %vm1064_vm9, %v2837_v38, 0.0  ;;  %2879 = vmatpush1.msra.mxu1 %v2852_v24 }
 0xccd   : > { %v2842_v45 = vmul.f32 %v2838_v42, %v3590_v58  ;;  %v2843_v25 = vmul.f32 %v2841_v44, %v3599_v1 }
 0xccf   : > { %v2827_v47 = vpop.permute.xlu0 %2826  ;;  %2880 = vmatprep.subr.mxu1 %v2843_v25  ;;  %v2815_v48 = vpop.permute.xlu1 %2814 }
 0xcd0   : > { %v2828_v39 = vsel %vm1042_vm7, %v2825_v57, %v2827_v47  ;;  %v2831_v46 = vsel %vm1042_vm7, %v2827_v47, 0.0  ;;  %2881 = vmatpush1.msra.mxu1 %v2842_v45  ;;  %v2854_v57 = vld [vmem:[%s4416_s23] sm:$0xff] }
 0xcd1   : > { %v2832_v56 = vmul.f32 %v2828_v39, %v3579_v51  ;;  %v2833_v59 = vmul.f32 %v2831_v46, %v3584_v54 }
 0xcd3   : > { %v2817_v50 = vpop.permute.xlu0 %2816  ;;  %2882 = vmatprep.subr.mxu1 %v2833_v59  ;;  %v2805_v55 = vpop.permute.xlu1 %2804 }
 0xcd4   : > { %v2818_v31 = vsel %vm1020_vm5, %v2815_v48, %v2817_v50  ;;  %v2821_v60 = vsel %vm1020_vm5, %v2817_v50, 0.0  ;;  %2883 = vmatpush1.msra.mxu1 %v2832_v56  ;;  %v2806_v63 = vsel %vm997_vm3, %v2803_v2, %v2805_v55 }
 0xcd5   : > { %v2822_v52 = vmul.f32 %v2818_v31, %v3564_v40  ;;  %v2823_v61 = vmul.f32 %v2821_v60, %v3567_v41  ;;  %v2811_v49 = vmul.f32 %v2806_v63, %v3557_v37 }
 0xcd7   : > { %v2793_v62 = vpop.permute.xlu0 %2792  ;;  %2884 = vmatprep.subr.mxu1 %v2823_v61  ;;  %v2795_v53 = vpop.permute.xlu1 %2794 }
 0xcd8   : > { %v2796_v6 = vsel %vm975_vm0, %v2793_v62, %v2795_v53  ;;  %2885 = vmatpush1.msra.mxu1 %v2822_v52  ;;  %v2799_v9 = vsel %vm975_vm0, 0.0, %v2793_v62 }
 0xcd9   : > { %2886 = vmatprep.subr.mxu1 %v2813_v5  ;;  %v2801_v14 = vmul.f32 %v2796_v6, %v3538_v28  ;;  %v2800_v19 = vmul.f32 %v2799_v9, %v3532_v26 }
 0xcda   : > { %2887 = vmatpush1.msra.mxu1 %v2812_v7 }
 0xcdb   : > { %v2783_v3 = vpop.permute.xlu0 %2782  ;;  %v2785_v13 = vpop.permute.xlu1 %2784  ;;  %2888 = vmatprep.subr.mxu1 %v2811_v49 }
 0xcdc   : > { %v2789_v2 = vsel %vm953_vm1, 0.0, %v2783_v3  ;;  %v2786_v10 = vsel %vm953_vm1, %v2783_v3, %v2785_v13  ;;  %2889 = vmatpush1.msra.mxu1 %v2810_v8 }
 0xcdd   : > { %v2790_v18 = vmul.f32 %v2789_v2, %v3535_v27  ;;  %v2791_v20 = vmul.f32 %v2786_v10, %v3544_v32  ;;  %2890 = vmatprep.subr.mxu1 %v2801_v14 }
 0xcde   : > { %2891 = vmatpush1.msra.mxu1 %v2800_v19 }
 0xcdf   : > { %v2773_v21 = vpop.permute.xlu0 %2772  ;;  %v2775_v4 = vpop.permute.xlu1 %2774  ;;  %2892 = vmatprep.subr.mxu1 %v2791_v20 }
 0xce0   : > { %v2779_v22 = vsel %vm931_vm2, 0.0, %v2773_v21  ;;  %v2776_v24 = vsel %vm931_vm2, %v2773_v21, %v2775_v4  ;;  %2893 = vmatpush1.msra.mxu1 %v2790_v18 }
 0xce1   : > { %v2780_v30 = vmul.f32 %v2779_v22, %v3547_v33  ;;  %v2781_v38 = vmul.f32 %v2776_v24, %v3550_v34 }
 0xce3   : > { %2894 = vmatprep.subr.mxu1 %v2781_v38 }
 0xce4   : > { %2895 = vmatpush1.msra.mxu1 %v2780_v30 }
 0xce5   : > { %3267 = vmatmul.mubr.msk.f32.vlgmr.msra.gmra.mxu1 %vm2192_vm6, %v2854_v57 }
 0xcec   : > { %v2859_v42 = vpop.permute.xlu0 %2858 }
 0xda5   : > { %v2930_v44 = vpop.f32.mrf.mxu1 }
 0xda6   : > { %v2931_v45 = vadd.f32 %v2930_v44, %v2859_v42 }
 0xda7   : > { %v2932_v25 = vpop.f32.mrf.mxu1 }
 0xda8   : > { %v2935_v47 = vadd.f32 %v2931_v45, %v3982_v17  ;;  %v2933_v48 = vadd.f32 %v2932_v25, %v2859_v42  ;;  %v3022_v17 = vld [vmem:[%s4419_s26] sm:$0xf] }
 0xdaa   : > { %2969 = vrot.lane.b32.xlu1 %v2935_v47, %s4472_s9  ;;  %3011 = vrot.lane.b32.xlu0 %v2935_v47, %s4461_s8  ;;  %v2936_v39 = vadd.f32 %v2933_v48, %v3988_v15  ;;  %v2979_v18 = vmul.f32 %v2935_v47, %v3505_v11 }
 0xdae   : > { %3013 = vrot.lane.b32.xlu1 %v2936_v39, %s4461_s8  ;;  %3001 = vrot.lane.b32.xlu0 %v2935_v47, %s4471_s4 }
 0xdb2   : > { %3003 = vrot.lane.b32.xlu1 %v2936_v39, %s4471_s4  ;;  %2991 = vrot.lane.b32.xlu0 %v2935_v47, %s4463_s0  ;;  %s891_s4 = scalar_lea.vmem %s4420_s27, %s3718_s2 }
 0xdb6   : > { %2993 = vrot.lane.b32.xlu1 %v2936_v39, %s4463_s0  ;;  %2981 = vrot.lane.b32.xlu0 %v2935_v47, %s4470_s3 }
 0xdba   : > { %2983 = vrot.lane.b32.xlu1 %v2936_v39, %s4470_s3  ;;  %2971 = vrot.lane.b32.xlu0 %v2936_v39, %s4472_s9 }
 0xdbe   : > { %2959 = vrot.lane.b32.xlu1 %v2935_v47, %s4464_s12  ;;  %2961 = vrot.lane.b32.xlu0 %v2936_v39, %s4464_s12 }
 0xdc2   : > { %2949 = vrot.lane.b32.xlu1 %v2935_v47, %s4462_s6  ;;  %2951 = vrot.lane.b32.xlu0 %v2936_v39, %s4462_s6 }
 0xdc6   : > { %2939 = vrot.lane.b32.xlu1 %v2935_v47, %s4465_s1  ;;  %2941 = vrot.lane.b32.xlu0 %v2936_v39, %s4465_s1 }
 0xdca   : > { %3025 = vperm.xlu1 %3294, %v3022_v17  }
 0xe1c   : > { %v2970_v15 = vpop.permute.xlu1 %2969  ;;  %v3012_v46 = vpop.permute.xlu0 %3011 }
 0xe1d   : > { %v2976_v19 = vsel %vm997_vm3, 0.0, %v2970_v15 }
 0xe20   : > { %v3014_v56 = vpop.permute.xlu1 %3013  ;;  %v3002_v59 = vpop.permute.xlu0 %3001 }
 0xe21   : > { %v3015_v50 = vsel %vm1086_vm12, %v3012_v46, %v3014_v56  ;;  %v3018_v55 = vsel %vm1086_vm12, %v3014_v56, 0.0 }
 0xe22   : > { %v3019_v31 = vmul.f32 %v3015_v50, %v3606_v16  ;;  %v3020_v60 = vmul.f32 %v3018_v55, %v3619_v43 }
 0xe24   : > { %3045 = vmatprep.subr.mxu0 %v3020_v60  ;;  %v3004_v52 = vpop.permute.xlu1 %3003  ;;  %v2992_v61 = vpop.permute.xlu0 %2991 }
 0xe25   : > { %v3005_v63 = vsel %vm1064_vm9, %v3002_v59, %v3004_v52  ;;  %v3008_v0 = vsel %vm1064_vm9, %v3004_v52, 0.0  ;;  %3046 = vmatpush1.msra.mxu0 %v3019_v31 }
 0xe26   : > { %v3009_v62 = vmul.f32 %v3005_v63, %v3590_v58  ;;  %v3010_v53 = vmul.f32 %v3008_v0, %v3599_v1 }
 0xe28   : > { %v2994_v5 = vpop.permute.xlu1 %2993  ;;  %3047 = vmatprep.subr.mxu0 %v3010_v53  ;;  %v2982_v6 = vpop.permute.xlu0 %2981 }
 0xe29   : > { %v2995_v7 = vsel %vm1042_vm7, %v2992_v61, %v2994_v5  ;;  %v2998_v16 = vsel %vm1042_vm7, %v2994_v5, 0.0  ;;  %3048 = vmatpush1.msra.mxu0 %v3009_v62 }
 0xe2a   : > { %v2999_v43 = vmul.f32 %v2995_v7, %v3579_v51  ;;  %v3000_v49 = vmul.f32 %v2998_v16, %v3584_v54  ;;  %v2980_v54 = vmul.f32 %v2936_v39, %v3508_v12 }
 0xe2c   : > { %v2984_v9 = vpop.permute.xlu1 %2983  ;;  %3049 = vmatprep.subr.mxu0 %v3000_v49  ;;  %v2972_v8 = vpop.permute.xlu0 %2971 }
 0xe2d   : > { %v2985_v14 = vsel %vm1020_vm5, %v2982_v6, %v2984_v9  ;;  %v2988_v58 = vsel %vm1020_vm5, %v2984_v9, 0.0  ;;  %3050 = vmatpush1.msra.mxu0 %v2999_v43  ;;  %v2973_v13 = vsel %vm997_vm3, %v2970_v15, %v2972_v8 }
 0xe2e   : > { %v2989_v1 = vmul.f32 %v2985_v14, %v3564_v40  ;;  %v2990_v3 = vmul.f32 %v2988_v58, %v3567_v41  ;;  %v2978_v20 = vmul.f32 %v2973_v13, %v3557_v37  ;;  %v2977_v41 = vmul.f32 %v2976_v19, %v3554_v36 }
 0xe30   : > { %v2960_v2 = vpop.permute.xlu1 %2959  ;;  %3051 = vmatprep.subr.mxu0 %v2990_v3  ;;  %v2962_v51 = vpop.permute.xlu0 %2961 }
 0xe31   : > { %v2963_v10 = vsel %vm975_vm0, %v2960_v2, %v2962_v51  ;;  %3052 = vmatpush1.msra.mxu0 %v2989_v1  ;;  %v2966_v40 = vsel %vm975_vm0, 0.0, %v2960_v2 }
 0xe32   : > { %3053 = vmatprep.subr.mxu0 %v2980_v54  ;;  %v2968_v21 = vmul.f32 %v2963_v10, %v3538_v28  ;;  %v2967_v12 = vmul.f32 %v2966_v40, %v3532_v26 }
 0xe33   : > { %3054 = vmatpush1.msra.mxu0 %v2979_v18 }
 0xe34   : > { %v2950_v4 = vpop.permute.xlu1 %2949  ;;  %v2952_v22 = vpop.permute.xlu0 %2951  ;;  %3055 = vmatprep.subr.mxu0 %v2978_v20 }
 0xe35   : > { %v2956_v24 = vsel %vm953_vm1, 0.0, %v2950_v4  ;;  %v2953_v30 = vsel %vm953_vm1, %v2950_v4, %v2952_v22  ;;  %3056 = vmatpush1.msra.mxu0 %v2977_v41 }
 0xe36   : > { %v2957_v11 = vmul.f32 %v2956_v24, %v3535_v27  ;;  %v2958_v37 = vmul.f32 %v2953_v30, %v3544_v32  ;;  %3057 = vmatprep.subr.mxu0 %v2968_v21  ;;  %v3021_v27 = vld [vmem:[%s4418_s25] sm:$0xf] }
 0xe37   : > { %3058 = vmatpush1.msra.mxu0 %v2967_v12 }
 0xe38   : > { %v2940_v36 = vpop.permute.xlu1 %2939  ;;  %v2942_v38 = vpop.permute.xlu0 %2941  ;;  %3059 = vmatprep.subr.mxu0 %v2958_v37 }
 0xe39   : > { %v2946_v28 = vsel %vm931_vm2, 0.0, %v2940_v36  ;;  %v2943_v26 = vsel %vm931_vm2, %v2940_v36, %v2942_v38  ;;  %3060 = vmatpush1.msra.mxu0 %v2957_v11 }
 0xe3a   : > { %v2947_v57 = vmul.f32 %v2946_v28, %v3547_v33  ;;  %v2948_v42 = vmul.f32 %v2943_v26, %v3550_v34  ;;  %v3296_v33 = vld [vmem:[%s3728_s28] sm:$0xff] }
 0xe3b   : > { %v3106_v34 = vsub.f32 %v3296_v33, %v3104_v35 }
 0xe3c   : > { %3061 = vmatprep.subr.mxu0 %v2948_v42 }
 0xe3d   : > { %3062 = vmatpush1.msra.mxu0 %v2947_v57 }
 0xe3e   : > { %3268 = vmatmul.mubr.msk.f32.vlgmr.msra.gmra.mxu0 %vm2192_vm6, %v3021_v27 }
 0xe45   : > { %v3026_v44 = vpop.permute.xlu1 %3025 }
 0xefe   : > { %v3097_v32 = vpop.f32.mrf.mxu0 }
 0xeff   : > { %v3098_v25 = vadd.f32 %v3097_v32, %v3026_v44 }
 0xf00   : > { %v3099_v45 = vpop.f32.mrf.mxu0 }
 0xf01   : > { %v3100_v47 = vadd.f32 %v3099_v45, %v3026_v44 }
 0xf03   : > { %v3109_v48 = vcombine.low %v3098_v25, %v3100_v47 }
 0xf05   : > { %v3111_v39 = vadd.f32 %v3109_v48, %v3106_v34  ;;  %3112 = vst [vmem:[%s891_s4] sm:$0xff] %v3109_v48 }
 0xf07   : > { %3113 = vst [vmem:[%s896_s10] sm:$0xff] %v3111_v39 }
 0xf08 PF: > { %s4478_s7 = sld [smem:[#allocation3_spill]] }
 0xf0e   : > { %s40_s30 = sadd.s32 1, %s4478_s7  }
 0xf0f   : > { %p37_p4 = scmp.ge.s32.totalorder %s40_s30, 4  }
 0xf11   :  { %39 = sbr.rel (!%p37_p4) target bundleno = 22 (0x16), region = 184 }

</bundles_post_ra>
